<compile_context>
chip_gen: v6e
topology: v6e:2x2x1
jax: 0.10.0
libtpu: 0.0.40
codegen_flags: <defaults>
</compile_context>

<pallas_src>
import functools

import numpy as np
import jax
import jax.numpy as jnp
from jax import lax
from jax.experimental import pallas as pl
from jax.experimental.pallas import tpu as pltpu


_KSIZE = 25
_PAD = _KSIZE >> 1        # RestoredImage.conv always replicate-pads by 12
_GPAD = 8                 # grad 3x3 vertical window padded to a sublane multiple


# ----------------------- deterministic "weights" ---------------------------

def make_gaussian_psf(size=_KSIZE, sigma=4.0):
    """Stands in for scipy.io.loadmat('G.mat')['G'] (no file IO allowed)."""
    ax = np.arange(size, dtype=np.float64) - (size - 1) / 2.0
    xx, yy = np.meshgrid(ax, ax)
    g = np.exp(-(xx ** 2 + yy ** 2) / (2.0 * sigma ** 2))
    return (g / g.sum()).astype(np.float32)


def make_laplace():
    return jnp.asarray([[0., 1., 0.],
                        [1., -4., 1.],
                        [0., 1., 0.]], dtype=jnp.float32)


def make_scharr(i):
    sx = np.array([[-3., 0., 3.],
                   [-10., 0., 10.],
                   [-3., 0., 3.]], dtype=np.float64) / 16.0
    sy = sx.T
    theta = i * np.pi / 6.0
    return jnp.asarray(np.cos(theta) * sx + np.sin(theta) * sy, dtype=jnp.float32)


# -------------------- band-matrix construction (host, compile time) ---------

def _round_up(x, m):
    return ((x + m - 1) // m) * m


def _band_np(taps, n_out, n_in):
    """Cross-correlation band: B[i, i+j] = taps[j]; shape (n_out, n_in)."""
    B = np.zeros((n_out, n_in), np.float32)
    idx = np.arange(n_out)
    for j, t in enumerate(np.asarray(taps, np.float64)):
        B[idx, idx + j] = t
    return B


def build_blur_bands(psf, tile_h, tile_w, dtype=jnp.float32):
    """Rank-r separable decomposition of the 25x25 PSF as tile-invariant bands."""
    psf = np.asarray(psf, np.float64)
    K = psf.shape[0]
    assert psf.shape == (K, K) and K == _KSIZE
    U, S, Vt = np.linalg.svd(psf)
    r = max(1, int(np.sum(S > 1e-7 * S[0])))          # Gaussian PSF -> r == 1
    bv = np.stack([_band_np(U[:, i] * S[i], tile_h, tile_h + K - 1)
                   for i in range(r)])                # (r, tile_h, tile_h+24)
    bh = np.stack([_band_np(Vt[i, :], tile_w, tile_w + K - 1).T
                   for i in range(r)])                # (r, tile_w+24, tile_w)
    return jnp.asarray(bv, dtype=dtype), jnp.asarray(bh, dtype=dtype)


def build_grad_bands(tile_h, tile_w, dtype=jnp.float32):
    """Tile-invariant 3-tap bands: [0]=smoothing, [1]=derivative, [2]=2nd diff."""
    v_s = np.array([3., 10., 3.]) / 16.0     # Scharr smoothing
    v_d = np.array([-1., 0., 1.])            # Scharr derivative (sign irrelevant: squared)
    v_d2 = np.array([1., -2., 1.])           # Laplace second difference
    taps = (v_s, v_d, v_d2)
    bvg = np.stack([_band_np(t, tile_h, tile_h + _GPAD) for t in taps])   # (3, th, th+8)
    bhg = np.stack([_band_np(t, tile_w, tile_w + 2).T for t in taps])     # (3, tw+2, tw)
    return jnp.asarray(bvg, dtype=dtype), jnp.asarray(bhg, dtype=dtype)


def choose_tiles(H, W, max_tile_h=256, max_tile_w=256):
    """MXU-friendly row/column tiles (rows multiple of 8, columns of 128)."""
    assert max_tile_h % 8 == 0 and max_tile_w % 128 == 0
    Ho = H + 2 * _PAD - 2
    Wo = W + 2 * _PAD - 2
    tile_h = min(max_tile_h, _round_up(Ho, 8))
    tile_w = min(max_tile_w, _round_up(Wo, 128))
    return tile_h, tile_w


# ------------------------------ fused Pallas kernel -------------------------

def _fused_kernel(bv_ref, bh_ref, bvg_ref, bhg_ref, p_ref, noise_ref,
                  out_ref, loss_ref, *,
                  blur_rank, tile_h, tile_w, n_col_tiles, Ho, Wo, inv_norm):
    """One (channel, row-tile): blurred tile + per-tile gradient-loss partial."""
    i = pl.program_id(1)
    row0 = pl.multiple_of(i * tile_h, 8)
    part = jnp.zeros((), jnp.float32)

    for j in range(n_col_tiles):                       # static unroll over column tiles
        c0 = j * tile_w

        # ---- 25x25 blur: rank-r separable band matmuls on the MXU ----
        win_b = p_ref[0, pl.ds(row0, tile_h + 2 * _PAD), c0:c0 + tile_w + 2 * _PAD]
        acc = None
        for r in range(blur_rank):
            v = jnp.dot(bv_ref[r], win_b,
                        preferred_element_type=jnp.float32).astype(bh_ref.dtype)
            o = jnp.dot(v, bh_ref[r], preferred_element_type=jnp.float32)
            acc = o if acc is None else acc + o
        out_ref[0, :, c0:c0 + tile_w] = (
            acc + noise_ref[:, c0:c0 + tile_w]).astype(out_ref.dtype)

        # ---- gradient loss: 3*Gx^2 + 3*Gy^2 + Lap^2 (exact Scharr collapse) ----
        win_g = p_ref[0, pl.ds(row0, tile_h + _GPAD), c0:c0 + tile_w + 2]
        gx = jnp.dot(jnp.dot(bvg_ref[0], win_g,
                             preferred_element_type=jnp.float32).astype(bhg_ref.dtype),
                     bhg_ref[1], preferred_element_type=jnp.float32)
        gy = jnp.dot(jnp.dot(bvg_ref[1], win_g,
                             preferred_element_type=jnp.float32).astype(bhg_ref.dtype),
                     bhg_ref[0], preferred_element_type=jnp.float32)
        # Laplace = (d2 (x) center) + (center (x) d2); center picks are slices, not matmuls
        lap_a = jnp.dot(bvg_ref[2], win_g,
                        preferred_element_type=jnp.float32)[:, 1:1 + tile_w]
        lap_b = jnp.dot(win_g[1:1 + tile_h, :], bhg_ref[2],
                        preferred_element_type=jnp.float32)
        lap = lap_a + lap_b

        ssq = 3.0 * (gx * gx) + 3.0 * (gy * gy) + lap * lap
        rows = lax.broadcasted_iota(jnp.int32, (tile_h, tile_w), 0) + i * tile_h
        cols = lax.broadcasted_iota(jnp.int32, (tile_h, tile_w), 1) + c0
        valid = (rows < Ho) & (cols < Wo)
        part = part + jnp.sum(jnp.where(valid, ssq, jnp.float32(0.0)))

    loss_ref[...] = jnp.broadcast_to(part * jnp.float32(inv_norm), loss_ref.shape)


def _fused_forward_call(padded_ext, noise_pad, bv, bh, bvg, bhg, *,
                        tile_h, tile_w, n_row_tiles, n_col_tiles, Ho, Wo):
    C, Hp_ext, Wp_ext = padded_ext.shape
    H_out_pad = n_row_tiles * tile_h
    W_out_pad = n_col_tiles * tile_w
    inv_norm = 1.0 / float(C * Ho * Wo)
    kernel = functools.partial(
        _fused_kernel, blur_rank=bv.shape[0], tile_h=tile_h, tile_w=tile_w,
        n_col_tiles=n_col_tiles, Ho=Ho, Wo=Wo, inv_norm=inv_norm)
    blur, loss_parts = pl.pallas_call(
        kernel,
        out_shape=(
            jax.ShapeDtypeStruct((C, H_out_pad, W_out_pad), jnp.float32),
            jax.ShapeDtypeStruct((C, n_row_tiles, 1, 128), jnp.float32),
        ),
        grid_spec=pltpu.PrefetchScalarGridSpec(
            num_scalar_prefetch=0,
            grid=(C, n_row_tiles),
            in_specs=[
                pl.BlockSpec(bv.shape, lambda c, i: (0, 0, 0)),           # blur Bv (const)
                pl.BlockSpec(bh.shape, lambda c, i: (0, 0, 0)),           # blur Bh (const)
                pl.BlockSpec(bvg.shape, lambda c, i: (0, 0, 0)),          # grad Bv (const)
                pl.BlockSpec(bhg.shape, lambda c, i: (0, 0, 0)),          # grad Bh (const)
                pl.BlockSpec((1, Hp_ext, Wp_ext), lambda c, i: (c, 0, 0)),  # padded img / chan
                pl.BlockSpec((tile_h, W_out_pad), lambda c, i: (i, 0)),     # noise row-stripe
            ],
            out_specs=(
                pl.BlockSpec((1, tile_h, W_out_pad), lambda c, i: (c, i, 0)),   # blur out
                pl.BlockSpec((1, 1, 1, 128), lambda c, i: (c, i, 0, 0)),        # loss partials
            ),
        ),
        compiler_params=pltpu.CompilerParams(
            dimension_semantics=("parallel", "parallel"),
        ),
    )(bv, bh, bvg, bhg, padded_ext, noise_pad)
    return blur, loss_parts


# ------------------------------ forward -------------------------------------

@functools.partial(jax.jit, static_argnames=("tile_h", "tile_w", "use_noise"))
def restored_image_forward(img, noise, bv, bh, bvg, bhg, *,
                           tile_h, tile_w, use_noise=True):
    """img: (1,3,H,W), noise: (1,1,H,W) — matches the PyTorch parameters."""
    assert tile_h % 8 == 0 and tile_w % 128 == 0
    img_chw = img[0].astype(bv.dtype)
    C, H, W = img_chw.shape
    Hp, Wp = H + 2 * _PAD, W + 2 * _PAD
    Ho, Wo = Hp - 2, Wp - 2                     # 3x3 conv output on the padded image
    n_row_tiles = -(-Ho // tile_h)
    n_col_tiles = -(-Wo // tile_w)
    H_out_pad = n_row_tiles * tile_h
    W_out_pad = n_col_tiles * tile_w
    Hp_ext = H_out_pad + 2 * _PAD
    Wp_ext = W_out_pad + 2 * _PAD

    # replicate-pad ONCE; zero-extend to the tiled extents (garbage rows/cols are
    # sliced off for the blur and masked out for the gradient loss)
    padded = jnp.pad(img_chw, ((0, 0), (_PAD, _PAD), (_PAD, _PAD)), mode="edge")
    padded_ext = jnp.pad(padded, ((0, 0), (0, Hp_ext - Hp), (0, Wp_ext - Wp)))

    if use_noise:
        noise_hw = noise[0, 0].astype(jnp.float32)
    else:
        noise_hw = jnp.zeros((H, W), jnp.float32)
    noise_pad = jnp.pad(noise_hw, ((0, H_out_pad - H), (0, W_out_pad - W)))

    blur, loss_parts = _fused_forward_call(
        padded_ext, noise_pad, bv, bh, bvg, bhg,
        tile_h=tile_h, tile_w=tile_w,
        n_row_tiles=n_row_tiles, n_col_tiles=n_col_tiles, Ho=Ho, Wo=Wo)

    conv_out = blur[:, :H, :W][None]                      # (1, C, H, W)
    first_order = jnp.sum(loss_parts[:, :, 0, 0])
    return conv_out, first_order


# -------------------------- pure-JAX reference ------------------------------

def _ref_forward(img, noise, psf, grad_kernels):
    C = img.shape[1]
    padded = jnp.pad(img, ((0, 0), (0, 0), (_PAD, _PAD), (_PAD, _PAD)), mode='edge')
    w = jnp.broadcast_to(psf[None, None], (C, 1) + psf.shape)
    conv = lax.conv_general_dilated(padded, w, (1, 1), 'VALID',
                                    feature_group_count=C) + noise
    total = jnp.float32(0.0)
    for k in range(grad_kernels.shape[0]):
        wk = jnp.broadcast_to(grad_kernels[k][None, None], (C, 1, 3, 3))
        ck = lax.conv_general_dilated(padded, wk, (1, 1), 'VALID',
                                      feature_group_count=C)
        total = total + jnp.mean(ck ** 2)
    return conv, total


# ---------------------------------- main ------------------------------------

if __name__ == "__main__":
    # Small but multi-tile test: 2 row tiles x 2 column tiles per channel, so the
    # edge masks of the gradient loss and the sliced blur output are exercised.
    H, W, C = 48, 144, 3
    tile_h, tile_w = choose_tiles(H, W, max_tile_h=64, max_tile_w=128)

    key = jax.random.PRNGKey(0)
    k_img, k_noise = jax.random.split(key)
    img = jax.random.uniform(k_img, (1, C, H, W), dtype=jnp.float32)   # torch.rand param
    noise = 1e-2 * jax.random.normal(k_noise, (1, 1, H, W), dtype=jnp.float32)

    psf = make_gaussian_psf(_KSIZE, 4.0)                               # stands in for G.mat
    bv, bh = build_blur_bands(psf, tile_h, tile_w, dtype=jnp.float32)
    bvg, bhg = build_grad_bands(tile_h, tile_w, dtype=jnp.float32)

    conv_out, first_order = restored_image_forward(
        img, noise, bv, bh, bvg, bhg,
        tile_h=tile_h, tile_w=tile_w, use_noise=True)
    jax.block_until_ready((conv_out, first_order))

    # reference uses the original 7-kernel formulation (6 rotated Scharr + Laplace)
    grad_kernels = jnp.stack([make_scharr(i) for i in range(6)] + [make_laplace()])
    ref_conv, ref_fo = _ref_forward(img, noise, jnp.asarray(psf), grad_kernels)

    assert conv_out.shape == (1, C, H, W)
    assert jnp.allclose(conv_out, ref_conv, atol=1e-3, rtol=1e-3), "conv mismatch"
    assert jnp.allclose(first_order, ref_fo, atol=1e-3, rtol=1e-3), "first_order mismatch"

    print("KERNEL_OK")
</pallas_src>

<mosaic_0001>
module attributes {stable_mosaic.version = 11 : i64} {
  func.func @_fused_kernel(%arg0: i32, %arg1: i32, %arg2: memref<1x64x88xf32, #tpu.memory_space<vmem>>, %arg3: memref<1x152x128xf32, #tpu.memory_space<vmem>>, %arg4: memref<3x64x72xf32, #tpu.memory_space<vmem>>, %arg5: memref<3x130x128xf32, #tpu.memory_space<vmem>>, %arg6: memref<1x152x280xf32, #tpu.memory_space<vmem>>, %arg7: memref<64x256xf32, #tpu.memory_space<vmem>>, %arg8: memref<1x64x256xf32, #tpu.memory_space<vmem>>, %arg9: memref<1x1x1x128xf32, #tpu.memory_space<vmem>>) attributes {dimension_semantics = [#tpu.dimension_semantics<parallel>, #tpu.dimension_semantics<parallel>], iteration_bounds = array<i64: 3, 2>, scalar_prefetch = 0 : i64, scratch_operands = 0 : i64, tpu.core_type = #tpu.core_type<tc>, window_params = [{pipeline_mode = #tpu.pipeline_mode<synchronous>, transform_indices = @transform_0, window_bounds = array<i64: 1, 64, 88>}, {pipeline_mode = #tpu.pipeline_mode<synchronous>, transform_indices = @transform_1, window_bounds = array<i64: 1, 152, 128>}, {pipeline_mode = #tpu.pipeline_mode<synchronous>, transform_indices = @transform_2, window_bounds = array<i64: 3, 64, 72>}, {pipeline_mode = #tpu.pipeline_mode<synchronous>, transform_indices = @transform_3, window_bounds = array<i64: 3, 130, 128>}, {transform_indices = @transform_4, window_bounds = array<i64: 1, 152, 280>}, {transform_indices = @transform_5, window_bounds = array<i64: 64, 256>}, {transform_indices = @transform_6, window_bounds = array<i64: 1, 64, 256>}, {transform_indices = @transform_7, window_bounds = array<i64: 1, 1, 1, 128>}]} {
    %c64_i32 = arith.constant 64 : i32
    %0 = arith.muli %arg1, %c64_i32 : i32
    %1 = tpu.assume_multiple %0, 8 : i32
    %c0 = arith.constant 0 : index
    %2 = arith.index_cast %1 : i32 to index
    %c0_0 = arith.constant 0 : index
    %3 = vector.load %arg6[%c0, %2, %c0_0] : memref<1x152x280xf32, #tpu.memory_space<vmem>>, vector<1x88x152xf32>
    %4 = vector.shape_cast %3 : vector<1x88x152xf32> to vector<88x152xf32>
    %c0_1 = arith.constant 0 : index
    %c0_2 = arith.constant 0 : index
    %c0_3 = arith.constant 0 : index
    %5 = vector.load %arg2[%c0_1, %c0_2, %c0_3] : memref<1x64x88xf32, #tpu.memory_space<vmem>>, vector<1x64x88xf32>
    %6 = vector.shape_cast %5 : vector<1x64x88xf32> to vector<64x88xf32>
    %cst = arith.constant dense<0.000000e+00> : vector<64x152xf32>
    %7 = tpu.matmul %6, %4, %cst {dimension_numbers = #tpu.dot_dimension_numbers<[1], [0], [0], [1], [0, 0, 1, 1], [], []>} : vector<64x88xf32>, vector<88x152xf32>, vector<64x152xf32> -> vector<64x152xf32>
    %c0_4 = arith.constant 0 : index
    %c0_5 = arith.constant 0 : index
    %c0_6 = arith.constant 0 : index
    %8 = vector.load %arg3[%c0_4, %c0_5, %c0_6] : memref<1x152x128xf32, #tpu.memory_space<vmem>>, vector<1x152x128xf32>
    %9 = vector.shape_cast %8 : vector<1x152x128xf32> to vector<152x128xf32>
    %cst_7 = arith.constant dense<0.000000e+00> : vector<64x128xf32>
    %10 = tpu.matmul %7, %9, %cst_7 {dimension_numbers = #tpu.dot_dimension_numbers<[1], [0], [0], [1], [0, 0, 1, 1], [], []>} : vector<64x152xf32>, vector<152x128xf32>, vector<64x128xf32> -> vector<64x128xf32>
    %c0_8 = arith.constant 0 : index
    %c0_9 = arith.constant 0 : index
    %11 = vector.load %arg7[%c0_8, %c0_9] : memref<64x256xf32, #tpu.memory_space<vmem>>, vector<64x128xf32>
    %12 = arith.addf %10, %11 : vector<64x128xf32>
    %c0_10 = arith.constant 0 : index
    %c0_11 = arith.constant 0 : index
    %c0_12 = arith.constant 0 : index
    %13 = vector.load %arg8[%c0_10, %c0_11, %c0_12] : memref<1x64x256xf32, #tpu.memory_space<vmem>>, vector<1x64x128xf32>
    %14 = vector.shape_cast %13 : vector<1x64x128xf32> to vector<64x128xf32>
    %15 = vector.shape_cast %12 : vector<64x128xf32> to vector<1x64x128xf32>
    tpu.vector_store %arg8[%c0_10, %c0_11, %c0_12], %15 {strides = array<i32>} : memref<1x64x256xf32, #tpu.memory_space<vmem>>, vector<1x64x128xf32>,
    %c0_13 = arith.constant 0 : index
    %16 = arith.index_cast %1 : i32 to index
    %c0_14 = arith.constant 0 : index
    %17 = vector.load %arg6[%c0_13, %16, %c0_14] : memref<1x152x280xf32, #tpu.memory_space<vmem>>, vector<1x72x130xf32>
    %18 = vector.shape_cast %17 : vector<1x72x130xf32> to vector<72x130xf32>
    %c0_15 = arith.constant 0 : index
    %c0_16 = arith.constant 0 : index
    %c0_17 = arith.constant 0 : index
    %19 = vector.load %arg4[%c0_15, %c0_16, %c0_17] : memref<3x64x72xf32, #tpu.memory_space<vmem>>, vector<1x64x72xf32>
    %20 = vector.shape_cast %19 : vector<1x64x72xf32> to vector<64x72xf32>
    %cst_18 = arith.constant dense<0.000000e+00> : vector<64x130xf32>
    %21 = tpu.matmul %20, %18, %cst_18 {dimension_numbers = #tpu.dot_dimension_numbers<[1], [0], [0], [1], [0, 0, 1, 1], [], []>} : vector<64x72xf32>, vector<72x130xf32>, vector<64x130xf32> -> vector<64x130xf32>
    %c1 = arith.constant 1 : index
    %c0_19 = arith.constant 0 : index
    %c0_20 = arith.constant 0 : index
    %22 = vector.load %arg5[%c1, %c0_19, %c0_20] : memref<3x130x128xf32, #tpu.memory_space<vmem>>, vector<1x130x128xf32>
    %23 = vector.shape_cast %22 : vector<1x130x128xf32> to vector<130x128xf32>
    %cst_21 = arith.constant dense<0.000000e+00> : vector<64x128xf32>
    %24 = tpu.matmul %21, %23, %cst_21 {dimension_numbers = #tpu.dot_dimension_numbers<[1], [0], [0], [1], [0, 0, 1, 1], [], []>} : vector<64x130xf32>, vector<130x128xf32>, vector<64x128xf32> -> vector<64x128xf32>
    %c1_22 = arith.constant 1 : index
    %c0_23 = arith.constant 0 : index
    %c0_24 = arith.constant 0 : index
    %25 = vector.load %arg4[%c1_22, %c0_23, %c0_24] : memref<3x64x72xf32, #tpu.memory_space<vmem>>, vector<1x64x72xf32>
    %26 = vector.shape_cast %25 : vector<1x64x72xf32> to vector<64x72xf32>
    %cst_25 = arith.constant dense<0.000000e+00> : vector<64x130xf32>
    %27 = tpu.matmul %26, %18, %cst_25 {dimension_numbers = #tpu.dot_dimension_numbers<[1], [0], [0], [1], [0, 0, 1, 1], [], []>} : vector<64x72xf32>, vector<72x130xf32>, vector<64x130xf32> -> vector<64x130xf32>
    %c0_26 = arith.constant 0 : index
    %c0_27 = arith.constant 0 : index
    %c0_28 = arith.constant 0 : index
    %28 = vector.load %arg5[%c0_26, %c0_27, %c0_28] : memref<3x130x128xf32, #tpu.memory_space<vmem>>, vector<1x130x128xf32>
    %29 = vector.shape_cast %28 : vector<1x130x128xf32> to vector<130x128xf32>
    %cst_29 = arith.constant dense<0.000000e+00> : vector<64x128xf32>
    %30 = tpu.matmul %27, %29, %cst_29 {dimension_numbers = #tpu.dot_dimension_numbers<[1], [0], [0], [1], [0, 0, 1, 1], [], []>} : vector<64x130xf32>, vector<130x128xf32>, vector<64x128xf32> -> vector<64x128xf32>
    %c2 = arith.constant 2 : index
    %c0_30 = arith.constant 0 : index
    %c0_31 = arith.constant 0 : index
    %31 = vector.load %arg4[%c2, %c0_30, %c0_31] : memref<3x64x72xf32, #tpu.memory_space<vmem>>, vector<1x64x72xf32>
    %32 = vector.shape_cast %31 : vector<1x64x72xf32> to vector<64x72xf32>
    %cst_32 = arith.constant dense<0.000000e+00> : vector<64x130xf32>
    %33 = tpu.matmul %32, %18, %cst_32 {dimension_numbers = #tpu.dot_dimension_numbers<[1], [0], [0], [1], [0, 0, 1, 1], [], []>} : vector<64x72xf32>, vector<72x130xf32>, vector<64x130xf32> -> vector<64x130xf32>
    %34 = vector.extract_strided_slice %33 {offsets = [0, 1], sizes = [64, 128], strides = [1, 1]} : vector<64x130xf32> to vector<64x128xf32>
    %35 = vector.extract_strided_slice %18 {offsets = [1, 0], sizes = [64, 130], strides = [1, 1]} : vector<72x130xf32> to vector<64x130xf32>
    %c2_33 = arith.constant 2 : index
    %c0_34 = arith.constant 0 : index
    %c0_35 = arith.constant 0 : index
    %36 = vector.load %arg5[%c2_33, %c0_34, %c0_35] : memref<3x130x128xf32, #tpu.memory_space<vmem>>, vector<1x130x128xf32>
    %37 = vector.shape_cast %36 : vector<1x130x128xf32> to vector<130x128xf32>
    %cst_36 = arith.constant dense<0.000000e+00> : vector<64x128xf32>
    %38 = tpu.matmul %35, %37, %cst_36 {dimension_numbers = #tpu.dot_dimension_numbers<[1], [0], [0], [1], [0, 0, 1, 1], [], []>} : vector<64x130xf32>, vector<130x128xf32>, vector<64x128xf32> -> vector<64x128xf32>
    %39 = arith.addf %34, %38 : vector<64x128xf32>
    %40 = arith.mulf %24, %24 : vector<64x128xf32>
    %cst_37 = arith.constant 3.000000e+00 : f32
    %41 = vector.broadcast %cst_37 : f32 to vector<64x128xf32>
    %42 = arith.mulf %41, %40 : vector<64x128xf32>
    %43 = arith.mulf %30, %30 : vector<64x128xf32>
    %cst_38 = arith.constant 3.000000e+00 : f32
    %44 = vector.broadcast %cst_38 : f32 to vector<64x128xf32>
    %45 = arith.mulf %44, %43 : vector<64x128xf32>
    %46 = arith.addf %42, %45 : vector<64x128xf32>
    %47 = arith.mulf %39, %39 : vector<64x128xf32>
    %48 = arith.addf %46, %47 : vector<64x128xf32>
    %49 = tpu.iota {dimensions = array<i32: 0>} : vector<64x128xi32>
    %c64_i32_39 = arith.constant 64 : i32
    %50 = arith.muli %arg1, %c64_i32_39 : i32
    %51 = vector.broadcast %50 : i32 to vector<64x128xi32>
    %52 = arith.addi %49, %51 : vector<64x128xi32>
    %53 = tpu.iota {dimensions = array<i32: 1>} : vector<64x128xi32>
    %c0_i32 = arith.constant 0 : i32
    %54 = vector.broadcast %c0_i32 : i32 to vector<64x128xi32>
    %55 = arith.addi %53, %54 : vector<64x128xi32>
    %c70_i32 = arith.constant 70 : i32
    %56 = vector.broadcast %c70_i32 : i32 to vector<64x128xi32>
    %57 = arith.cmpi slt, %52, %56 : vector<64x128xi32>
    %c166_i32 = arith.constant 166 : i32
    %58 = vector.broadcast %c166_i32 : i32 to vector<64x128xi32>
    %59 = arith.cmpi slt, %55, %58 : vector<64x128xi32>
    %60 = arith.andi %57, %59 : vector<64x128xi1>
    %cst_40 = arith.constant 0.000000e+00 : f32
    %61 = vector.broadcast %cst_40 : f32 to vector<64x128xf32>
    %62 = arith.select %60, %48, %61 : vector<64x128xi1>, vector<64x128xf32>
    %63 = vector.shape_cast %62 : vector<64x128xf32> to vector<1x64x128xf32>
    %cst_41 = arith.constant dense<0.000000e+00> : vector<1xf32>
    %64 = vector.multi_reduction <add>, %63, %cst_41 [1, 2] : vector<1x64x128xf32> to vector<1xf32>
    %65 = vector.shape_cast %64 : vector<1xf32> to vector<1x1x1xf32>
    %66 = vector.extract %65[0, 0, 0] : f32 from vector<1x1x1xf32>
    %cst_42 = arith.constant 0.000000e+00 : f32
    %67 = arith.addf %cst_42, %66 : f32
    %c0_43 = arith.constant 0 : index
    %68 = arith.index_cast %1 : i32 to index
    %c128 = arith.constant 128 : index
    %69 = vector.load %arg6[%c0_43, %68, %c128] : memref<1x152x280xf32, #tpu.memory_space<vmem>>, vector<1x88x152xf32>
    %70 = vector.shape_cast %69 : vector<1x88x152xf32> to vector<88x152xf32>
    %c0_44 = arith.constant 0 : index
    %c0_45 = arith.constant 0 : index
    %c0_46 = arith.constant 0 : index
    %71 = vector.load %arg2[%c0_44, %c0_45, %c0_46] : memref<1x64x88xf32, #tpu.memory_space<vmem>>, vector<1x64x88xf32>
    %72 = vector.shape_cast %71 : vector<1x64x88xf32> to vector<64x88xf32>
    %cst_47 = arith.constant dense<0.000000e+00> : vector<64x152xf32>
    %73 = tpu.matmul %72, %70, %cst_47 {dimension_numbers = #tpu.dot_dimension_numbers<[1], [0], [0], [1], [0, 0, 1, 1], [], []>} : vector<64x88xf32>, vector<88x152xf32>, vector<64x152xf32> -> vector<64x152xf32>
    %c0_48 = arith.constant 0 : index
    %c0_49 = arith.constant 0 : index
    %c0_50 = arith.constant 0 : index
    %74 = vector.load %arg3[%c0_48, %c0_49, %c0_50] : memref<1x152x128xf32, #tpu.memory_space<vmem>>, vector<1x152x128xf32>
    %75 = vector.shape_cast %74 : vector<1x152x128xf32> to vector<152x128xf32>
    %cst_51 = arith.constant dense<0.000000e+00> : vector<64x128xf32>
    %76 = tpu.matmul %73, %75, %cst_51 {dimension_numbers = #tpu.dot_dimension_numbers<[1], [0], [0], [1], [0, 0, 1, 1], [], []>} : vector<64x152xf32>, vector<152x128xf32>, vector<64x128xf32> -> vector<64x128xf32>
    %c0_52 = arith.constant 0 : index
    %c128_53 = arith.constant 128 : index
    %77 = vector.load %arg7[%c0_52, %c128_53] : memref<64x256xf32, #tpu.memory_space<vmem>>, vector<64x128xf32>
    %78 = arith.addf %76, %77 : vector<64x128xf32>
    %c0_54 = arith.constant 0 : index
    %c0_55 = arith.constant 0 : index
    %c128_56 = arith.constant 128 : index
    %79 = vector.load %arg8[%c0_54, %c0_55, %c128_56] : memref<1x64x256xf32, #tpu.memory_space<vmem>>, vector<1x64x128xf32>
    %80 = vector.shape_cast %79 : vector<1x64x128xf32> to vector<64x128xf32>
    %81 = vector.shape_cast %78 : vector<64x128xf32> to vector<1x64x128xf32>
    tpu.vector_store %arg8[%c0_54, %c0_55, %c128_56], %81 {strides = array<i32>} : memref<1x64x256xf32, #tpu.memory_space<vmem>>, vector<1x64x128xf32>,
    %c0_57 = arith.constant 0 : index
    %82 = arith.index_cast %1 : i32 to index
    %c128_58 = arith.constant 128 : index
    %83 = vector.load %arg6[%c0_57, %82, %c128_58] : memref<1x152x280xf32, #tpu.memory_space<vmem>>, vector<1x72x130xf32>
    %84 = vector.shape_cast %83 : vector<1x72x130xf32> to vector<72x130xf32>
    %c0_59 = arith.constant 0 : index
    %c0_60 = arith.constant 0 : index
    %c0_61 = arith.constant 0 : index
    %85 = vector.load %arg4[%c0_59, %c0_60, %c0_61] : memref<3x64x72xf32, #tpu.memory_space<vmem>>, vector<1x64x72xf32>
    %86 = vector.shape_cast %85 : vector<1x64x72xf32> to vector<64x72xf32>
    %cst_62 = arith.constant dense<0.000000e+00> : vector<64x130xf32>
    %87 = tpu.matmul %86, %84, %cst_62 {dimension_numbers = #tpu.dot_dimension_numbers<[1], [0], [0], [1], [0, 0, 1, 1], [], []>} : vector<64x72xf32>, vector<72x130xf32>, vector<64x130xf32> -> vector<64x130xf32>
    %c1_63 = arith.constant 1 : index
    %c0_64 = arith.constant 0 : index
    %c0_65 = arith.constant 0 : index
    %88 = vector.load %arg5[%c1_63, %c0_64, %c0_65] : memref<3x130x128xf32, #tpu.memory_space<vmem>>, vector<1x130x128xf32>
    %89 = vector.shape_cast %88 : vector<1x130x128xf32> to vector<130x128xf32>
    %cst_66 = arith.constant dense<0.000000e+00> : vector<64x128xf32>
    %90 = tpu.matmul %87, %89, %cst_66 {dimension_numbers = #tpu.dot_dimension_numbers<[1], [0], [0], [1], [0, 0, 1, 1], [], []>} : vector<64x130xf32>, vector<130x128xf32>, vector<64x128xf32> -> vector<64x128xf32>
    %c1_67 = arith.constant 1 : index
    %c0_68 = arith.constant 0 : index
    %c0_69 = arith.constant 0 : index
    %91 = vector.load %arg4[%c1_67, %c0_68, %c0_69] : memref<3x64x72xf32, #tpu.memory_space<vmem>>, vector<1x64x72xf32>
    %92 = vector.shape_cast %91 : vector<1x64x72xf32> to vector<64x72xf32>
    %cst_70 = arith.constant dense<0.000000e+00> : vector<64x130xf32>
    %93 = tpu.matmul %92, %84, %cst_70 {dimension_numbers = #tpu.dot_dimension_numbers<[1], [0], [0], [1], [0, 0, 1, 1], [], []>} : vector<64x72xf32>, vector<72x130xf32>, vector<64x130xf32> -> vector<64x130xf32>
    %c0_71 = arith.constant 0 : index
    %c0_72 = arith.constant 0 : index
    %c0_73 = arith.constant 0 : index
    %94 = vector.load %arg5[%c0_71, %c0_72, %c0_73] : memref<3x130x128xf32, #tpu.memory_space<vmem>>, vector<1x130x128xf32>
    %95 = vector.shape_cast %94 : vector<1x130x128xf32> to vector<130x128xf32>
    %cst_74 = arith.constant dense<0.000000e+00> : vector<64x128xf32>
    %96 = tpu.matmul %93, %95, %cst_74 {dimension_numbers = #tpu.dot_dimension_numbers<[1], [0], [0], [1], [0, 0, 1, 1], [], []>} : vector<64x130xf32>, vector<130x128xf32>, vector<64x128xf32> -> vector<64x128xf32>
    %c2_75 = arith.constant 2 : index
    %c0_76 = arith.constant 0 : index
    %c0_77 = arith.constant 0 : index
    %97 = vector.load %arg4[%c2_75, %c0_76, %c0_77] : memref<3x64x72xf32, #tpu.memory_space<vmem>>, vector<1x64x72xf32>
    %98 = vector.shape_cast %97 : vector<1x64x72xf32> to vector<64x72xf32>
    %cst_78 = arith.constant dense<0.000000e+00> : vector<64x130xf32>
    %99 = tpu.matmul %98, %84, %cst_78 {dimension_numbers = #tpu.dot_dimension_numbers<[1], [0], [0], [1], [0, 0, 1, 1], [], []>} : vector<64x72xf32>, vector<72x130xf32>, vector<64x130xf32> -> vector<64x130xf32>
    %100 = vector.extract_strided_slice %99 {offsets = [0, 1], sizes = [64, 128], strides = [1, 1]} : vector<64x130xf32> to vector<64x128xf32>
    %101 = vector.extract_strided_slice %84 {offsets = [1, 0], sizes = [64, 130], strides = [1, 1]} : vector<72x130xf32> to vector<64x130xf32>
    %c2_79 = arith.constant 2 : index
    %c0_80 = arith.constant 0 : index
    %c0_81 = arith.constant 0 : index
    %102 = vector.load %arg5[%c2_79, %c0_80, %c0_81] : memref<3x130x128xf32, #tpu.memory_space<vmem>>, vector<1x130x128xf32>
    %103 = vector.shape_cast %102 : vector<1x130x128xf32> to vector<130x128xf32>
    %cst_82 = arith.constant dense<0.000000e+00> : vector<64x128xf32>
    %104 = tpu.matmul %101, %103, %cst_82 {dimension_numbers = #tpu.dot_dimension_numbers<[1], [0], [0], [1], [0, 0, 1, 1], [], []>} : vector<64x130xf32>, vector<130x128xf32>, vector<64x128xf32> -> vector<64x128xf32>
    %105 = arith.addf %100, %104 : vector<64x128xf32>
    %106 = arith.mulf %90, %90 : vector<64x128xf32>
    %cst_83 = arith.constant 3.000000e+00 : f32
    %107 = vector.broadcast %cst_83 : f32 to vector<64x128xf32>
    %108 = arith.mulf %107, %106 : vector<64x128xf32>
    %109 = arith.mulf %96, %96 : vector<64x128xf32>
    %cst_84 = arith.constant 3.000000e+00 : f32
    %110 = vector.broadcast %cst_84 : f32 to vector<64x128xf32>
    %111 = arith.mulf %110, %109 : vector<64x128xf32>
    %112 = arith.addf %108, %111 : vector<64x128xf32>
    %113 = arith.mulf %105, %105 : vector<64x128xf32>
    %114 = arith.addf %112, %113 : vector<64x128xf32>
    %115 = tpu.iota {dimensions = array<i32: 0>} : vector<64x128xi32>
    %c64_i32_85 = arith.constant 64 : i32
    %116 = arith.muli %arg1, %c64_i32_85 : i32
    %117 = vector.broadcast %116 : i32 to vector<64x128xi32>
    %118 = arith.addi %115, %117 : vector<64x128xi32>
    %119 = tpu.iota {dimensions = array<i32: 1>} : vector<64x128xi32>
    %c128_i32 = arith.constant 128 : i32
    %120 = vector.broadcast %c128_i32 : i32 to vector<64x128xi32>
    %121 = arith.addi %119, %120 : vector<64x128xi32>
    %c70_i32_86 = arith.constant 70 : i32
    %122 = vector.broadcast %c70_i32_86 : i32 to vector<64x128xi32>
    %123 = arith.cmpi slt, %118, %122 : vector<64x128xi32>
    %c166_i32_87 = arith.constant 166 : i32
    %124 = vector.broadcast %c166_i32_87 : i32 to vector<64x128xi32>
    %125 = arith.cmpi slt, %121, %124 : vector<64x128xi32>
    %126 = arith.andi %123, %125 : vector<64x128xi1>
    %cst_88 = arith.constant 0.000000e+00 : f32
    %127 = vector.broadcast %cst_88 : f32 to vector<64x128xf32>
    %128 = arith.select %126, %114, %127 : vector<64x128xi1>, vector<64x128xf32>
    %129 = vector.shape_cast %128 : vector<64x128xf32> to vector<1x64x128xf32>
    %cst_89 = arith.constant dense<0.000000e+00> : vector<1xf32>
    %130 = vector.multi_reduction <add>, %129, %cst_89 [1, 2] : vector<1x64x128xf32> to vector<1xf32>
    %131 = vector.shape_cast %130 : vector<1xf32> to vector<1x1x1xf32>
    %132 = vector.extract %131[0, 0, 0] : f32 from vector<1x1x1xf32>
    %133 = arith.addf %67, %132 : f32
    %cst_90 = arith.constant 2.86861741E-5 : f32
    %134 = arith.mulf %133, %cst_90 : f32
    %135 = vector.broadcast %134 : f32 to vector<1x1x1x128xf32>
    %c0_91 = arith.constant 0 : index
    %c0_92 = arith.constant 0 : index
    %c0_93 = arith.constant 0 : index
    %c0_94 = arith.constant 0 : index
    %136 = vector.load %arg9[%c0_91, %c0_92, %c0_93, %c0_94] : memref<1x1x1x128xf32, #tpu.memory_space<vmem>>, vector<1x1x1x128xf32>
    tpu.vector_store %arg9[%c0_91, %c0_92, %c0_93, %c0_94], %135 {strides = array<i32>} : memref<1x1x1x128xf32, #tpu.memory_space<vmem>>, vector<1x1x1x128xf32>,
    return
  }
  func.func @transform_0(%arg0: i32, %arg1: i32) -> (i32, i32, i32) {
    %c0_i32 = arith.constant 0 : i32
    %c0_i32_0 = arith.constant 0 : i32
    %c0_i32_1 = arith.constant 0 : i32
    %c0_i32_2 = arith.constant 0 : i32
    return %c0_i32, %c0_i32_0, %c0_i32_1 : i32, i32, i32
  }
  func.func @transform_1(%arg0: i32, %arg1: i32) -> (i32, i32, i32) {
    %c0_i32 = arith.constant 0 : i32
    %c0_i32_0 = arith.constant 0 : i32
    %c0_i32_1 = arith.constant 0 : i32
    %c0_i32_2 = arith.constant 0 : i32
    return %c0_i32, %c0_i32_0, %c0_i32_1 : i32, i32, i32
  }
  func.func @transform_2(%arg0: i32, %arg1: i32) -> (i32, i32, i32) {
    %c0_i32 = arith.constant 0 : i32
    %c0_i32_0 = arith.constant 0 : i32
    %c0_i32_1 = arith.constant 0 : i32
    %c0_i32_2 = arith.constant 0 : i32
    return %c0_i32, %c0_i32_0, %c0_i32_1 : i32, i32, i32
  }
  func.func @transform_3(%arg0: i32, %arg1: i32) -> (i32, i32, i32) {
    %c0_i32 = arith.constant 0 : i32
    %c0_i32_0 = arith.constant 0 : i32
    %c0_i32_1 = arith.constant 0 : i32
    %c0_i32_2 = arith.constant 0 : i32
    return %c0_i32, %c0_i32_0, %c0_i32_1 : i32, i32, i32
  }
  func.func @transform_4(%arg0: i32, %arg1: i32) -> (i32, i32, i32) {
    %c0_i32 = arith.constant 0 : i32
    %c0_i32_0 = arith.constant 0 : i32
    %c0_i32_1 = arith.constant 0 : i32
    return %arg0, %c0_i32, %c0_i32_0 : i32, i32, i32
  }
  func.func @transform_5(%arg0: i32, %arg1: i32) -> (i32, i32) {
    %c0_i32 = arith.constant 0 : i32
    %c0_i32_0 = arith.constant 0 : i32
    return %arg1, %c0_i32 : i32, i32
  }
  func.func @transform_6(%arg0: i32, %arg1: i32) -> (i32, i32, i32) {
    %c0_i32 = arith.constant 0 : i32
    %c0_i32_0 = arith.constant 0 : i32
    return %arg0, %arg1, %c0_i32 : i32, i32, i32
  }
  func.func @transform_7(%arg0: i32, %arg1: i32) -> (i32, i32, i32, i32) {
    %c0_i32 = arith.constant 0 : i32
    %c0_i32_0 = arith.constant 0 : i32
    %c0_i32_1 = arith.constant 0 : i32
    return %arg0, %arg1, %c0_i32, %c0_i32_0 : i32, i32, i32, i32
  }
}

</mosaic_0001>

<bundles_post_ra>
// kernel: restored_image_forward.1
= control target key start
LH: loop header
LB: loop body
LE: loop exit
PB: predicated region body
PF: predicated region fallthrough
CT: control target
= control target key end

     0   :  { %s3997_s24 = smov 0   ;;  %s3999_s25 = smov 0   ;;  %s6088_s0 = inlined_call_operand.vmem [shape: f32[1,64,88], index: 0, kind: input, shape index: {}]   ;;  %s6089_s1 = inlined_call_operand.vmem [shape: f32[1,152,128], index: 1, kind: input, shape index: {}]   ;;  %s6090_s2 = inlined_call_operand.vmem [shape: f32[3,64,72], index: 2, kind: input, shape index: {}]   ;;  %s6091_s3 = inlined_call_operand.vmem [shape: f32[3,130,128], index: 3, kind: input, shape index: {}]   ;;  %s6092_s4 = inlined_call_operand.vmem [shape: f32[3,152,280], index: 4, kind: input, shape index: {}]   ;;  %s6093_s5 = inlined_call_operand.vmem [shape: f32[128,256], index: 5, kind: input, shape index: {}]   ;;  %s6094_s6 = inlined_call_operand.vmem [shape: f32[3,128,256], index: 6, kind: output, shape index: {0}]   ;;  %s6095_s7 = inlined_call_operand.vmem [shape: f32[3,2,1,128], index: 7, kind: output, shape index: {1}]  }
   0x1   :  { %s4001_s26 = smov 0   ;;  %s4003_s27 = smov 0  }
   0x2   :  { %s4005_s28 = smov 0  }
   0x3 LB: > { %s27_s29 = sadd.s32 1, %s3944_s26  ;;  %s30_s30 = sadd.s32 1, %s3948_s27  ;;  %s3952_s28 = sphi %s4005_s28, %s18_s28   ;;  %s3948_s27 = sphi %s4003_s27, %s6163_s27   ;;  %s3944_s26 = sphi %s4001_s26, %s6162_s26   ;;  %s3940_s25 = sphi %s3999_s25, %s6161_s25   ;;  %s3936_s24 = sphi %s3997_s24, %s6160_s24  }
   0x4   : > { %p28_p0 = scmp.ge.s32.totalorder %s27_s29, 2  ;;  %p3532_p1 = scmp.ge.s32.totalorder %s3952_s28, 1 }
   0x5   : > { %p268_p2 = scmp.lt.s32.totalorder %s3952_s28, 7 }
   0x6   : > { %s6165_s29 = smov (%p28_p0, %s27_s29), 0  ;;  %s6167_s30 = smov (!%p28_p0, %s30_s30), %s3948_s27 }
   0x7   : > { %p269_p3 = pnand %p3532_p1, %p268_p2  ;;  %p32_p4 = scmp.ge.s32.totalorder %s6167_s30, 3 }
   0x9   : > { %s6169_s30 = smov (%p32_p4, %s6167_s30), 0  ;;  %272 = sbr.rel (%p269_p3) target bundleno = 1156 (0x484), region = 44 }
   0xe   : > { %p318_p5 = scmp.lt.s32.totalorder %s3940_s25, 2  ;;  %s3542_s8 = sshll.u32 %s3936_s24, 6  ;;  %v3954_v0 = vmov 0.0   ;;  %v4125_v23 = vld [vmem:[%s6088_s0] sm:$0xff]  ;;  %vm384_vm0 = vcmask 719872   ;;  %v4137_v24 = vld [vmem:[%s6088_s0 + $0x8] sm:$0xff] }
   0xf   : > { %s349_s9 = sshra.s32 %s3542_s8, 3  ;;  %473 = vmatprep.mubr.f32.mxu0 %v3954_v0  ;;  %574 = vmatprep.subr.mxu1 %v3954_v0  ;;  %v4148_v25 = vld [vmem:[%s6088_s0 + $0x10] sm:$0xff]  ;;  %v4160_v26 = vld [vmem:[%s6088_s0 + $0x18] sm:$0xff]  ;;  %v4172_v27 = vld [vmem:[%s6088_s0 + $0x20] sm:$0xff]  ;;  %vm713_vm1 = vcmask 588800   ;;  %vm549_vm2 = vcmask 195584  }
  0x10   : > { %s6171_s25 = smov (!%p318_p5, %s3940_s25), 2  ;;  %s3781_s10 = smul.u32 24, %s349_s9  ;;  %v4184_v28 = vld [vmem:[%s6088_s0 + $0x28] sm:$0xff]  ;;  %v4194_v29 = vld [vmem:[%s6088_s0 + $0x30] sm:$0xff]  ;;  %v4202_v30 = vld [vmem:[%s6088_s0 + $0x38] sm:$0xff]  ;;  %vm869_vm3 = vcmask 15360  }
  0x11   : > { %s3816_s11 = smul.u32 456, %s6171_s25  ;;  %v537_v31 = vld [vmem:[%s6089_s1 + $0x78] sm:$0xff]  ;;  %v4213_v32 = vld [vmem:[%s6090_s2] sm:$0xff]  ;;  %v536_v33 = vld [vmem:[%s6089_s1 + $0x70] sm:$0xff]  ;;  %vm894_vm4 = vcmask 1041408   ;;  %vm1480_vm5 = vcmask 1046528  }
  0x12   : > { %575 = vmatpush1.msra.mxu1 %v537_v31  ;;  %v535_v34 = vld [vmem:[%s6089_s1 + $0x68] sm:$0xff]  ;;  %v534_v36 = vld [vmem:[%s6089_s1 + $0x60] sm:$0xff]  ;;  %v4245_v37 = vld [vmem:[%s6090_s2 + $0x10] sm:$0xff]  ;;  %s3534_s22 = sshll.u32 %s3936_s24, 3  ;;  %s3539_s9 = sshll.u32 %s6171_s25, 5  ;;  %vm1799_vm15 = vcmask 1039360  }
  0x13   : > { %s322_s14 = scalar_lea.vmem %s6092_s4, %s3816_s11  ;;  %576 = vmatprep.subr.mxu1 %v3954_v0  ;;  %v4229_v35 = vld [vmem:[%s6090_s2 + $0x8] sm:$0xff]  ;;  %v533_v38 = vld [vmem:[%s6089_s1 + $0x58] sm:$0xff]  ;;  %v532_v40 = vld [vmem:[%s6089_s1 + $0x50] sm:$0xff]  ;;  %p324_p6 = scmp.lt.s32.totalorder %s3534_s22, 15 }
  0x14   : > { %s4040_s15 = scalar_lea.vmem %s322_s14, %s3781_s10  ;;  %577 = vmatpush1.msra.mxu1 %v536_v33  ;;  %v4261_v39 = vld [vmem:[%s6090_s2 + $0x18] sm:$0xff]  ;;  %v4277_v41 = vld [vmem:[%s6090_s2 + $0x20] sm:$0xff]  ;;  %v531_v42 = vld [vmem:[%s6089_s1 + $0x48] sm:$0xff]  ;;  %p343_p7 = scmp.lt.s32.totalorder %s3936_s24, 1 }
  0x15   : > { %v4043_v1 = vld [vmem:[%s4040_s15 + $0xf8] sm:$0xff]  ;;  %v374_v2 = vld [vmem:[%s4040_s15 + $0xf0] sm:$0xff]  ;;  %v4047_v3 = vld [vmem:[%s4040_s15 + $0xe0] sm:$0xff]  ;;  %578 = vmatprep.subr.mxu1 %v3954_v0  ;;  %s6173_s22 = smov (!%p324_p6, %s3534_s22), 15 }
  0x16   : > { %419 = vmatprep.subr.mxu0 %v4043_v1  ;;  %v372_v4 = vld [vmem:[%s4040_s15 + $0xd8] sm:$0xff]  ;;  %v4052_v5 = vld [vmem:[%s4040_s15 + $0xc8] sm:$0xff]  ;;  %v4056_v6 = vld [vmem:[%s4040_s15 + $0xc0] sm:$0xff]  ;;  %579 = vmatpush1.msra.mxu1 %v535_v34  ;;  %s3538_s23 = sshll.u32 %s6173_s22, 1  ;;  %s3780_s10 = sshll.u32 %s6173_s22, 4 }
  0x17   : > { %420 = vmatpush1.msra.mxu0 %v374_v2  ;;  %v4059_v7 = vld [vmem:[%s4040_s15 + $0xb0] sm:$0xff]  ;;  %v4063_v8 = vld [vmem:[%s4040_s15 + $0xa8] sm:$0xff]  ;;  %v4067_v9 = vld [vmem:[%s4040_s15 + $0x98] sm:$0xff]  ;;  %580 = vmatprep.subr.mxu1 %v3954_v0  ;;  %s337_s11 = sadd.s32 %s3539_s9, %s3538_s23  ;;  %s5500_s14 = scalar_lea.vmem %s6093_s5, %s3780_s10 }
  0x18   : > { %421 = vmatprep.subr.mxu0 %v4047_v3  ;;  %v4071_v10 = vld [vmem:[%s4040_s15 + $0x90] sm:$0xff]  ;;  %v4075_v11 = vld [vmem:[%s4040_s15 + $0x80] sm:$0xff]  ;;  %v4079_v12 = vld [vmem:[%s4040_s15 + $0x78] sm:$0xff]  ;;  %581 = vmatpush1.msra.mxu1 %v534_v36  ;;  %s3540_s16 = sshll.u32 %s337_s11, 3  ;;  %s6175_s24 = smov (!%p343_p7, %s3936_s24), 1 }
  0x19   : > { %422 = vmatpush1.msra.mxu0 %v372_v4  ;;  %v4083_v13 = vld [vmem:[%s4040_s15 + $0x68] sm:$0xff]  ;;  %v4087_v14 = vld [vmem:[%s4040_s15 + $0x60] sm:$0xff]  ;;  %v4091_v15 = vld [vmem:[%s4040_s15 + $0x50] sm:$0xff]  ;;  %582 = vmatprep.subr.mxu1 %v3954_v0  ;;  %s5520_s19 = scalar_lea.vmem %s6094_s6, %s3540_s16 }
  0x1a   : > { %423 = vmatprep.subr.mxu0 %v4052_v5  ;;  %v4095_v16 = vld [vmem:[%s4040_s15 + $0x48] sm:$0xff]  ;;  %v4099_v17 = vld [vmem:[%s4040_s15 + $0x38] sm:$0xff]  ;;  %v4103_v18 = vld [vmem:[%s4040_s15 + $0x30] sm:$0xff]  ;;  %583 = vmatpush1.msra.mxu1 %v533_v38 }
  0x1b   : > { %424 = vmatpush1.msra.mxu0 %v4056_v6  ;;  %v4107_v19 = vld [vmem:[%s4040_s15 + $0x20] sm:$0xff]  ;;  %v4111_v20 = vld [vmem:[%s4040_s15 + $0x18] sm:$0xff]  ;;  %v4115_v21 = vld [vmem:[%s4040_s15 + $0x8] sm:$0xff]  ;;  %584 = vmatprep.subr.mxu1 %v3954_v0 }
  0x1c   : > { %425 = vmatprep.subr.mxu0 %v4059_v7  ;;  %v4119_v22 = vld [vmem:[%s4040_s15] sm:$0xff]  ;;  %585 = vmatpush1.msra.mxu1 %v532_v40  ;;  %v4293_v43 = vld [vmem:[%s6090_s2 + $0x28] sm:$0xff]  ;;  %v529_v45 = vld [vmem:[%s6089_s1 + $0x38] sm:$0xff] }
  0x1d   : > { %426 = vmatpush1.msra.mxu0 %v4063_v8  ;;  %586 = vmatprep.subr.mxu1 %v3954_v0  ;;  %v530_v44 = vld [vmem:[%s6089_s1 + $0x40] sm:$0xff]  ;;  %v4310_v46 = vld [vmem:[%s6090_s2 + $0x30] sm:$0xff]  ;;  %v527_v48 = vld [vmem:[%s6089_s1 + $0x28] sm:$0xff] }
  0x1e   : > { %427 = vmatprep.subr.mxu0 %v4067_v9  ;;  %587 = vmatpush1.msra.mxu1 %v531_v42  ;;  %v528_v47 = vld [vmem:[%s6089_s1 + $0x30] sm:$0xff]  ;;  %v4326_v49 = vld [vmem:[%s6090_s2 + $0x38] sm:$0xff]  ;;  %v526_v50 = vld [vmem:[%s6089_s1 + $0x20] sm:$0xff] }
  0x1f   : > { %428 = vmatpush1.msra.mxu0 %v4071_v10  ;;  %588 = vmatprep.subr.mxu1 %v3954_v0  ;;  %v525_v51 = vld [vmem:[%s6089_s1 + $0x18] sm:$0xff]  ;;  %v4342_v52 = vld [vmem:[%s6090_s2 + $0x40] sm:$0xff]  ;;  %v524_v53 = vld [vmem:[%s6089_s1 + $0x10] sm:$0xff] }
  0x20   : > { %429 = vmatprep.subr.mxu0 %v4075_v11  ;;  %589 = vmatpush1.msra.mxu1 %v530_v44  ;;  %v523_v54 = vld [vmem:[%s6089_s1 + $0x8] sm:$0xff]  ;;  %v522_v56 = vld [vmem:[%s6089_s1] sm:$0xff]  ;;  %v4374_v57 = vld [vmem:[%s6090_s2 + $0x50] sm:$0xff] }
  0x21   : > { %430 = vmatpush1.msra.mxu0 %v4079_v12  ;;  %590 = vmatprep.subr.mxu1 %v3954_v0  ;;  %v4358_v55 = vld [vmem:[%s6090_s2 + $0x48] sm:$0xff]  ;;  %v540_v58 = vld [vmem:[%s6089_s1 + $0x90] sm:$0xff]  ;;  %v4390_v59 = vld [vmem:[%s6090_s2 + $0x58] sm:$0xff] }
  0x22   : > { %431 = vmatprep.subr.mxu0 %v4083_v13  ;;  %591 = vmatpush1.msra.mxu1 %v529_v45  ;;  %v539_v60 = vld [vmem:[%s6089_s1 + $0x88] sm:$0xff]  ;;  %v4406_v61 = vld [vmem:[%s6090_s2 + $0x60] sm:$0xff]  ;;  %v4434_v4 = vld [vmem:[%s6090_s2 + $0x70] sm:$0xff] }
  0x23   : > { %432 = vmatpush1.msra.mxu0 %v4087_v14  ;;  %592 = vmatprep.subr.mxu1 %v3954_v0  ;;  %v1907_v62 = vld [vmem:[%s4040_s15 + $0x100] sm:$0xff]  ;;  %v4423_v2 = vld [vmem:[%s6090_s2 + $0x68] sm:$0xff]  ;;  %v4503_v31 = vld [vmem:[%s4040_s15 + $0x58] sm:$0xff] }
  0x24   : > { %433 = vmatprep.subr.mxu0 %v4091_v15  ;;  %593 = vmatpush1.msra.mxu1 %v528_v47  ;;  %v538_v63 = vld [vmem:[%s6089_s1 + $0x80] sm:$0xff]  ;;  %v4521_v36 = vld [vmem:[%s4040_s15 + $0x28] sm:$0xff]  ;;  %v4534_v40 = vld [vmem:[%s4040_s15 + $0x10] sm:$0xff] }
  0x25   : > { %434 = vmatpush1.msra.mxu0 %v4095_v16  ;;  %594 = vmatprep.subr.mxu1 %v3954_v0  ;;  %v4512_v33 = vld [vmem:[%s6090_s2 + $0xa0] sm:$0xff]  ;;  %v4530_v38 = vld [vmem:[%s6090_s2 + $0xa8] sm:$0xff]  ;;  %v4545_v42 = vld [vmem:[%s6090_s2 + $0xb0] sm:$0xff] }
  0x26   : > { %435 = vmatprep.subr.mxu0 %v4099_v17  ;;  %595 = vmatpush1.msra.mxu1 %v527_v48  ;;  %v4516_v34 = vld [vmem:[%s4040_s15 + $0x40] sm:$0xff]  ;;  %v4555_v44 = vld [vmem:[%s6090_s2 + $0xb8] sm:$0xff]  ;;  %v4714_v45 = vld [vmem:[%s6091_s3 + $0xc8] sm:$0xff] }
  0x27   : > { %436 = vmatpush1.msra.mxu0 %v4103_v18  ;;  %596 = vmatprep.subr.mxu1 %v3954_v0  ;;  %v4726_v47 = vld [vmem:[%s6091_s3 + $0xc0] sm:$0xff] }
  0x28   : > { %437 = vmatprep.subr.mxu0 %v4107_v19  ;;  %597 = vmatpush1.msra.mxu1 %v526_v50 }
  0x29   : > { %438 = vmatpush1.msra.mxu0 %v4111_v20  ;;  %598 = vmatprep.subr.mxu1 %v3954_v0 }
  0x2a   : > { %439 = vmatprep.subr.mxu0 %v4115_v21  ;;  %599 = vmatpush1.msra.mxu1 %v525_v51  ;;  %v4748_v51 = vld [vmem:[%s6091_s3 + $0xb0] sm:$0xff] }
  0x2b   : > { %440 = vmatpush1.msra.mxu0 %v4119_v22  ;;  %600 = vmatprep.subr.mxu1 %v3954_v0 }
  0x2c   : > { %3544 = vmatmul.mubr.msk.f32.vlgmr.msra.gmra.mxu0 %vm384_vm0, %v4125_v23  ;;  %752 = vmatprep.subr.mxu0 %v4052_v5 }
  0x2d   : > { %753 = vmatpush1.msra.mxu0 %v4056_v6  ;;  %479 = vmatprep.mubr.f32.mxu0 %v3954_v0 }
  0x2e   : > { %754 = vmatprep.subr.mxu0 %v4059_v7  ;;  %601 = vmatpush1.msra.mxu1 %v524_v53 }
  0x2f   : > { %755 = vmatpush1.msra.mxu0 %v4063_v8  ;;  %602 = vmatprep.subr.mxu1 %v3954_v0 }
  0x30   : > { %3545 = vmatmul.mubr.msk.f32.gmra.mxu0 %vm384_vm0, %v4137_v24  ;;  %756 = vmatprep.subr.mxu0 %v4067_v9 }
  0x31   : > { %485 = vmatprep.mubr.f32.mxu0 %v3954_v0  ;;  %757 = vmatpush1.msra.mxu0 %v4071_v10 }
  0x32   : > { %758 = vmatprep.subr.mxu0 %v4075_v11  ;;  %603 = vmatpush1.msra.mxu1 %v523_v54  ;;  %v4770_v54 = vld [vmem:[%s6091_s3 + $0xa0] sm:$0xff] }
  0x33   : > { %759 = vmatpush1.msra.mxu0 %v4079_v12  ;;  %604 = vmatprep.subr.mxu1 %v3954_v0 }
  0x34   : > { %3546 = vmatmul.mubr.msk.f32.gmra.mxu0 %vm384_vm0, %v4148_v25  ;;  %760 = vmatprep.subr.mxu0 %v4083_v13 }
  0x35   : > { %491 = vmatprep.mubr.f32.mxu0 %v3954_v0  ;;  %761 = vmatpush1.msra.mxu0 %v4087_v14 }
  0x36   : > { %762 = vmatprep.subr.mxu0 %v4091_v15  ;;  %605 = vmatpush1.msra.mxu1 %v522_v56 }
  0x37   : > { %763 = vmatpush1.msra.mxu0 %v4095_v16  ;;  %632 = vmatprep.subr.mxu1 %v3954_v0 }
  0x38   : > { %3547 = vmatmul.mubr.msk.f32.gmra.mxu0 %vm384_vm0, %v4160_v26  ;;  %764 = vmatprep.subr.mxu0 %v4099_v17 }
  0x39   : > { %497 = vmatprep.mubr.f32.mxu0 %v3954_v0  ;;  %765 = vmatpush1.msra.mxu0 %v4103_v18 }
  0x3a   : > { %766 = vmatprep.subr.mxu0 %v4107_v19  ;;  %633 = vmatpush2.msra.mxu1 %v540_v58 }
  0x3b   : > { %767 = vmatpush1.msra.mxu0 %v4111_v20  ;;  %634 = vmatprep.subr.mxu1 %v3954_v0 }
  0x3c   : > { %3548 = vmatmul.mubr.msk.f32.gmra.mxu0 %vm384_vm0, %v4172_v27  ;;  %768 = vmatprep.subr.mxu0 %v4115_v21 }
  0x3d   : > { %503 = vmatprep.mubr.f32.mxu0 %v3954_v0  ;;  %769 = vmatpush1.msra.mxu0 %v4119_v22 }
  0x3e   : > { %1050 = vmatprep.subr.mxu0 %v4052_v5  ;;  %635 = vmatpush2.msra.mxu1 %v539_v60 }
  0x3f   : > { %636 = vmatprep.subr.mxu1 %v3954_v0 }
  0x40   : > { %3549 = vmatmul.mubr.msk.f32.gmra.mxu0 %vm384_vm0, %v4184_v28  ;;  %637 = vmatpush2.msra.mxu1 %v538_v63  ;;  %v4827_v63 = vld [vmem:[%s6091_s3 + $0x178] sm:$0xff] }
  0x41   : > { %509 = vmatprep.mubr.f32.mxu0 %v3954_v0  ;;  %898 = vmatprep.subr.mxu1 %v3954_v0 }
  0x44   : > { %3550 = vmatmul.mubr.msk.f32.gmra.mxu0 %vm384_vm0, %v4194_v29 }
  0x45   : > { %515 = vmatprep.mubr.f32.mxu0 %v3954_v0 }
  0x48   : > { %3551 = vmatmul.mubr.msk.f32.gmra.mxu0 %vm384_vm0, %v4202_v30 }
  0x49   : > { %802 = vmatprep.mubr.f32.mxu0 %v3954_v0 }
  0x4c   : > { %3560 = vmatmul.mubr.msk.f32.vlgmr.msra.gmra.mxu0 %vm713_vm1, %v4213_v32 }
  0x4d   : > { %808 = vmatprep.mubr.f32.mxu0 %v3954_v0  ;;  %1051 = vmatpush1.msra.mxu0 %v4056_v6 }
  0x4e   : > { %1052 = vmatprep.subr.mxu0 %v4059_v7 }
  0x4f   : > { %1053 = vmatpush1.msra.mxu0 %v4063_v8 }
  0x50   : > { %3561 = vmatmul.mubr.msk.f32.gmra.mxu0 %vm713_vm1, %v4229_v35  ;;  %1054 = vmatprep.subr.mxu0 %v4067_v9 }
  0x51   : > { %814 = vmatprep.mubr.f32.mxu0 %v3954_v0  ;;  %1055 = vmatpush1.msra.mxu0 %v4071_v10 }
  0x52   : > { %1056 = vmatprep.subr.mxu0 %v4075_v11 }
  0x53   : > { %1057 = vmatpush1.msra.mxu0 %v4079_v12 }
  0x54   : > { %3562 = vmatmul.mubr.msk.f32.gmra.mxu0 %vm713_vm1, %v4245_v37  ;;  %1058 = vmatprep.subr.mxu0 %v4083_v13 }
  0x55   : > { %820 = vmatprep.mubr.f32.mxu0 %v3954_v0  ;;  %1059 = vmatpush1.msra.mxu0 %v4087_v14 }
  0x56   : > { %1060 = vmatprep.subr.mxu0 %v4091_v15 }
  0x57   : > { %1061 = vmatpush1.msra.mxu0 %v4095_v16 }
  0x58   : > { %3563 = vmatmul.mubr.msk.f32.gmra.mxu0 %vm713_vm1, %v4261_v39  ;;  %1062 = vmatprep.subr.mxu0 %v4099_v17 }
  0x59   : > { %826 = vmatprep.mubr.f32.mxu0 %v3954_v0  ;;  %1063 = vmatpush1.msra.mxu0 %v4103_v18 }
  0x5a   : > { %1064 = vmatprep.subr.mxu0 %v4107_v19 }
  0x5b   : > { %1065 = vmatpush1.msra.mxu0 %v4111_v20 }
  0x5c   : > { %3564 = vmatmul.mubr.msk.f32.gmra.mxu0 %vm713_vm1, %v4277_v41  ;;  %1066 = vmatprep.subr.mxu0 %v4115_v21 }
  0x5d   : > { %832 = vmatprep.mubr.f32.mxu0 %v3954_v0  ;;  %1067 = vmatpush1.msra.mxu0 %v4119_v22 }
  0x5e   : > { %1345 = vmatprep.subr.mxu0 %v4052_v5 }
  0x60   : > { %3565 = vmatmul.mubr.msk.f32.gmra.mxu0 %vm713_vm1, %v4293_v43 }
  0x61   : > { %838 = vmatprep.mubr.f32.mxu0 %v3954_v0 }
  0x64   : > { %3566 = vmatmul.mubr.msk.f32.gmra.mxu0 %vm713_vm1, %v4310_v46 }
  0x65   : > { %844 = vmatprep.mubr.f32.mxu0 %v3954_v0 }
  0x68   : > { %3567 = vmatmul.mubr.msk.f32.gmra.mxu0 %vm713_vm1, %v4326_v49 }
  0x69   : > { %1100 = vmatprep.mubr.f32.mxu0 %v3954_v0 }
  0x6c   : > { %3602 = vmatmul.mubr.msk.f32.vlgmr.msra.gmra.mxu0 %vm713_vm1, %v4342_v52 }
  0x6d   : > { %1106 = vmatprep.mubr.f32.mxu0 %v3954_v0  ;;  %1346 = vmatpush1.msra.mxu0 %v4056_v6  ;;  %v4442_v6 = vld [vmem:[%s6090_s2 + $0x78] sm:$0xff] }
  0x6e   : > { %1347 = vmatprep.subr.mxu0 %v4059_v7 }
  0x6f   : > { %1348 = vmatpush1.msra.mxu0 %v4063_v8  ;;  %v4450_v8 = vld [vmem:[%s6090_s2 + $0x80] sm:$0xff] }
  0x70   : > { %3603 = vmatmul.mubr.msk.f32.gmra.mxu0 %vm713_vm1, %v4358_v55  ;;  %1349 = vmatprep.subr.mxu0 %v4067_v9 }
  0x71   : > { %1112 = vmatprep.mubr.f32.mxu0 %v3954_v0  ;;  %1350 = vmatpush1.msra.mxu0 %v4071_v10  ;;  %v1905_v10 = vld [vmem:[%s4040_s15 + $0xe8] sm:$0xff] }
  0x72   : > { %1351 = vmatprep.subr.mxu0 %v4075_v11 }
  0x73   : > { %1352 = vmatpush1.msra.mxu0 %v4079_v12  ;;  %v4459_v12 = vld [vmem:[%s6090_s2 + $0x88] sm:$0xff] }
  0x74   : > { %3604 = vmatmul.mubr.msk.f32.gmra.mxu0 %vm713_vm1, %v4374_v57  ;;  %1353 = vmatprep.subr.mxu0 %v4083_v13 }
  0x75   : > { %1118 = vmatprep.mubr.f32.mxu0 %v3954_v0  ;;  %1354 = vmatpush1.msra.mxu0 %v4087_v14  ;;  %v4463_v14 = vld [vmem:[%s4040_s15 + $0xd0] sm:$0xff] }
  0x76   : > { %1355 = vmatprep.subr.mxu0 %v4091_v15 }
  0x77   : > { %1356 = vmatpush1.msra.mxu0 %v4095_v16  ;;  %v4467_v16 = vld [vmem:[%s4040_s15 + $0xb8] sm:$0xff] }
  0x78   : > { %3605 = vmatmul.mubr.msk.f32.gmra.mxu0 %vm713_vm1, %v4390_v59  ;;  %1357 = vmatprep.subr.mxu0 %v4099_v17 }
  0x79   : > { %1124 = vmatprep.mubr.f32.mxu0 %v3954_v0  ;;  %1358 = vmatpush1.msra.mxu0 %v4103_v18  ;;  %v4480_v18 = vld [vmem:[%s4040_s15 + $0xa0] sm:$0xff] }
  0x7a   : > { %1359 = vmatprep.subr.mxu0 %v4107_v19 }
  0x7b   : > { %1360 = vmatpush1.msra.mxu0 %v4111_v20  ;;  %v4494_v20 = vld [vmem:[%s6090_s2 + $0x98] sm:$0xff] }
  0x7c   : > { %3606 = vmatmul.mubr.msk.f32.gmra.mxu0 %vm713_vm1, %v4406_v61  ;;  %1361 = vmatprep.subr.mxu0 %v4115_v21 }
  0x7d   : > { %1130 = vmatprep.mubr.f32.mxu0 %v3954_v0  ;;  %1362 = vmatpush1.msra.mxu0 %v4119_v22  ;;  %v4498_v22 = vld [vmem:[%s4040_s15 + $0x70] sm:$0xff] }
  0x7e   : > { %1950 = vmatprep.subr.mxu0 %v1907_v62 }
  0x80   : > { %3607 = vmatmul.mubr.msk.f32.gmra.mxu0 %vm713_vm1, %v4423_v2 }
  0x81   : > { %1136 = vmatprep.mubr.f32.mxu0 %v3954_v0 }
  0x84   : > { %3608 = vmatmul.mubr.msk.f32.gmra.mxu0 %vm713_vm1, %v4434_v4 }
  0x85   : > { %1142 = vmatprep.mubr.f32.mxu0 %v3954_v0 }
  0x88   : > { %3609 = vmatmul.mubr.msk.f32.gmra.mxu0 %vm713_vm1, %v4442_v6 }
  0x89   : > { %1395 = vmatprep.mubr.f32.mxu0 %v3954_v0 }
  0x8c   : > { %3627 = vmatmul.mubr.msk.f32.vlgmr.msra.gmra.mxu0 %vm713_vm1, %v4450_v8 }
  0x8d   : > { %1401 = vmatprep.mubr.f32.mxu0 %v3954_v0  ;;  %1951 = vmatpush1.msra.mxu0 %v4043_v1  ;;  %v4476_v1 = vld [vmem:[%s6090_s2 + $0x90] sm:$0xff] }
  0x8e   : > { %1952 = vmatprep.subr.mxu0 %v1905_v10  ;;  %v4852_v10 = vld [vmem:[%s6091_s3 + $0x70] sm:$0xff] }
  0x8f   : > { %1953 = vmatpush1.msra.mxu0 %v4047_v3  ;;  %v4485_v3 = vld [vmem:[%s4040_s15 + $0x88] sm:$0xff] }
  0x90   : > { %3628 = vmatmul.mubr.msk.f32.gmra.mxu0 %vm713_vm1, %v4459_v12  ;;  %1954 = vmatprep.subr.mxu0 %v4463_v14 }
  0x91   : > { %1407 = vmatprep.mubr.f32.mxu0 %v3954_v0  ;;  %1955 = vmatpush1.msra.mxu0 %v4052_v5 }
  0x92   : > { %1956 = vmatprep.subr.mxu0 %v4467_v16 }
  0x93   : > { %1957 = vmatpush1.msra.mxu0 %v4059_v7 }
  0x94   : > { %3629 = vmatmul.mubr.msk.f32.gmra.mxu0 %vm713_vm1, %v4476_v1  ;;  %1958 = vmatprep.subr.mxu0 %v4480_v18 }
  0x95   : > { %1413 = vmatprep.mubr.f32.mxu0 %v3954_v0  ;;  %1959 = vmatpush1.msra.mxu0 %v4067_v9 }
  0x96   : > { %1960 = vmatprep.subr.mxu0 %v4485_v3 }
  0x97   : > { %1961 = vmatpush1.msra.mxu0 %v4075_v11 }
  0x98   : > { %3630 = vmatmul.mubr.msk.f32.gmra.mxu0 %vm713_vm1, %v4494_v20  ;;  %1962 = vmatprep.subr.mxu0 %v4498_v22 }
  0x99   : > { %1419 = vmatprep.mubr.f32.mxu0 %v3954_v0  ;;  %1963 = vmatpush1.msra.mxu0 %v4083_v13 }
  0x9a   : > { %1964 = vmatprep.subr.mxu0 %v4503_v31 }
  0x9b   : > { %1965 = vmatpush1.msra.mxu0 %v4091_v15 }
  0x9c   : > { %3631 = vmatmul.mubr.msk.f32.gmra.mxu0 %vm713_vm1, %v4512_v33  ;;  %1966 = vmatprep.subr.mxu0 %v4516_v34 }
  0x9d   : > { %1425 = vmatprep.mubr.f32.mxu0 %v3954_v0  ;;  %1967 = vmatpush1.msra.mxu0 %v4099_v17 }
  0x9e   : > { %1968 = vmatprep.subr.mxu0 %v4521_v36 }
  0x9f   : > { %1969 = vmatpush1.msra.mxu0 %v4107_v19 }
  0xa0   : > { %3632 = vmatmul.mubr.msk.f32.gmra.mxu0 %vm713_vm1, %v4530_v38  ;;  %1970 = vmatprep.subr.mxu0 %v4534_v40 }
  0xa1   : > { %1431 = vmatprep.mubr.f32.mxu0 %v3954_v0  ;;  %1971 = vmatpush1.msra.mxu0 %v4115_v21 }
  0xa2   : > { %2281 = vmatprep.subr.mxu0 %v4463_v14 }
  0xa4   : > { %3633 = vmatmul.mubr.msk.f32.gmra.mxu0 %vm713_vm1, %v4545_v42 }
  0xa5   : > { %1437 = vmatprep.mubr.f32.mxu0 %v3954_v0 }
  0xa8   : > { %3634 = vmatmul.mubr.msk.f32.gmra.mxu0 %vm713_vm1, %v4555_v44 }
  0xa9   : > { %2004 = vmatprep.mubr.f32.mxu0 %v3954_v0 }
  0xac   : > { %3661 = vmatmul.mubr.msk.f32.vlgmr.msra.gmra.mxu0 %vm384_vm0, %v4125_v23 }
  0xad   : > { %2010 = vmatprep.mubr.f32.mxu0 %v3954_v0  ;;  %2282 = vmatpush1.msra.mxu0 %v4052_v5 }
  0xae   : > { %2283 = vmatprep.subr.mxu0 %v4467_v16 }
  0xaf   : > { %2284 = vmatpush1.msra.mxu0 %v4059_v7 }
  0xb0   : > { %3662 = vmatmul.mubr.msk.f32.gmra.mxu0 %vm384_vm0, %v4137_v24  ;;  %2285 = vmatprep.subr.mxu0 %v4480_v18 }
  0xb1   : > { %2016 = vmatprep.mubr.f32.mxu0 %v3954_v0  ;;  %2286 = vmatpush1.msra.mxu0 %v4067_v9 }
  0xb2   : > { %2287 = vmatprep.subr.mxu0 %v4485_v3 }
  0xb3   : > { %2288 = vmatpush1.msra.mxu0 %v4075_v11 }
  0xb4   : > { %3663 = vmatmul.mubr.msk.f32.gmra.mxu0 %vm384_vm0, %v4148_v25  ;;  %2289 = vmatprep.subr.mxu0 %v4498_v22  ;;  %v4651_v25 = vld [vmem:[%s6091_s3 + $0x100] sm:$0xff] }
  0xb5   : > { %2022 = vmatprep.mubr.f32.mxu0 %v3954_v0  ;;  %2290 = vmatpush1.msra.mxu0 %v4083_v13 }
  0xb6   : > { %2291 = vmatprep.subr.mxu0 %v4503_v31 }
  0xb7   : > { %2292 = vmatpush1.msra.mxu0 %v4091_v15 }
  0xb8   : > { %3664 = vmatmul.mubr.msk.f32.gmra.mxu0 %vm384_vm0, %v4160_v26  ;;  %2293 = vmatprep.subr.mxu0 %v4516_v34 }
  0xb9   : > { %2028 = vmatprep.mubr.f32.mxu0 %v3954_v0  ;;  %2294 = vmatpush1.msra.mxu0 %v4099_v17 }
  0xba   : > { %2295 = vmatprep.subr.mxu0 %v4521_v36 }
  0xbb   : > { %2296 = vmatpush1.msra.mxu0 %v4107_v19 }
  0xbc   : > { %3665 = vmatmul.mubr.msk.f32.gmra.mxu0 %vm384_vm0, %v4172_v27  ;;  %2297 = vmatprep.subr.mxu0 %v4534_v40 }
  0xbd   : > { %2034 = vmatprep.mubr.f32.mxu0 %v3954_v0  ;;  %2298 = vmatpush1.msra.mxu0 %v4115_v21 }
  0xbe   : > { %2575 = vmatprep.subr.mxu0 %v4463_v14 }
  0xc0   : > { %3666 = vmatmul.mubr.msk.f32.gmra.mxu0 %vm384_vm0, %v4184_v28 }
  0xc1   : > { %2040 = vmatprep.mubr.f32.mxu0 %v3954_v0 }
  0xc4   : > { %3667 = vmatmul.mubr.msk.f32.gmra.mxu0 %vm384_vm0, %v4194_v29  ;;  %v4678_v29 = vld [vmem:[%s6091_s3 + $0xe8] sm:$0xff] }
  0xc5   : > { %2046 = vmatprep.mubr.f32.mxu0 %v3954_v0 }
  0xc8   : > { %3668 = vmatmul.mubr.msk.f32.gmra.mxu0 %vm384_vm0, %v4202_v30 }
  0xc9   : > { %2331 = vmatprep.mubr.f32.mxu0 %v3954_v0 }
  0xcc   : > { %3677 = vmatmul.mubr.msk.f32.vlgmr.msra.gmra.mxu0 %vm713_vm1, %v4213_v32  ;;  %v4688_v32 = vld [vmem:[%s6091_s3 + $0xe0] sm:$0xff] }
  0xcd   : > { %2337 = vmatprep.mubr.f32.mxu0 %v3954_v0  ;;  %2576 = vmatpush1.msra.mxu0 %v4052_v5 }
  0xce   : > { %2577 = vmatprep.subr.mxu0 %v4467_v16 }
  0xcf   : > { %2578 = vmatpush1.msra.mxu0 %v4059_v7 }
  0xd0   : > { %3678 = vmatmul.mubr.msk.f32.gmra.mxu0 %vm713_vm1, %v4229_v35  ;;  %2579 = vmatprep.subr.mxu0 %v4480_v18 }
  0xd1   : > { %2343 = vmatprep.mubr.f32.mxu0 %v3954_v0  ;;  %2580 = vmatpush1.msra.mxu0 %v4067_v9 }
  0xd2   : > { %2581 = vmatprep.subr.mxu0 %v4485_v3 }
  0xd3   : > { %2582 = vmatpush1.msra.mxu0 %v4075_v11 }
  0xd4   : > { %3679 = vmatmul.mubr.msk.f32.gmra.mxu0 %vm713_vm1, %v4245_v37  ;;  %2583 = vmatprep.subr.mxu0 %v4498_v22  ;;  %v4696_v37 = vld [vmem:[%s6091_s3 + $0xd8] sm:$0xff] }
  0xd5   : > { %2349 = vmatprep.mubr.f32.mxu0 %v3954_v0  ;;  %2584 = vmatpush1.msra.mxu0 %v4083_v13 }
  0xd6   : > { %2585 = vmatprep.subr.mxu0 %v4503_v31 }
  0xd7   : > { %2586 = vmatpush1.msra.mxu0 %v4091_v15 }
  0xd8   : > { %3680 = vmatmul.mubr.msk.f32.gmra.mxu0 %vm713_vm1, %v4261_v39  ;;  %2587 = vmatprep.subr.mxu0 %v4516_v34 }
  0xd9   : > { %2355 = vmatprep.mubr.f32.mxu0 %v3954_v0  ;;  %2588 = vmatpush1.msra.mxu0 %v4099_v17 }
  0xda   : > { %2589 = vmatprep.subr.mxu0 %v4521_v36 }
  0xdb   : > { %2590 = vmatpush1.msra.mxu0 %v4107_v19 }
  0xdc   : > { %3681 = vmatmul.mubr.msk.f32.gmra.mxu0 %vm713_vm1, %v4277_v41  ;;  %2591 = vmatprep.subr.mxu0 %v4534_v40  ;;  %v4706_v41 = vld [vmem:[%s6091_s3 + $0xd0] sm:$0xff] }
  0xdd   : > { %2361 = vmatprep.mubr.f32.mxu0 %v3954_v0  ;;  %2592 = vmatpush1.msra.mxu0 %v4115_v21 }
  0xde   : > { %2869 = vmatprep.subr.mxu0 %v4463_v14 }
  0xe0   : > { %3682 = vmatmul.mubr.msk.f32.gmra.mxu0 %vm713_vm1, %v4293_v43 }
  0xe1   : > { %2367 = vmatprep.mubr.f32.mxu0 %v3954_v0 }
  0xe4   : > { %3683 = vmatmul.mubr.msk.f32.gmra.mxu0 %vm713_vm1, %v4310_v46 }
  0xe5   : > { %2373 = vmatprep.mubr.f32.mxu0 %v3954_v0 }
  0xe8   : > { %3684 = vmatmul.mubr.msk.f32.gmra.mxu0 %vm713_vm1, %v4326_v49 }
  0xe9   : > { %2625 = vmatprep.mubr.f32.mxu0 %v3954_v0 }
  0xec   : > { %v475_v23 = vpop.f32.mrf.mxu0  ;;  %3719 = vmatmul.mubr.msk.f32.vlgmr.msra.gmra.mxu0 %vm713_vm1, %v4342_v52  ;;  %v4756_v52 = vld [vmem:[%s6091_s3 + $0xa8] sm:$0xff] }
  0xed   : > { %2631 = vmatprep.mubr.f32.mxu0 %v3954_v0  ;;  %2870 = vmatpush1.msra.mxu0 %v4052_v5  ;;  %v4661_v5 = vld [vmem:[%s6091_s3 + $0xf8] sm:$0xff] }
  0xee   : > { %v477_v24 = vpop.f32.mrf.mxu0  ;;  %2871 = vmatprep.subr.mxu0 %v4467_v16  ;;  %v4861_v16 = vld [vmem:[%s6091_s3 + $0x168] sm:$0xff] }
  0xef   : > { %3552 = vmatprep.mubr.msk.f32.mxu1 %vm549_vm2, %v477_v24  ;;  %2872 = vmatpush1.msra.mxu0 %v4059_v7  ;;  %v4669_v7 = vld [vmem:[%s6091_s3 + $0xf0] sm:$0xff]  ;;  %v4888_v24 = vld [vmem:[%s6091_s3 + $0x60] sm:$0xff] }
  0xf0   : > { %v481_v26 = vpop.f32.mrf.mxu0  ;;  %639 = vmatmul.mubr.f32.vlgmr.msra.gmra.mxu1 %v475_v23  ;;  %3720 = vmatmul.mubr.msk.f32.gmra.mxu0 %vm713_vm1, %v4358_v55  ;;  %v4778_v55 = vld [vmem:[%s6091_s3 + $0x98] sm:$0xff]  ;;  %6110 = vst [vmem:[#allocation2_spill] sm:$0xff] %v4888_v24 }
  0xf1   : > { %899 = vmatpush1.msra.mxu1 %v4651_v25  ;;  %2637 = vmatprep.mubr.f32.mxu0 %v3954_v0 }
  0xf2   : > { %900 = vmatprep.subr.mxu1 %v3954_v0  ;;  %v483_v27 = vpop.f32.mrf.mxu0  ;;  %2873 = vmatprep.subr.mxu0 %v4480_v18  ;;  %v4870_v18 = vld [vmem:[%s6091_s3 + $0x68] sm:$0xff] }
  0xf3   : > { %901 = vmatpush1.msra.mxu1 %v4661_v5  ;;  %3553 = vmatprep.mubr.msk.f32.mxu1 %vm549_vm2, %v483_v27  ;;  %v4895_v27 = vld [vmem:[%s6091_s3 + $0x158] sm:$0xff] }
  0xf4   : > { %902 = vmatprep.subr.mxu1 %v3954_v0  ;;  %v487_v28 = vpop.f32.mrf.mxu0  ;;  %644 = vmatmul.mubr.f32.gmra.mxu1 %v481_v26 }
  0xf5   : > { %903 = vmatpush1.msra.mxu1 %v4669_v7  ;;  %3721 = vmatmul.mubr.msk.f32.gmra.mxu0 %vm713_vm1, %v4374_v57  ;;  %v4792_v57 = vld [vmem:[%s6091_s3 + $0x90] sm:$0xff] }
  0xf6   : > { %904 = vmatprep.subr.mxu1 %v3954_v0  ;;  %v489_v30 = vpop.f32.mrf.mxu0  ;;  %2643 = vmatprep.mubr.f32.mxu0 %v3954_v0 }
  0xf7   : > { %905 = vmatpush1.msra.mxu1 %v4678_v29  ;;  %3554 = vmatprep.mubr.msk.f32.mxu1 %vm549_vm2, %v489_v30  ;;  %v4912_v30 = vld [vmem:[%s6091_s3 + $0x150] sm:$0xff] }
  0xf8   : > { %906 = vmatprep.subr.mxu1 %v3954_v0  ;;  %v493_v35 = vpop.f32.mrf.mxu0  ;;  %649 = vmatmul.mubr.f32.gmra.mxu1 %v487_v28  ;;  %v4906_v28 = vld [vmem:[%s6091_s3 + $0x58] sm:$0xff] }
  0xf9   : > { %907 = vmatpush1.msra.mxu1 %v4688_v32  ;;  %3722 = vmatmul.mubr.msk.f32.gmra.mxu0 %vm713_vm1, %v4390_v59  ;;  %v4813_v59 = vld [vmem:[%s6091_s3 + $0x180] sm:$0xff]  ;;  %6111 = vst [vmem:[#allocation3_spill] sm:$0xff] %v4906_v28 }
  0xfa   : > { %908 = vmatprep.subr.mxu1 %v3954_v0  ;;  %v495_v39 = vpop.f32.mrf.mxu0  ;;  %2649 = vmatprep.mubr.f32.mxu0 %v3954_v0 }
  0xfb   : > { %909 = vmatpush1.msra.mxu1 %v4696_v37  ;;  %3555 = vmatprep.mubr.msk.f32.mxu1 %vm549_vm2, %v495_v39  ;;  %v4924_v39 = vld [vmem:[%s6091_s3 + $0x50] sm:$0xff] }
  0xfc   : > { %910 = vmatprep.subr.mxu1 %v3954_v0  ;;  %v499_v43 = vpop.f32.mrf.mxu0  ;;  %654 = vmatmul.mubr.f32.gmra.mxu1 %v493_v35  ;;  %6112 = vst [vmem:[#allocation4_spill] sm:$0xff] %v4924_v39 }
  0xfd   : > { %911 = vmatpush1.msra.mxu1 %v4706_v41  ;;  %3723 = vmatmul.mubr.msk.f32.gmra.mxu0 %vm713_vm1, %v4406_v61  ;;  %v3584_v61 = vld [vmem:[%s6091_s3 + $0x108] sm:$0x3] }
  0xfe   : > { %912 = vmatprep.subr.mxu1 %v3954_v0  ;;  %v501_v46 = vpop.f32.mrf.mxu0  ;;  %2874 = vmatpush1.msra.mxu0 %v4067_v9  ;;  %v4734_v9 = vld [vmem:[%s6091_s3 + $0xb8] sm:$0xff] }
  0xff   : > { %913 = vmatpush1.msra.mxu1 %v4714_v45  ;;  %3556 = vmatprep.mubr.msk.f32.mxu1 %vm549_vm2, %v501_v46  ;;  %v4933_v46 = vld [vmem:[%s6091_s3 + $0x148] sm:$0xff] }
 0x100   : > { %914 = vmatprep.subr.mxu1 %v3954_v0  ;;  %2655 = vmatprep.mubr.f32.mxu0 %v3954_v0  ;;  %v505_v48 = vpop.f32.mrf.mxu0 }
 0x101   : > { %2875 = vmatprep.subr.mxu0 %v4485_v3  ;;  %659 = vmatmul.mubr.f32.gmra.mxu1 %v499_v43  ;;  %v4876_v3 = vld [vmem:[%s6091_s3 + $0x160] sm:$0xff] }
 0x102   : > { %915 = vmatpush1.msra.mxu1 %v4726_v47  ;;  %3724 = vmatmul.mubr.msk.f32.gmra.mxu0 %vm713_vm1, %v4423_v2  ;;  %v507_v49 = vpop.f32.mrf.mxu0 }
 0x103   : > { %2876 = vmatpush1.msra.mxu0 %v4075_v11  ;;  %916 = vmatprep.subr.mxu1 %v3954_v0 }
 0x104   : > { %2877 = vmatprep.subr.mxu0 %v4498_v22  ;;  %917 = vmatpush1.msra.mxu1 %v4734_v9  ;;  %v511_v50 = vpop.f32.mrf.mxu0 }
 0x105   : > { %2878 = vmatpush1.msra.mxu0 %v4083_v13  ;;  %3557 = vmatprep.mubr.msk.f32.mxu1 %vm549_vm2, %v507_v49  ;;  %v4950_v49 = vld [vmem:[%s6091_s3 + $0x140] sm:$0xff] }
 0x106   : > { %918 = vmatprep.subr.mxu1 %v3954_v0  ;;  %2661 = vmatprep.mubr.f32.mxu0 %v3954_v0  ;;  %v513_v11 = vpop.f32.mrf.mxu0 }
 0x107   : > { %2879 = vmatprep.subr.mxu0 %v4503_v31  ;;  %664 = vmatmul.mubr.f32.gmra.mxu1 %v505_v48  ;;  %v4944_v48 = vld [vmem:[%s6091_s3 + $0x48] sm:$0xff] }
 0x108   : > { %919 = vmatpush1.msra.mxu1 %v4748_v51  ;;  %3725 = vmatmul.mubr.msk.f32.gmra.mxu0 %vm713_vm1, %v4434_v4  ;;  %v517_v13 = vpop.f32.mrf.mxu0  ;;  %v4836_v4 = vld [vmem:[%s6091_s3 + $0x78] sm:$0xff]  ;;  %6113 = vst [vmem:[#allocation5_spill] sm:$0xff] %v4944_v48 }
 0x109   : > { %2880 = vmatpush1.msra.mxu0 %v4091_v15  ;;  %920 = vmatprep.subr.mxu1 %v3954_v0 }
 0x10a   : > { %2881 = vmatprep.subr.mxu0 %v4516_v34  ;;  %921 = vmatpush1.msra.mxu1 %v4756_v52  ;;  %v519_v53 = vpop.f32.mrf.mxu0 }
 0x10b   : > { %2882 = vmatpush1.msra.mxu0 %v4099_v17  ;;  %3558 = vmatprep.mubr.msk.f32.mxu1 %vm549_vm2, %v513_v11  ;;  %v4962_v11 = vld [vmem:[%s6091_s3 + $0x40] sm:$0xff] }
 0x10c   : > { %922 = vmatprep.subr.mxu1 %v3954_v0  ;;  %2667 = vmatprep.mubr.f32.mxu0 %v3954_v0  ;;  %v804_v15 = vpop.f32.mrf.mxu0  ;;  %6114 = vst [vmem:[#allocation6_spill] sm:$0xff] %v4962_v11 }
 0x10d   : > { %2883 = vmatprep.subr.mxu0 %v4521_v36  ;;  %669 = vmatmul.mubr.f32.gmra.mxu1 %v511_v50 }
 0x10e   : > { %923 = vmatpush1.msra.mxu1 %v4770_v54  ;;  %3726 = vmatmul.mubr.msk.f32.gmra.mxu0 %vm713_vm1, %v4442_v6  ;;  %v806_v17 = vpop.f32.mrf.mxu0  ;;  %v4842_v6 = vld [vmem:[%s6091_s3 + $0x170] sm:$0xff] }
 0x10f   : > { %2884 = vmatpush1.msra.mxu0 %v4107_v19  ;;  %924 = vmatprep.subr.mxu1 %v3954_v0  ;;  %v4799_v19 = vld [vmem:[%s6091_s3 + $0x188] sm:$0xff] }
 0x110   : > { %2885 = vmatprep.subr.mxu0 %v4534_v40  ;;  %925 = vmatpush1.msra.mxu1 %v4778_v55  ;;  %v810_v56 = vpop.f32.mrf.mxu0 }
 0x111   : > { %2886 = vmatpush1.msra.mxu0 %v4115_v21  ;;  %3559 = vmatprep.mubr.msk.f32.mxu1 %vm549_vm2, %v519_v53  ;;  %v4805_v21 = vld [vmem:[%s6091_s3 + $0x88] sm:$0xff]  ;;  %v4971_v53 = vld [vmem:[%s6091_s3 + $0x138] sm:$0xff] }
 0x112   : > { %926 = vmatprep.subr.mxu1 %v3954_v0  ;;  %2919 = vmatprep.mubr.f32.mxu0 %v3954_v0  ;;  %v812_v58 = vpop.f32.mrf.mxu0 }
 0x113   : > { %3064 = vmatprep.subr.mxu0 %v3954_v0  ;;  %674 = vmatmul.mubr.f32.gmra.mxu1 %v517_v13 }
 0x114   : > { %927 = vmatpush1.msra.mxu1 %v4792_v57  ;;  %3744 = vmatmul.mubr.msk.f32.vlgmr.msra.gmra.mxu0 %vm713_vm1, %v4450_v8  ;;  %v816_v60 = vpop.f32.mrf.mxu0 }
 0x115   : > { %3065 = vmatpush1.msra.mxu0 %v4799_v19  ;;  %928 = vmatprep.subr.mxu1 %v3954_v0 }
 0x116   : > { %3066 = vmatprep.subr.mxu0 %v3954_v0  ;;  %929 = vmatpush1.msra.mxu1 %v4805_v21  ;;  %v818_v62 = vpop.f32.mrf.mxu0 }
 0x117   : > { %3067 = vmatpush1.msra.mxu0 %v4813_v59  ;;  %960 = vmatprep.subr.mxu1 %v3954_v0 }
 0x118   : > { %3586 = vmatprep.mubr.msk.f32.mxu1 %vm869_vm3, %v806_v17  ;;  %3068 = vmatprep.subr.mxu0 %v3954_v0  ;;  %v822_v2 = vpop.f32.mrf.mxu0  ;;  %v4989_v17 = vld [vmem:[%s6091_s3 + $0x130] sm:$0xff] }
 0x119   : > { %3585 = vmatpush2.msk.msra.mxu1 %vm894_vm4, %v3584_v61  ;;  %2925 = vmatprep.mubr.f32.mxu0 %v3954_v0  ;;  %v5010_v61 = vld [vmem:[%s6091_s3 + $0x128] sm:$0xff] }
 0x11a   : > { %3069 = vmatpush1.msra.mxu0 %v4827_v63  ;;  %963 = vmatmul.mubr.f32.vlgmr.msra.gmra.mxu1 %v804_v15  ;;  %v824_v8 = vpop.f32.mrf.mxu0  ;;  %v4982_v15 = vld [vmem:[%s6091_s3 + $0x38] sm:$0xff] }
 0x11b   : > { %1193 = vmatprep.subr.mxu1 %v3954_v0  ;;  %3745 = vmatmul.mubr.msk.f32.gmra.mxu0 %vm713_vm1, %v4459_v12  ;;  %6115 = vst [vmem:[#allocation7_spill] sm:$0xff] %v4982_v15 }
 0x11c   : > { %3070 = vmatprep.subr.mxu0 %v3954_v0  ;;  %1194 = vmatpush1.msra.mxu1 %v4836_v4  ;;  %v4854_v14 = vpop.f32.mrf.mxu0 }
 0x11d   : > { %3071 = vmatpush1.msra.mxu0 %v4842_v6  ;;  %1195 = vmatprep.subr.mxu1 %v3954_v0 }
 0x11e   : > { %3072 = vmatprep.subr.mxu0 %v3954_v0  ;;  %3587 = vmatprep.mubr.msk.f32.mxu1 %vm869_vm3, %v812_v58  ;;  %v830_v12 = vpop.f32.mrf.mxu0  ;;  %v5001_v58 = vld [vmem:[%s6091_s3 + $0x30] sm:$0xff] }
 0x11f   : > { %1196 = vmatpush1.msra.mxu1 %v4852_v10  ;;  %2931 = vmatprep.mubr.f32.mxu0 %v3954_v0  ;;  %6116 = vst [vmem:[#allocation8_spill] sm:$0xff] %v5001_v58 }
 0x120   : > { %3073 = vmatpush1.msra.mxu0 %v4861_v16  ;;  %968 = vmatmul.mubr.f32.gmra.mxu1 %v810_v56  ;;  %v4878_v23 = vpop.f32.mrf.mxu0 }
 0x121   : > { %1197 = vmatprep.subr.mxu1 %v3954_v0  ;;  %3746 = vmatmul.mubr.msk.f32.gmra.mxu0 %vm713_vm1, %v4476_v1 }
 0x122   : > { %3074 = vmatprep.subr.mxu0 %v3954_v0  ;;  %1198 = vmatpush1.msra.mxu1 %v4870_v18  ;;  %v836_v26 = vpop.f32.mrf.mxu0 }
 0x123   : > { %3075 = vmatpush1.msra.mxu0 %v4876_v3  ;;  %1199 = vmatprep.subr.mxu1 %v3954_v0 }
 0x124   : > { %3076 = vmatprep.subr.mxu0 %v3954_v0  ;;  %3588 = vmatprep.mubr.msk.f32.mxu1 %vm869_vm3, %v818_v62  ;;  %v4899_v1 = vpop.f32.mrf.mxu0  ;;  %v5021_v62 = vld [vmem:[%s6091_s3 + $0x28] sm:$0xff] }
 0x125   : > { %1200 = vmatpush1.msra.mxu1 %v4888_v24  ;;  %2937 = vmatprep.mubr.f32.mxu0 %v3954_v0  ;;  %6117 = vst [vmem:[#allocation9_spill] sm:$0xff] %v5021_v62  ;;  %v3015_v24 = vrot.slane %v4503_v31, 1  ;;  %v5125_v31 = vld [vmem:[%s6091_s3] sm:$0xff] }
 0x126   : > { %3077 = vmatpush1.msra.mxu0 %v4895_v27  ;;  %973 = vmatmul.mubr.f32.gmra.mxu1 %v816_v60  ;;  %v4914_v35 = vpop.f32.mrf.mxu0  ;;  %6123 = vst [vmem:[#allocation15_spill] sm:$0xff] %v5125_v31 }
 0x127   : > { %1201 = vmatprep.subr.mxu1 %v3954_v0  ;;  %3747 = vmatmul.mubr.msk.f32.gmra.mxu0 %vm713_vm1, %v4494_v20 }
 0x128   : > { %3078 = vmatprep.subr.mxu0 %v3954_v0  ;;  %1202 = vmatpush1.msra.mxu1 %v4906_v28  ;;  %v4926_v43 = vpop.f32.mrf.mxu0 }
 0x129   : > { %3079 = vmatpush1.msra.mxu0 %v4912_v30  ;;  %1203 = vmatprep.subr.mxu1 %v3954_v0 }
 0x12a   : > { %3080 = vmatprep.subr.mxu0 %v3954_v0  ;;  %3589 = vmatprep.mubr.msk.f32.mxu1 %vm869_vm3, %v824_v8  ;;  %v4937_v20 = vpop.f32.mrf.mxu0 }
 0x12b   : > { %1204 = vmatpush1.msra.mxu1 %v4924_v39  ;;  %2943 = vmatprep.mubr.f32.mxu0 %v3954_v0 }
 0x12c   : > { %3081 = vmatpush1.msra.mxu0 %v4933_v46  ;;  %978 = vmatmul.mubr.f32.gmra.mxu1 %v822_v2  ;;  %v4952_v50 = vpop.f32.mrf.mxu0  ;;  %v5028_v2 = vld [vmem:[%s6091_s3 + $0x120] sm:$0xff] }
 0x12d   : > { %1205 = vmatprep.subr.mxu1 %v3954_v0  ;;  %3748 = vmatmul.mubr.msk.f32.gmra.mxu0 %vm713_vm1, %v4512_v33 }
 0x12e   : > { %3082 = vmatprep.subr.mxu0 %v3954_v0  ;;  %1206 = vmatpush1.msra.mxu1 %v4944_v48  ;;  %v4964_v13 = vpop.f32.mrf.mxu0  ;;  %v3865_v48 = vld [vmem:[%s4040_s15 + $0x8] sm:$0xff] }
 0x12f   : > { %3083 = vmatpush1.msra.mxu0 %v4950_v49  ;;  %1207 = vmatprep.subr.mxu1 %v3954_v0  ;;  %v1484_v39 = vrot.slane %v3865_v48, 1  ;;  %v5090_v48 = vld [vmem:[%s6091_s3 + $0x190] sm:$0x3] }
 0x130   : > { %3084 = vmatprep.subr.mxu0 %v3954_v0  ;;  %3590 = vmatprep.mubr.msk.f32.mxu1 %vm869_vm3, %v830_v12  ;;  %v4975_v33 = vpop.f32.mrf.mxu0  ;;  %6121 = vst [vmem:[#allocation13_spill] sm:$0xff] %v5090_v48 }
 0x131   : > { %1208 = vmatpush1.msra.mxu1 %v4962_v11  ;;  %2949 = vmatprep.mubr.f32.mxu0 %v3954_v0 }
 0x132   : > { %3085 = vmatpush1.msra.mxu0 %v4971_v53  ;;  %983 = vmatmul.mubr.f32.gmra.mxu1 %v4854_v14  ;;  %v4991_v56 = vpop.f32.mrf.mxu0  ;;  %v5040_v14 = vld [vmem:[%s6091_s3 + $0x20] sm:$0xff] }
 0x133   : > { %1209 = vmatprep.subr.mxu1 %v3954_v0  ;;  %3749 = vmatmul.mubr.msk.f32.gmra.mxu0 %vm713_vm1, %v4530_v38  ;;  %6118 = vst [vmem:[#allocation10_spill] sm:$0xff] %v5040_v14 }
 0x134   : > { %3086 = vmatprep.subr.mxu0 %v3954_v0  ;;  %1210 = vmatpush1.msra.mxu1 %v4982_v15  ;;  %v5003_v60 = vpop.f32.mrf.mxu0  ;;  %v3864_v15 = vld [vmem:[%s4040_s15 + $0x20] sm:$0xff] }
 0x135   : > { %3087 = vmatpush1.msra.mxu0 %v4989_v17  ;;  %1211 = vmatprep.subr.mxu1 %v3954_v0  ;;  %v1485_v11 = vrot.slane %v3864_v15, 1  ;;  %v3866_v15 = vld [vmem:[%s4040_s15 + $0x38] sm:$0xff] }
 0x136   : > { %3088 = vmatprep.subr.mxu0 %v3954_v0  ;;  %3591 = vmatprep.mubr.msk.f32.mxu1 %vm869_vm3, %v836_v26  ;;  %v5014_v38 = vpop.f32.mrf.mxu0  ;;  %v3007_v26 = vrot.slane %v4521_v36, 1  ;;  %v5072_v36 = vld [vmem:[%s6091_s3 + $0x110] sm:$0xff] }
 0x137   : > { %1212 = vmatpush1.msra.mxu1 %v5001_v58  ;;  %2955 = vmatprep.mubr.f32.mxu0 %v3954_v0  ;;  %v5063_v58 = vld [vmem:[%s6091_s3 + $0x18] sm:$0xff] }
 0x138   : > { %3089 = vmatpush1.msra.mxu0 %v5010_v61  ;;  %988 = vmatmul.mubr.f32.gmra.mxu1 %v4878_v23  ;;  %v5030_v8 = vpop.f32.mrf.mxu0  ;;  %6119 = vst [vmem:[#allocation11_spill] sm:$0xff] %v5063_v58 }
 0x139   : > { %1213 = vmatprep.subr.mxu1 %v3954_v0  ;;  %3750 = vmatmul.mubr.msk.f32.gmra.mxu0 %vm713_vm1, %v4545_v42  ;;  %v5049_v42 = vld [vmem:[%s6091_s3 + $0x118] sm:$0xff] }
 0x13a   : > { %3090 = vmatprep.subr.mxu0 %v3954_v0  ;;  %1214 = vmatpush1.msra.mxu1 %v5021_v62  ;;  %v5042_v12 = vpop.f32.mrf.mxu0  ;;  %v3006_v62 = vrot.slane %v4534_v40, 1 }
 0x13b   : > { %3091 = vmatpush1.msra.mxu0 %v5028_v2  ;;  %1215 = vmatprep.subr.mxu1 %v3954_v0 }
 0x13c   : > { %3092 = vmatprep.subr.mxu0 %v3954_v0  ;;  %3592 = vmatprep.mubr.msk.f32.mxu1 %vm869_vm3, %v4914_v35  ;;  %v5054_v23 = vpop.f32.mrf.mxu0  ;;  %v3011_v35 = vrot.slane %v4516_v34, 1 }
 0x13d   : > { %1216 = vmatpush1.msra.mxu1 %v5040_v14  ;;  %2961 = vmatprep.mubr.f32.mxu0 %v3954_v0  ;;  %v5102_v14 = vsel %vm1480_vm5, %v1484_v39, %v1485_v11 }
 0x13e   : > { %3093 = vmatpush1.msra.mxu0 %v5049_v42  ;;  %993 = vmatmul.mubr.f32.gmra.mxu1 %v4899_v1  ;;  %v5074_v40 = vpop.f32.mrf.mxu0  ;;  %v5085_v1 = vld [vmem:[%s6091_s3 + $0x10] sm:$0xff] }
 0x13f   : > { %1217 = vmatprep.subr.mxu1 %v3954_v0  ;;  %3751 = vmatmul.mubr.msk.f32.gmra.mxu0 %vm713_vm1, %v4555_v44  ;;  %6120 = vst [vmem:[#allocation12_spill] sm:$0xff] %v5085_v1  ;;  %v3008_v44 = vsel %vm1480_vm5, %v3006_v62, %v3007_v26  ;;  %v5113_v62 = vld [vmem:[%s6091_s3 + $0x8] sm:$0xff] }
 0x140   : > { %3094 = vmatprep.subr.mxu0 %v3954_v0  ;;  %1218 = vmatpush1.msra.mxu1 %v5063_v58  ;;  %v5092_v34 = vpop.f32.mrf.mxu0  ;;  %v1489_v58 = vrot.slane %v3866_v15, 1  ;;  %6122 = vst [vmem:[#allocation14_spill] sm:$0xff] %v5113_v62  ;;  %v3012_v15 = vsel %vm1480_vm5, %v3007_v26, %v3011_v35 }
 0x141   : > { %3095 = vmatpush1.msra.mxu0 %v5072_v36  ;;  %1219 = vmatprep.subr.mxu1 %v3954_v0 }
 0x142   : > { %3126 = vmatprep.subr.mxu0 %v3954_v0  ;;  %3593 = vmatprep.mubr.msk.f32.mxu1 %vm869_vm3, %v4937_v20  ;;  %v5104_v28 = vpop.f32.mrf.mxu0  ;;  %v3867_v20 = vld [vmem:[%s4040_s15 + $0x50] sm:$0xff] }
 0x143   : > { %1220 = vmatpush1.msra.mxu1 %v5085_v1  ;;  %3769 = vmatpush2.msk.msra.mxu0 %vm894_vm4, %v5090_v48  ;;  %v1493_v48 = vrot.slane %v3867_v20, 1  ;;  %v1165_v20 = vld [vmem:[%s6091_s3 + $0x80] sm:$0x3] }
 0x144   : > { %3770 = vmatprep.mubr.msk.f32.mxu0 %vm869_vm3, %v3008_v44  ;;  %998 = vmatmul.mubr.f32.gmra.mxu1 %v4926_v43  ;;  %v5118_v39 = vpop.f32.mrf.mxu0  ;;  %v5131_v43 = vsel %vm1480_vm5, %v1485_v11, %v1489_v58  ;;  %v5149_v11 = vld [vmem:[%s4040_s15 + $0x68] sm:$0xff] }
 0x145   : > { %1221 = vmatprep.subr.mxu1 %v3954_v0  ;;  %3129 = vmatmul.mubr.f32.vlgmr.msra.gmra.mxu0 %v5102_v14  ;;  %v1497_v44 = vrot.slane %v5149_v11, 1  ;;  %v3884_v11 = vld [vmem:[%s4040_s15 + $0x90] sm:$0xff] }
 0x146   : > { %1222 = vmatpush1.msra.mxu1 %v5113_v62  ;;  %3771 = vmatprep.mubr.msk.f32.mxu0 %vm869_vm3, %v3012_v15  ;;  %v5133_v26 = vpop.f32.mrf.mxu0  ;;  %v3016_v62 = vsel %vm1480_vm5, %v3011_v35, %v3015_v24 }
 0x147   : > { %1223 = vmatprep.subr.mxu1 %v3954_v0  ;;  %3611 = vmatprep.mubr.msk.f32.mxu1 %vm869_vm3, %v4964_v13  ;;  %v5155_v13 = vsel %vm1480_vm5, %v1489_v58, %v1493_v48 }
 0x148   : > { %1224 = vmatpush1.msra.mxu1 %v5125_v31  ;;  %v5144_v15 = vpop.f32.mrf.mxu0  ;;  %v6124_v31 = vrot.slane %v4498_v22, 1 }
 0x149   : > { %1255 = vmatprep.subr.mxu1 %v3954_v0  ;;  %3134 = vmatmul.mubr.f32.gmra.mxu0 %v5131_v43 }
 0x14a   : > { %3610 = vmatpush2.msk.msra.mxu1 %vm894_vm4, %v1165_v20  ;;  %3772 = vmatprep.mubr.msk.f32.mxu0 %vm869_vm3, %v3016_v62  ;;  %v1146_v35 = vpop.f32.mrf.mxu0  ;;  %v3020_v1 = vsel %vm1480_vm5, %v3015_v24, %v6124_v31  ;;  %v3872_v62 = vld [vmem:[%s6089_s1 + $0x78] sm:$0xff]  ;;  %v3873_v31 = vld [vmem:[%s4040_s15 + $0x48] sm:$0xff] }
 0x14b   : > { %1258 = vmatmul.mubr.f32.vlgmr.msra.gmra.mxu1 %v4952_v50  ;;  %1542 = vmatprep.subr.mxu1 %v3954_v0  ;;  %v5174_v50 = vsel %vm1480_vm5, %v1493_v48, %v1497_v44 }
 0x14c   : > { %1543 = vmatpush1.msra.mxu1 %v4799_v19  ;;  %3612 = vmatprep.mubr.msk.f32.mxu1 %vm869_vm3, %v4991_v56  ;;  %v5165_v20 = vpop.f32.mrf.mxu0  ;;  %v3869_v56 = vld [vmem:[%s4040_s15 + $0x18] sm:$0xff] }
 0x14d   : > { %1544 = vmatprep.subr.mxu1 %v3954_v0  ;;  %3139 = vmatmul.mubr.f32.gmra.mxu0 %v5155_v13  ;;  %v1482_v58 = vrot.slane %v3869_v56, 1 }
 0x14e   : > { %1545 = vmatpush1.msra.mxu1 %v4813_v59  ;;  %3773 = vmatprep.mubr.msk.f32.mxu0 %vm869_vm3, %v3020_v1  ;;  %v5176_v24 = vpop.f32.mrf.mxu0  ;;  %v3871_v1 = vld [vmem:[%s4040_s15 + $0x30] sm:$0xff] }
 0x14f   : > { %1263 = vmatmul.mubr.f32.gmra.mxu1 %v4975_v33  ;;  %1546 = vmatprep.subr.mxu1 %v3954_v0  ;;  %v1487_v48 = vrot.slane %v3871_v1, 1 }
 0x150   : > { %1547 = vmatpush1.msra.mxu1 %v4827_v63  ;;  %3613 = vmatprep.mubr.msk.f32.mxu1 %vm869_vm3, %v5014_v38  ;;  %v5183_v19 = vpop.f32.mrf.mxu0 }
 0x151   : > { %1548 = vmatprep.subr.mxu1 %v3954_v0  ;;  %3144 = vmatmul.mubr.f32.gmra.mxu0 %v5174_v50 }
 0x152   : > { %1549 = vmatpush1.msra.mxu1 %v4842_v6  ;;  %v5188_v59 = vpop.f32.mrf.mxu0 }
 0x153   : > { %1268 = vmatmul.mubr.f32.gmra.mxu1 %v5003_v60  ;;  %1550 = vmatprep.subr.mxu1 %v3954_v0  ;;  %v3870_v60 = vld [vmem:[%s4040_s15] sm:$0xff] }
 0x154   : > { %1551 = vmatpush1.msra.mxu1 %v4861_v16  ;;  %3614 = vmatprep.mubr.msk.f32.mxu1 %vm869_vm3, %v5042_v12  ;;  %v5195_v63 = vpop.f32.mrf.mxu0  ;;  %v1481_v38 = vrot.slane %v3870_v60, 1  ;;  %v3876_v60 = vld [vmem:[%s4040_s15 + $0x60] sm:$0xff] }
 0x155   : > { %1552 = vmatprep.subr.mxu1 %v3954_v0 }
 0x156   : > { %1553 = vmatpush1.msra.mxu1 %v4876_v3  ;;  %v5199_v33 = vpop.f32.mrf.mxu0 }
 0x157   : > { %6125 = vst [vmem:[#allocation16_spill] sm:$0xff] %v5199_v33  ;;  %1273 = vmatmul.mubr.f32.gmra.mxu1 %v5030_v8  ;;  %1554 = vmatprep.subr.mxu1 %v3954_v0 }
 0x158   : > { %1555 = vmatpush1.msra.mxu1 %v4895_v27  ;;  %3615 = vmatprep.mubr.msk.f32.mxu1 %vm869_vm3, %v5074_v40  ;;  %v5206_v6 = vpop.f32.mrf.mxu0  ;;  %v1483_v40 = vsel %vm1480_vm5, %v1481_v38, %v1482_v58  ;;  %v1495_v38 = vrot.slane %v3876_v60, 1  ;;  %v3881_v60 = vld [vmem:[%s4040_s15 + $0x98] sm:$0xff] }
 0x159   : > { %1556 = vmatprep.subr.mxu1 %v3954_v0 }
 0x15a   : > { %1557 = vmatpush1.msra.mxu1 %v4912_v30  ;;  %v5210_v16 = vpop.f32.mrf.mxu0 }
 0x15b   : > { %6126 = vst [vmem:[#allocation17_spill] sm:$0xff] %v5210_v16  ;;  %1278 = vmatmul.mubr.f32.gmra.mxu1 %v5054_v23  ;;  %1558 = vmatprep.subr.mxu1 %v3954_v0  ;;  %v3651_v23 = vld [vmem:[%s6091_s3 + $0x190] sm:$0x3] }
 0x15c   : > { %1559 = vmatpush1.msra.mxu1 %v4933_v46  ;;  %3616 = vmatprep.mubr.msk.f32.mxu1 %vm869_vm3, %v5104_v28  ;;  %v5217_v3 = vpop.f32.mrf.mxu0 }
 0x15d   : > { %1560 = vmatprep.subr.mxu1 %v3954_v0 }
 0x15e   : > { %1561 = vmatpush1.msra.mxu1 %v4950_v49  ;;  %v5221_v27 = vpop.f32.mrf.mxu0 }
 0x15f   : > { %6127 = vst [vmem:[#allocation18_spill] sm:$0xff] %v5221_v27  ;;  %1283 = vmatmul.mubr.f32.gmra.mxu1 %v5092_v34  ;;  %1562 = vmatprep.subr.mxu1 %v3954_v0 }
 0x160   : > { %1563 = vmatpush1.msra.mxu1 %v4971_v53  ;;  %3617 = vmatprep.mubr.msk.f32.mxu1 %vm869_vm3, %v5133_v26  ;;  %v5228_v28 = vpop.f32.mrf.mxu0  ;;  %v1491_v26 = vrot.slane %v3873_v31, 1  ;;  %v3880_v31 = vld [vmem:[%s4040_s15 + $0x78] sm:$0xff] }
 0x161   : > { %1564 = vmatprep.subr.mxu1 %v3954_v0 }
 0x162   : > { %1565 = vmatpush1.msra.mxu1 %v4989_v17  ;;  %v5232_v30 = vpop.f32.mrf.mxu0 }
 0x163   : > { %6128 = vst [vmem:[#allocation19_spill] sm:$0xff] %v5232_v30  ;;  %1288 = vmatmul.mubr.f32.gmra.mxu1 %v5118_v39  ;;  %1566 = vmatprep.subr.mxu1 %v3954_v0  ;;  %v1488_v39 = vsel %vm1480_vm5, %v1482_v58, %v1487_v48  ;;  %v1492_v58 = vsel %vm1480_vm5, %v1487_v48, %v1491_v26 }
 0x164   : > { %1567 = vmatpush1.msra.mxu1 %v5010_v61  ;;  %3618 = vmatprep.mubr.msk.f32.mxu1 %vm869_vm3, %v1146_v35  ;;  %v5238_v46 = vpop.f32.mrf.mxu0  ;;  %v3874_v35 = vld [vmem:[%s6089_s1 + $0x70] sm:$0xff]  ;;  %v1496_v48 = vsel %vm1480_vm5, %v1491_v26, %v1495_v38 }
 0x165   : > { %1568 = vmatprep.subr.mxu1 %v3954_v0 }
 0x166   : > { %1569 = vmatpush1.msra.mxu1 %v5028_v2  ;;  %v5244_v8 = vpop.f32.mrf.mxu0 }
 0x167   : > { %6129 = vst [vmem:[#allocation20_spill] sm:$0xff] %v5244_v8  ;;  %1293 = vmatmul.mubr.f32.gmra.mxu1 %v5144_v15  ;;  %1570 = vmatprep.subr.mxu1 %v3954_v0 }
 0x168   : > { %1571 = vmatpush1.msra.mxu1 %v5049_v42  ;;  %3653 = vmatprep.mubr.msk.f32.mxu1 %vm869_vm3, %v5102_v14  ;;  %v5251_v12 = vpop.f32.mrf.mxu0 }
 0x169   : > { %1572 = vmatprep.subr.mxu1 %v3954_v0 }
 0x16a   : > { %1573 = vmatpush1.msra.mxu1 %v5072_v36  ;;  %v5260_v34 = vpop.f32.mrf.mxu0 }
 0x16b   : > { %6130 = vst [vmem:[#allocation21_spill] sm:$0xff] %v5260_v34  ;;  %1604 = vmatprep.subr.mxu1 %v3954_v0 }
 0x16c   : > { %3652 = vmatpush2.msk.msra.mxu1 %vm894_vm4, %v3651_v23  ;;  %v5264_v14 = vpop.f32.mrf.mxu0 }
 0x16d   : > { %1607 = vmatmul.mubr.f32.vlgmr.msra.gmra.mxu1 %v1483_v40  ;;  %2104 = vmatprep.subr.mxu1 %v3954_v0  ;;  %v3877_v40 = vld [vmem:[%s4040_s15 + $0x80] sm:$0xff] }
 0x16e   : > { %2105 = vmatpush1.msra.mxu1 %v3872_v62  ;;  %3654 = vmatprep.mubr.msk.f32.mxu1 %vm869_vm3, %v5131_v43  ;;  %v5274_v15 = vpop.f32.mrf.mxu0  ;;  %v3875_v43 = vld [vmem:[%s6089_s1 + $0x68] sm:$0xff]  ;;  %v1501_v1 = vrot.slane %v3877_v40, 1  ;;  %v3878_v62 = vld [vmem:[%s6089_s1 + $0x60] sm:$0xff] }
 0x16f   : > { %2106 = vmatprep.subr.mxu1 %v3954_v0 }
 0x170   : > { %2107 = vmatpush1.msra.mxu1 %v3874_v35  ;;  %v5280_v56 = vpop.f32.mrf.mxu0  ;;  %v1499_v35 = vrot.slane %v3880_v31, 1  ;;  %v5314_v40 = vsel %vm1480_vm5, %v1497_v44, %v1501_v1 }
 0x171   : > { %1612 = vmatmul.mubr.f32.gmra.mxu1 %v1488_v39  ;;  %2108 = vmatprep.subr.mxu1 %v3954_v0 }
 0x172   : > { %2109 = vmatpush1.msra.mxu1 %v3875_v43  ;;  %3655 = vmatprep.mubr.msk.f32.mxu1 %vm869_vm3, %v5155_v13  ;;  %v5290_v23 = vpop.f32.mrf.mxu0  ;;  %v3879_v13 = vld [vmem:[%s6089_s1 + $0x58] sm:$0xff]  ;;  %v1500_v44 = vsel %vm1480_vm5, %v1495_v38, %v1499_v35 }
 0x173   : > { %2110 = vmatprep.subr.mxu1 %v3954_v0  ;;  %v3887_v38 = vld [vmem:[%s6089_s1 + $0x38] sm:$0xff] }
 0x174   : > { %2111 = vmatpush1.msra.mxu1 %v3878_v62  ;;  %v5297_v39 = vpop.f32.mrf.mxu0  ;;  %v3883_v62 = vld [vmem:[%s6089_s1 + $0x48] sm:$0xff] }
 0x175   : > { %1617 = vmatmul.mubr.f32.gmra.mxu1 %v1492_v58  ;;  %2112 = vmatprep.subr.mxu1 %v3954_v0  ;;  %v1505_v58 = vrot.slane %v3881_v60, 1  ;;  %v3885_v60 = vld [vmem:[%s4040_s15 + $0xb0] sm:$0xff] }
 0x176   : > { %2113 = vmatpush1.msra.mxu1 %v3879_v13  ;;  %3656 = vmatprep.mubr.msk.f32.mxu1 %vm869_vm3, %v5174_v50  ;;  %v5307_v43 = vpop.f32.mrf.mxu0  ;;  %v3882_v50 = vld [vmem:[%s6089_s1 + $0x50] sm:$0xff]  ;;  %v1503_v13 = vrot.slane %v3884_v11, 1  ;;  %v3888_v11 = vld [vmem:[%s4040_s15 + $0xa8] sm:$0xff] }
 0x177   : > { %2114 = vmatprep.subr.mxu1 %v3954_v0 }
 0x178   : > { %2115 = vmatpush1.msra.mxu1 %v3882_v50  ;;  %v5319_v26 = vpop.f32.mrf.mxu0  ;;  %v5334_v50 = vsel %vm1480_vm5, %v1501_v1, %v1505_v58  ;;  %v1504_v1 = vsel %vm1480_vm5, %v1499_v35, %v1503_v13  ;;  %v3891_v35 = vld [vmem:[%s6089_s1 + $0x28] sm:$0xff] }
 0x179   : > { %1622 = vmatmul.mubr.f32.gmra.mxu1 %v1496_v48  ;;  %2116 = vmatprep.subr.mxu1 %v3954_v0  ;;  %v1509_v48 = vrot.slane %v3885_v60, 1  ;;  %v1507_v60 = vrot.slane %v3888_v11, 1  ;;  %v3892_v11 = vld [vmem:[%s4040_s15 + $0xc0] sm:$0xff] }
 0x17a   : > { %2117 = vmatpush1.msra.mxu1 %v3883_v62  ;;  %3657 = vmatprep.mubr.msk.f32.mxu1 %vm869_vm3, %v5314_v40  ;;  %v5329_v31 = vpop.f32.mrf.mxu0  ;;  %v3886_v62 = vld [vmem:[%s6089_s1 + $0x40] sm:$0xff] }
 0x17b   : > { %2118 = vmatprep.subr.mxu1 %v3954_v0 }
 0x17c   : > { %2119 = vmatpush1.msra.mxu1 %v3886_v62  ;;  %v5339_v34 = vpop.f32.mrf.mxu0  ;;  %v3889_v62 = vld [vmem:[%s4040_s15 + $0xc8] sm:$0xff] }
 0x17d   : > { %1627 = vmatmul.mubr.f32.gmra.mxu1 %v1500_v44  ;;  %2120 = vmatprep.subr.mxu1 %v3954_v0  ;;  %v1513_v30 = vrot.slane %v3889_v62, 1  ;;  %v5354_v44 = vsel %vm1480_vm5, %v1505_v58, %v1509_v48  ;;  %v1508_v58 = vsel %vm1480_vm5, %v1503_v13, %v1507_v60  ;;  %v1511_v62 = vrot.slane %v3892_v11, 1  ;;  %v3894_v13 = vld [vmem:[%s6089_s1 + $0x18] sm:$0xff] }
 0x17e   : > { %2121 = vmatpush1.msra.mxu1 %v3887_v38  ;;  %3658 = vmatprep.mubr.msk.f32.mxu1 %vm869_vm3, %v5334_v50  ;;  %v5349_v8 = vpop.f32.mrf.mxu0  ;;  %v3890_v38 = vld [vmem:[%s6089_s1 + $0x30] sm:$0xff] }
 0x17f   : > { %2122 = vmatprep.subr.mxu1 %v3954_v0 }
 0x180   : > { %2123 = vmatpush1.msra.mxu1 %v3890_v38  ;;  %v5359_v27 = vpop.f32.mrf.mxu0  ;;  %v3893_v38 = vld [vmem:[%s6089_s1 + $0x20] sm:$0xff] }
 0x181   : > { %1632 = vmatmul.mubr.f32.gmra.mxu1 %v1504_v1  ;;  %2124 = vmatprep.subr.mxu1 %v3954_v0  ;;  %v5373_v1 = vsel %vm1480_vm5, %v1509_v48, %v1513_v30  ;;  %v1512_v30 = vsel %vm1480_vm5, %v1507_v60, %v1511_v62  ;;  %v3897_v62 = vld [vmem:[%s6089_s1] sm:$0xff] }
 0x182   : > { %2125 = vmatpush1.msra.mxu1 %v3891_v35  ;;  %3659 = vmatprep.mubr.msk.f32.mxu1 %vm869_vm3, %v5354_v44  ;;  %v5369_v16 = vpop.f32.mrf.mxu0 }
 0x183   : > { %2126 = vmatprep.subr.mxu1 %v3954_v0 }
 0x184   : > { %2127 = vmatpush1.msra.mxu1 %v3893_v38  ;;  %v5378_v35 = vpop.f32.mrf.mxu0  ;;  %v3896_v38 = vld [vmem:[%s6089_s1 + $0x8] sm:$0xff] }
 0x185   : > { %1637 = vmatmul.mubr.f32.gmra.mxu1 %v1508_v58  ;;  %2128 = vmatprep.subr.mxu1 %v3954_v0  ;;  %v3895_v58 = vld [vmem:[%s6089_s1 + $0x10] sm:$0xff] }
 0x186   : > { %2129 = vmatpush1.msra.mxu1 %v3894_v13  ;;  %3660 = vmatprep.mubr.msk.f32.mxu1 %vm869_vm3, %v5373_v1  ;;  %v5387_v48 = vpop.f32.mrf.mxu0 }
 0x187   : > { %2130 = vmatprep.subr.mxu1 %v3954_v0 }
 0x188   : > { %2131 = vmatpush1.msra.mxu1 %v3895_v58  ;;  %v5393_v11 = vpop.f32.mrf.mxu0 }
 0x189   : > { %1642 = vmatmul.mubr.f32.gmra.mxu1 %v1512_v30  ;;  %2132 = vmatprep.subr.mxu1 %v3954_v0  ;;  %v3898_v30 = vld [vmem:[%s6089_s1 + $0x90] sm:$0xff] }
 0x18a   : > { %2133 = vmatpush1.msra.mxu1 %v3896_v38  ;;  %3669 = vmatprep.mubr.msk.f32.mxu1 %vm549_vm2, %v5274_v15  ;;  %v5401_v60 = vpop.f32.mrf.mxu0  ;;  %v3899_v15 = vld [vmem:[%s6089_s1 + $0x88] sm:$0xff] }
 0x18b   : > { %2134 = vmatprep.subr.mxu1 %v3954_v0 }
 0x18c   : > { %2135 = vmatpush1.msra.mxu1 %v3897_v62  ;;  %v5407_v13 = vpop.f32.mrf.mxu0  ;;  %v3900_v62 = vld [vmem:[%s6089_s1 + $0x80] sm:$0xff] }
 0x18d   : > { %2162 = vmatprep.subr.mxu1 %v3954_v0 }
 0x18e   : > { %2163 = vmatpush2.msra.mxu1 %v3898_v30  ;;  %v5413_v58 = vpop.f32.mrf.mxu0 }
 0x18f   : > { %2164 = vmatprep.subr.mxu1 %v3954_v0 }
 0x190   : > { %2165 = vmatpush2.msra.mxu1 %v3899_v15  ;;  %v5419_v38 = vpop.f32.mrf.mxu0 }
 0x191   : > { %2166 = vmatprep.subr.mxu1 %v3954_v0 }
 0x192   : > { %2167 = vmatpush2.msra.mxu1 %v3900_v62  ;;  %v5425_v33 = vpop.f32.mrf.mxu0 }
 0x193   : > { %2169 = vmatmul.mubr.f32.vlgmr.msra.gmra.mxu1 %v5264_v14  ;;  %2424 = vmatprep.subr.mxu1 %v3954_v0 }
 0x194   : > { %2425 = vmatpush1.msra.mxu1 %v4651_v25  ;;  %3670 = vmatprep.mubr.msk.f32.mxu1 %vm549_vm2, %v5290_v23  ;;  %v5432_v30 = vpop.f32.mrf.mxu0 }
 0x195   : > { %2426 = vmatprep.subr.mxu1 %v3954_v0 }
 0x196   : > { %2427 = vmatpush1.msra.mxu1 %v4661_v5  ;;  %v5436_v15 = vpop.f32.mrf.mxu0 }
 0x197   : > { %2174 = vmatmul.mubr.f32.gmra.mxu1 %v5280_v56  ;;  %2428 = vmatprep.subr.mxu1 %v3954_v0 }
 0x198   : > { %2429 = vmatpush1.msra.mxu1 %v4669_v7  ;;  %3671 = vmatprep.mubr.msk.f32.mxu1 %vm549_vm2, %v5307_v43  ;;  %v5443_v25 = vpop.f32.mrf.mxu0  ;;  %v543_v43 = vld [vmem:[%s5500_s14 + $0x20] sm:$0xff] }
 0x199   : > { %2430 = vmatprep.subr.mxu1 %v3954_v0 }
 0x19a   : > { %2431 = vmatpush1.msra.mxu1 %v4678_v29  ;;  %v5447_v14 = vpop.f32.mrf.mxu0 }
 0x19b   : > { %2179 = vmatmul.mubr.f32.gmra.mxu1 %v5297_v39  ;;  %2432 = vmatprep.subr.mxu1 %v3954_v0 }
 0x19c   : > { %2433 = vmatpush1.msra.mxu1 %v4688_v32  ;;  %3672 = vmatprep.mubr.msk.f32.mxu1 %vm549_vm2, %v5329_v31  ;;  %v5454_v5 = vpop.f32.mrf.mxu0 }
 0x19d   : > { %2434 = vmatprep.subr.mxu1 %v3954_v0 }
 0x19e   : > { %2435 = vmatpush1.msra.mxu1 %v4696_v37  ;;  %v5459_v7 = vpop.f32.mrf.mxu0 }
 0x19f   : > { %2184 = vmatmul.mubr.f32.gmra.mxu1 %v5319_v26  ;;  %2436 = vmatprep.subr.mxu1 %v3954_v0 }
 0x1a0   : > { %2437 = vmatpush1.msra.mxu1 %v4706_v41  ;;  %3673 = vmatprep.mubr.msk.f32.mxu1 %vm549_vm2, %v5349_v8  ;;  %v5466_v29 = vpop.f32.mrf.mxu0 }
 0x1a1   : > { %2438 = vmatprep.subr.mxu1 %v3954_v0 }
 0x1a2   : > { %2439 = vmatpush1.msra.mxu1 %v4714_v45  ;;  %v5470_v32 = vpop.f32.mrf.mxu0 }
 0x1a3   : > { %2189 = vmatmul.mubr.f32.gmra.mxu1 %v5339_v34  ;;  %2440 = vmatprep.subr.mxu1 %v3954_v0  ;;  %v542_v34 = vld [vmem:[%s5500_s14 + $0x10] sm:$0xff] }
 0x1a4   : > { %2441 = vmatpush1.msra.mxu1 %v4726_v47  ;;  %3674 = vmatprep.mubr.msk.f32.mxu1 %vm549_vm2, %v5369_v16  ;;  %v5477_v37 = vpop.f32.mrf.mxu0  ;;  %v3701_v16 = vld [vmem:[%s6091_s3 + $0x108] sm:$0x3] }
 0x1a5   : > { %2442 = vmatprep.subr.mxu1 %v3954_v0 }
 0x1a6   : > { %2443 = vmatpush1.msra.mxu1 %v4734_v9  ;;  %v5481_v41 = vpop.f32.mrf.mxu0 }
 0x1a7   : > { %2194 = vmatmul.mubr.f32.gmra.mxu1 %v5359_v27  ;;  %2444 = vmatprep.subr.mxu1 %v3954_v0 }
 0x1a8   : > { %2445 = vmatpush1.msra.mxu1 %v4748_v51  ;;  %3675 = vmatprep.mubr.msk.f32.mxu1 %vm549_vm2, %v5387_v48  ;;  %v5489_v45 = vpop.f32.mrf.mxu0  ;;  %v544_v48 = vld [vmem:[%s5500_s14 + $0x30] sm:$0xff] }
 0x1a9   : > { %2446 = vmatprep.subr.mxu1 %v3954_v0 }
 0x1aa   : > { %2447 = vmatpush1.msra.mxu1 %v4756_v52  ;;  %v5493_v47 = vpop.f32.mrf.mxu0  ;;  %v541_v52 = vld [vmem:[%s5500_s14] sm:$0xff] }
 0x1ab   : > { %2199 = vmatmul.mubr.f32.gmra.mxu1 %v5378_v35  ;;  %2448 = vmatprep.subr.mxu1 %v3954_v0 }
 0x1ac   : > { %2449 = vmatpush1.msra.mxu1 %v4770_v54  ;;  %3676 = vmatprep.mubr.msk.f32.mxu1 %vm549_vm2, %v5401_v60  ;;  %v5505_v9 = vpop.f32.mrf.mxu0 }
 0x1ad   : > { %2450 = vmatprep.subr.mxu1 %v3954_v0 }
 0x1ae   : > { %2451 = vmatpush1.msra.mxu1 %v4778_v55  ;;  %v5509_v51 = vpop.f32.mrf.mxu0 }
 0x1af   : > { %2204 = vmatmul.mubr.f32.gmra.mxu1 %v5393_v11  ;;  %2452 = vmatprep.subr.mxu1 %v3954_v0  ;;  %v6131_v11 = vld [vmem:[#allocation2_spill] sm:$0xff] }
 0x1b0   : > { %2453 = vmatpush1.msra.mxu1 %v4792_v57  ;;  %3703 = vmatprep.mubr.msk.f32.mxu1 %vm869_vm3, %v5413_v58  ;;  %v640_v54 = vpop.f32.mrf.mxu1  ;;  %v5522_v55 = vpop.f32.mrf.mxu0  ;;  %v6132_v58 = vld [vmem:[#allocation3_spill] sm:$0xff] }
 0x1b1   : > { %2454 = vmatprep.subr.mxu1 %v3954_v0  ;;  %v641_v27 = vadd.f32 %v640_v54, %v541_v52  ;;  %v6133_v52 = vld [vmem:[#allocation4_spill] sm:$0xff]  ;;  %v6134_v54 = vld [vmem:[#allocation5_spill] sm:$0xff] }
 0x1b2   : > { %2455 = vmatpush1.msra.mxu1 %v4805_v21  ;;  %v642_v57 = vpop.f32.mrf.mxu1  ;;  %v5529_v8 = vpop.f32.mrf.mxu0 }
 0x1b3   : > { %2486 = vmatprep.subr.mxu1 %v3954_v0  ;;  %679 = vst [vmem:[%s5520_s19] sm:$0xff] %v641_v27  ;;  %v6135_v57 = vld [vmem:[#allocation6_spill] sm:$0xff] }
 0x1b4   : > { %3702 = vmatpush2.msk.msra.mxu1 %vm894_vm4, %v3701_v16  ;;  %v645_v56 = vpop.f32.mrf.mxu1 }
 0x1b5   : > { %2489 = vmatmul.mubr.f32.vlgmr.msra.gmra.mxu1 %v5407_v13  ;;  %2718 = vmatprep.subr.mxu1 %v3954_v0  ;;  %v646_v23 = vadd.f32 %v645_v56, %v542_v34  ;;  %v5537_v39 = vpop.f32.mrf.mxu0  ;;  %v6136_v56 = vld [vmem:[#allocation7_spill] sm:$0xff] }
 0x1b6   : > { %2719 = vmatpush1.msra.mxu1 %v4836_v4  ;;  %3704 = vmatprep.mubr.msk.f32.mxu1 %vm869_vm3, %v5425_v33  ;;  %v647_v21 = vpop.f32.mrf.mxu1 }
 0x1b7   : > { %2720 = vmatprep.subr.mxu1 %v3954_v0  ;;  %680 = vst [vmem:[%s5520_s19 + $0x10] sm:$0xff] %v646_v23  ;;  %v5545_v26 = vpop.f32.mrf.mxu0  ;;  %v6137_v23 = vld [vmem:[#allocation8_spill] sm:$0xff] }
 0x1b8   : > { %2721 = vmatpush1.msra.mxu1 %v4852_v10  ;;  %v650_v31 = vpop.f32.mrf.mxu1 }
 0x1b9   : > { %2494 = vmatmul.mubr.f32.gmra.mxu1 %v5419_v38  ;;  %2722 = vmatprep.subr.mxu1 %v3954_v0  ;;  %v651_v4 = vadd.f32 %v650_v31, %v543_v43  ;;  %v5550_v35 = vpop.f32.mrf.mxu0  ;;  %v6138_v31 = vld [vmem:[#allocation9_spill] sm:$0xff] }
 0x1ba   : > { %2723 = vmatpush1.msra.mxu1 %v4870_v18  ;;  %3705 = vmatprep.mubr.msk.f32.mxu1 %vm869_vm3, %v5436_v15  ;;  %v652_v33 = vpop.f32.mrf.mxu1  ;;  %v545_v15 = vld [vmem:[%s5500_s14 + $0x40] sm:$0xff] }
 0x1bb   : > { %2724 = vmatprep.subr.mxu1 %v3954_v0  ;;  %681 = vst [vmem:[%s5520_s19 + $0x20] sm:$0xff] %v651_v4  ;;  %v5558_v10 = vpop.f32.mrf.mxu0  ;;  %v547_v4 = vld [vmem:[%s5500_s14 + $0x60] sm:$0xff] }
 0x1bc   : > { %2725 = vmatpush1.msra.mxu1 %v6131_v11  ;;  %v655_v60 = vpop.f32.mrf.mxu1  ;;  %v6139_v33 = vld [vmem:[#allocation10_spill] sm:$0xff] }
 0x1bd   : > { %2499 = vmatmul.mubr.f32.gmra.mxu1 %v5432_v30  ;;  %2726 = vmatprep.subr.mxu1 %v3954_v0  ;;  %v656_v18 = vadd.f32 %v655_v60, %v544_v48  ;;  %v5563_v13 = vpop.f32.mrf.mxu0  ;;  %v6140_v48 = vld [vmem:[#allocation11_spill] sm:$0xff] }
 0x1be   : > { %2727 = vmatpush1.msra.mxu1 %v6132_v58  ;;  %3706 = vmatprep.mubr.msk.f32.mxu1 %vm869_vm3, %v5447_v14  ;;  %v657_v38 = vpop.f32.mrf.mxu1 }
 0x1bf   : > { %2728 = vmatprep.subr.mxu1 %v3954_v0  ;;  %682 = vst [vmem:[%s5520_s19 + $0x30] sm:$0xff] %v656_v18  ;;  %v5570_v62 = vpop.f32.mrf.mxu0  ;;  %v6141_v18 = vld [vmem:[#allocation12_spill] sm:$0xff]  ;;  %v6142_v38 = vld [vmem:[#allocation14_spill] sm:$0xff] }
 0x1c0   : > { %2729 = vmatpush1.msra.mxu1 %v6133_v52  ;;  %v6143_v52 = vld [vmem:[#allocation15_spill] sm:$0xff] }
 0x1c1   : > { %2504 = vmatmul.mubr.f32.gmra.mxu1 %v5443_v25  ;;  %2730 = vmatprep.subr.mxu1 %v3954_v0  ;;  %v660_v30 = vpop.f32.mrf.mxu1  ;;  %v546_v25 = vld [vmem:[%s5500_s14 + $0x50] sm:$0xff] }
 0x1c2   : > { %2731 = vmatpush1.msra.mxu1 %v6134_v54  ;;  %3707 = vmatprep.mubr.msk.f32.mxu1 %vm869_vm3, %v5459_v7  ;;  %v661_v14 = vadd.f32 %v660_v30, %v545_v15  ;;  %v5579_v16 = vpop.f32.mrf.mxu0 }
 0x1c3   : > { %2732 = vmatprep.subr.mxu1 %v3954_v0  ;;  %v662_v27 = vpop.f32.mrf.mxu1 }
 0x1c4   : > { %2733 = vmatpush1.msra.mxu1 %v6135_v57  ;;  %683 = vst [vmem:[%s5520_s19 + $0x40] sm:$0xff] %v661_v14  ;;  %v5584_v34 = vpop.f32.mrf.mxu0  ;;  %v3901_v14 = vld [vmem:[%s6091_s3 + $0x188] sm:$0xff]  ;;  %v3902_v27 = vld [vmem:[%s6091_s3 + $0x180] sm:$0xff] }
 0x1c5   : > { %2509 = vmatmul.mubr.f32.gmra.mxu1 %v5454_v5  ;;  %2734 = vmatprep.subr.mxu1 %v3954_v0 }
 0x1c6   : > { %2735 = vmatpush1.msra.mxu1 %v6136_v56  ;;  %3708 = vmatprep.mubr.msk.f32.mxu1 %vm869_vm3, %v5470_v32 }
 0x1c7   : > { %2736 = vmatprep.subr.mxu1 %v3954_v0  ;;  %v665_v7 = vpop.f32.mrf.mxu1 }
 0x1c8   : > { %2737 = vmatpush1.msra.mxu1 %v6137_v23  ;;  %v666_v21 = vadd.f32 %v665_v7, %v546_v25  ;;  %v5594_v43 = vpop.f32.mrf.mxu0  ;;  %v3903_v25 = vld [vmem:[%s6091_s3 + $0x178] sm:$0xff]  ;;  %v3905_v7 = vld [vmem:[%s6091_s3 + $0x168] sm:$0xff] }
 0x1c9   : > { %2514 = vmatmul.mubr.f32.gmra.mxu1 %v5466_v29  ;;  %2738 = vmatprep.subr.mxu1 %v3954_v0  ;;  %v667_v5 = vpop.f32.mrf.mxu1 }
 0x1ca   : > { %2739 = vmatpush1.msra.mxu1 %v6138_v31  ;;  %3709 = vmatprep.mubr.msk.f32.mxu1 %vm869_vm3, %v5481_v41  ;;  %684 = vst [vmem:[%s5520_s19 + $0x50] sm:$0xff] %v666_v21  ;;  %v5602_v32 = vpop.f32.mrf.mxu0  ;;  %v3908_v31 = vld [vmem:[%s6091_s3 + $0x150] sm:$0xff] }
 0x1cb   : > { %2740 = vmatprep.subr.mxu1 %v3954_v0 }
 0x1cc   : > { %2741 = vmatpush1.msra.mxu1 %v6139_v33 }
 0x1cd   : > { %2519 = vmatmul.mubr.f32.gmra.mxu1 %v5477_v37  ;;  %2742 = vmatprep.subr.mxu1 %v3954_v0  ;;  %v670_v29 = vpop.f32.mrf.mxu1  ;;  %v548_v37 = vld [vmem:[%s5500_s14 + $0x70] sm:$0xff] }
 0x1ce   : > { %2743 = vmatpush1.msra.mxu1 %v6140_v48  ;;  %3710 = vmatprep.mubr.msk.f32.mxu1 %vm869_vm3, %v5493_v47  ;;  %v671_v41 = vadd.f32 %v670_v29, %v547_v4  ;;  %v5612_v11 = vpop.f32.mrf.mxu0  ;;  %v2690_v47 = vld [vmem:[%s6091_s3 + $0x80] sm:$0x3] }
 0x1cf   : > { %2744 = vmatprep.subr.mxu1 %v3954_v0  ;;  %v672_v60 = vpop.f32.mrf.mxu1 }
 0x1d0   : > { %2745 = vmatpush1.msra.mxu1 %v6141_v18  ;;  %685 = vst [vmem:[%s5520_s19 + $0x60] sm:$0xff] %v671_v41  ;;  %v5617_v58 = vpop.f32.mrf.mxu0 }
 0x1d1   : > { %2524 = vmatmul.mubr.f32.gmra.mxu1 %v5489_v45  ;;  %2746 = vmatprep.subr.mxu1 %v3954_v0 }
 0x1d2   : > { %2747 = vmatpush1.msra.mxu1 %v6142_v38  ;;  %3728 = vmatprep.mubr.msk.f32.mxu1 %vm869_vm3, %v5509_v51 }
 0x1d3   : > { %2748 = vmatprep.subr.mxu1 %v3954_v0  ;;  %v675_v15 = vpop.f32.mrf.mxu1 }
 0x1d4   : > { %2749 = vmatpush1.msra.mxu1 %v6143_v52  ;;  %v676_v30 = vadd.f32 %v675_v15, %v548_v37  ;;  %v5630_v54 = vpop.f32.mrf.mxu0  ;;  %v6145_v37 = vld [vmem:[#allocation13_spill] sm:$0xff]  ;;  %v3913_v15 = vld [vmem:[%s4040_s15 + $0xd0] sm:$0xff] }
 0x1d5   : > { %2780 = vmatprep.subr.mxu1 %v3954_v0  ;;  %v677_v45 = vpop.f32.mrf.mxu1 }
 0x1d6   : > { %3727 = vmatpush2.msk.msra.mxu1 %vm894_vm4, %v2690_v47  ;;  %686 = vst [vmem:[%s5520_s19 + $0x70] sm:$0xff] %v676_v30  ;;  %v5637_v51 = vpop.f32.mrf.mxu0 }
 0x1d7   : > { %2783 = vmatmul.mubr.f32.vlgmr.msra.gmra.mxu1 %v5505_v9  ;;  %3782 = vmatprep.subr.mxu1 %v3954_v0 }
 0x1d8   : > { %3799 = vmatpush1.msra.mxu1 %v3901_v14  ;;  %3729 = vmatprep.mubr.msk.f32.mxu1 %vm869_vm3, %v5529_v8 }
 0x1d9   : > { %3783 = vmatprep.subr.mxu1 %v3954_v0 }
 0x1da   : > { %3800 = vmatpush1.msra.mxu1 %v3902_v27  ;;  %v5648_v9 = vpop.f32.mrf.mxu1 }
 0x1db   : > { %2788 = vmatmul.mubr.f32.gmra.mxu1 %v5522_v55  ;;  %3784 = vmatprep.subr.mxu1 %v3954_v0  ;;  %v5652_v57 = vpop.f32.mrf.mxu0  ;;  %v3904_v55 = vld [vmem:[%s6091_s3 + $0x170] sm:$0xff] }
 0x1dc   : > { %3801 = vmatpush1.msra.mxu1 %v3903_v25  ;;  %3730 = vmatprep.mubr.msk.f32.mxu1 %vm869_vm3, %v5545_v26  ;;  %v966_v8 = vpop.f32.mrf.mxu1 }
 0x1dd   : > { %3785 = vmatprep.subr.mxu1 %v3954_v0  ;;  %v5660_v56 = vpop.f32.mrf.mxu0 }
 0x1de   : > { %3802 = vmatpush1.msra.mxu1 %v3904_v55 }
 0x1df   : > { %2793 = vmatmul.mubr.f32.gmra.mxu1 %v5537_v39  ;;  %3786 = vmatprep.subr.mxu1 %v3954_v0  ;;  %v3906_v39 = vld [vmem:[%s6091_s3 + $0x160] sm:$0xff] }
 0x1e0   : > { %3803 = vmatpush1.msra.mxu1 %v3905_v7  ;;  %3731 = vmatprep.mubr.msk.f32.mxu1 %vm869_vm3, %v5558_v10  ;;  %v5672_v26 = vpop.f32.mrf.mxu1  ;;  %v3907_v10 = vld [vmem:[%s6091_s3 + $0x158] sm:$0xff] }
 0x1e1   : > { %3787 = vmatprep.subr.mxu1 %v3954_v0  ;;  %v5675_v23 = vpop.f32.mrf.mxu0 }
 0x1e2   : > { %3804 = vmatpush1.msra.mxu1 %v3906_v39  ;;  %v971_v21 = vpop.f32.mrf.mxu1  ;;  %v1695_v39 = vmul.f32 %v5648_v9, %v5648_v9 }
 0x1e3   : > { %2798 = vmatmul.mubr.f32.gmra.mxu1 %v5550_v35  ;;  %3788 = vmatprep.subr.mxu1 %v3954_v0  ;;  %v5682_v5 = vpop.f32.mrf.mxu0 }
 0x1e4   : > { %3805 = vmatpush1.msra.mxu1 %v3907_v10  ;;  %3732 = vmatprep.mubr.msk.f32.mxu1 %vm869_vm3, %v5570_v62  ;;  %v3909_v62 = vld [vmem:[%s6091_s3 + $0x148] sm:$0xff] }
 0x1e5   : > { %3789 = vmatprep.subr.mxu1 %v3954_v0 }
 0x1e6   : > { %3806 = vmatpush1.msra.mxu1 %v3908_v31  ;;  %v5693_v35 = vpop.f32.mrf.mxu1 }
 0x1e7   : > { %2803 = vmatmul.mubr.f32.gmra.mxu1 %v5563_v13  ;;  %3790 = vmatprep.subr.mxu1 %v3954_v0  ;;  %v5697_v4 = vpop.f32.mrf.mxu0 }
 0x1e8   : > { %3807 = vmatpush1.msra.mxu1 %v3909_v62  ;;  %3733 = vmatprep.mubr.msk.f32.mxu1 %vm869_vm3, %v5584_v34  ;;  %v976_v33 = vpop.f32.mrf.mxu1  ;;  %v3910_v34 = vld [vmem:[%s4040_s15 + $0x88] sm:$0xff] }
 0x1e9   : > { %3791 = vmatprep.subr.mxu1 %v3954_v0  ;;  %v5705_v29 = vpop.f32.mrf.mxu0  ;;  %v3023_v48 = vrot.slane %v3910_v34, 1  ;;  %v1703_v33 = vmul.f32 3.0, %v1695_v39 }
 0x1ea   : > { %3808 = vmatpush1.msra.mxu1 %v4950_v49 }
 0x1eb   : > { %2808 = vmatmul.mubr.f32.gmra.mxu1 %v5579_v16  ;;  %3792 = vmatprep.subr.mxu1 %v3954_v0  ;;  %v6144_v16 = vrot.slane %v4498_v22, 1 }
 0x1ec   : > { %3809 = vmatpush1.msra.mxu1 %v4971_v53  ;;  %3734 = vmatprep.mubr.msk.f32.mxu1 %vm869_vm3, %v5602_v32  ;;  %v5713_v13 = vpop.f32.mrf.mxu1 }
 0x1ed   : > { %3793 = vmatprep.subr.mxu1 %v3954_v0  ;;  %v5717_v41 = vpop.f32.mrf.mxu0  ;;  %v3024_v32 = vsel %vm1480_vm5, %v6144_v16, %v3023_v48 }
 0x1ee   : > { %3810 = vmatpush1.msra.mxu1 %v4989_v17  ;;  %v981_v49 = vpop.f32.mrf.mxu1 }
 0x1ef   : > { %2813 = vmatmul.mubr.f32.gmra.mxu1 %v5594_v43  ;;  %3794 = vmatprep.subr.mxu1 %v3954_v0  ;;  %v5722_v53 = vpop.f32.mrf.mxu0  ;;  %v3911_v43 = vld [vmem:[%s4040_s15 + $0xa0] sm:$0xff] }
 0x1f0   : > { %3811 = vmatpush1.msra.mxu1 %v5010_v61  ;;  %3735 = vmatprep.mubr.msk.f32.mxu1 %vm869_vm3, %v5617_v58  ;;  %v3027_v60 = vrot.slane %v3911_v43, 1 }
 0x1f1   : > { %3795 = vmatprep.subr.mxu1 %v3954_v0 }
 0x1f2   : > { %3812 = vmatpush1.msra.mxu1 %v5028_v2  ;;  %v5732_v17 = vpop.f32.mrf.mxu1  ;;  %v3912_v2 = vld [vmem:[%s4040_s15 + $0xb8] sm:$0xff]  ;;  %s3955_s15 = smov 1  }
 0x1f3   : > { %2818 = vmatmul.mubr.f32.gmra.mxu1 %v5612_v11  ;;  %3796 = vmatprep.subr.mxu1 %v3954_v0  ;;  %v5737_v61 = vpop.f32.mrf.mxu0  ;;  %v3031_v58 = vrot.slane %v3912_v2, 1  ;;  %v3028_v11 = vsel %vm1480_vm5, %v3023_v48, %v3027_v60 }
 0x1f4   : > { %3813 = vmatpush1.msra.mxu1 %v5049_v42  ;;  %3774 = vmatprep.mubr.msk.f32.mxu1 %vm869_vm3, %v3024_v32  ;;  %v986_v22 = vpop.f32.mrf.mxu1 }
 0x1f5   : > { %3797 = vmatprep.subr.mxu1 %v3954_v0  ;;  %v5742_v18 = vpop.f32.mrf.mxu0  ;;  %v1697_v22 = vmul.f32 %v5693_v35, %v5693_v35 }
 0x1f6   : > { %3814 = vmatpush1.msra.mxu1 %v5072_v36  ;;  %v3035_v36 = vrot.slane %v3913_v15, 1 }
 0x1f7   : > { %3798 = vmatprep.subr.mxu1 %v3954_v0  ;;  %v3032_v0 = vsel %vm1480_vm5, %v3027_v60, %v3031_v58  ;;  %v1705_v15 = vmul.f32 3.0, %v1697_v22 }
 0x1f8   : > { %3815 = vmatpush2.msk.msra.mxu1 %vm894_vm4, %v6145_v37  ;;  %v5750_v42 = vpop.f32.mrf.mxu1 }
 0x1f9   : > { %3149 = vmatmul.mubr.f32.vlgmr.msra.gmra.mxu1 %v5314_v40  ;;  %v5753_v38 = vpop.f32.mrf.mxu0  ;;  %v3036_v40 = vsel %vm1480_vm5, %v3031_v58, %v3035_v36  ;;  %v1698_v36 = vmul.f32 %v5713_v13, %v5713_v13  ;;  %v1700_v13 = vmul.f32 %v5750_v42, %v5750_v42 }
 0x1fa   : > { %3775 = vmatprep.mubr.msk.f32.mxu1 %vm869_vm3, %v3028_v11  ;;  %v991_v47 = vpop.f32.mrf.mxu1 }
 0x1fb   : > { %v5757_v52 = vpop.f32.mrf.mxu0  ;;  %v1706_v35 = vmul.f32 3.0, %v1698_v36 }
 0x1fd   : > { %3154 = vmatmul.mubr.f32.gmra.mxu1 %v5334_v50 }
 0x1fe   : > { %3776 = vmatprep.mubr.msk.f32.mxu1 %vm869_vm3, %v3032_v0  ;;  %v994_v30 = vpop.f32.mrf.mxu1 }
 0x1ff   : > { %v5762_v45 = vpop.f32.mrf.mxu0 }
 0x200   : > { %v996_v14 = vpop.f32.mrf.mxu1 }
 0x201   : > { %3159 = vmatmul.mubr.f32.gmra.mxu1 %v5354_v44  ;;  %v5766_v27 = vpop.f32.mrf.mxu0 }
 0x202   : > { %3777 = vmatprep.mubr.msk.f32.mxu1 %vm869_vm3, %v3036_v40 }
 0x204   : > { %v999_v25 = vpop.f32.mrf.mxu1 }
 0x205   : > { %v3130_v8 = vpop.f32.mrf.mxu0  ;;  %3164 = vmatmul.mubr.f32.gmra.mxu1 %v5373_v1  ;;  %v1696_v1 = vmul.f32 %v5672_v26, %v5672_v26 }
 0x206   : > { %3177 = vrot.lane.b32.xlu1 %v3130_v8, %s3955_s15  ;;  %v1001_v50 = vpop.f32.mrf.mxu1 }
 0x207   : > { %v3132_v55 = vpop.f32.mrf.mxu0  ;;  %v1704_v60 = vmul.f32 3.0, %v1696_v1 }
 0x208   : > { %v1699_v55 = vmul.f32 %v5732_v17, %v5732_v17 }
 0x209   : > { %v3135_v7 = vpop.f32.mrf.mxu0 }
 0x20a   : > { %3179 = vrot.lane.b32.xlu1 %v3135_v7, %s3955_s15 }
 0x20b   : > { %v1259_v44 = vpop.f32.mrf.mxu1  ;;  %v3137_v21 = vpop.f32.mrf.mxu0 }
 0x20c   : > { %v1711_v10 = vmul.f32 %v1259_v44, %v1259_v44 }
 0x20d   : > { %v1261_v31 = vpop.f32.mrf.mxu1  ;;  %v3140_v62 = vpop.f32.mrf.mxu0 }
 0x20e   : > { %v1719_v34 = vmul.f32 3.0, %v1711_v10  ;;  %3181 = vrot.lane.b32.xlu1 %v3140_v62, %s3955_s15  ;;  %v1707_v31 = vmul.f32 3.0, %v1699_v55 }
 0x20f   : > { %v1264_v48 = vpop.f32.mrf.mxu1  ;;  %v3142_v49 = vpop.f32.mrf.mxu0 }
 0x210   : > { %v5777_v16 = vadd.f32 %v1719_v34, %v1703_v33  ;;  %v1712_v32 = vmul.f32 %v1264_v48, %v1264_v48  ;;  %v1708_v49 = vmul.f32 3.0, %v1700_v13 }
 0x211   : > { %v1266_v9 = vpop.f32.mrf.mxu1  ;;  %v3145_v43 = vpop.f32.mrf.mxu0 }
 0x212   : > { %v1720_v2 = vmul.f32 3.0, %v1712_v32  ;;  %3183 = vrot.lane.b32.xlu1 %v3145_v43, %s3955_s15  ;;  %v1701_v32 = vmul.f32 %v994_v30, %v994_v30 }
 0x213   : > { %v1269_v58 = vpop.f32.mrf.mxu1  ;;  %v3147_v11 = vpop.f32.mrf.mxu0 }
 0x214   : > { %v5782_v26 = vadd.f32 %v1720_v2, %v1704_v60  ;;  %v1713_v37 = vmul.f32 %v1269_v58, %v1269_v58  ;;  %v1709_v2 = vmul.f32 3.0, %v1701_v32  ;;  %v1702_v58 = vmul.f32 %v999_v25, %v999_v25 }
 0x215   : > { %v1271_v47 = vpop.f32.mrf.mxu1 }
 0x216   : > { %v1721_v0 = vmul.f32 3.0, %v1713_v37  ;;  %v1710_v36 = vmul.f32 3.0, %v1702_v58 }
 0x217   : > { %v1274_v40 = vpop.f32.mrf.mxu1 }
 0x218   : > { %v5786_v14 = vadd.f32 %v1721_v0, %v1705_v15  ;;  %v1714_v8 = vmul.f32 %v1274_v40, %v1274_v40 }
 0x219   : > { %v1276_v50 = vpop.f32.mrf.mxu1 }
 0x21a   : > { %v1722_v7 = vmul.f32 3.0, %v1714_v8 }
 0x21b   : > { %v1279_v39 = vpop.f32.mrf.mxu1 }
 0x21c   : > { %v5790_v44 = vadd.f32 %v1722_v7, %v1706_v35  ;;  %v1715_v21 = vmul.f32 %v1279_v39, %v1279_v39 }
 0x21d   : > { %v1281_v10 = vpop.f32.mrf.mxu1 }
 0x21e   : > { %v1723_v62 = vmul.f32 3.0, %v1715_v21 }
 0x21f   : > { %v1284_v33 = vpop.f32.mrf.mxu1 }
 0x220   : > { %v5794_v1 = vadd.f32 %v1723_v62, %v1707_v31  ;;  %v1716_v34 = vmul.f32 %v1284_v33, %v1284_v33 }
 0x221   : > { %v1286_v48 = vpop.f32.mrf.mxu1 }
 0x222   : > { %v1724_v9 = vmul.f32 3.0, %v1716_v34 }
 0x223   : > { %v1289_v17 = vpop.f32.mrf.mxu1 }
 0x224   : > { %v5796_v43 = vadd.f32 %v1724_v9, %v1708_v49  ;;  %v1717_v60 = vmul.f32 %v1289_v17, %v1289_v17  ;;  %v2072_v49 = vld [vmem:[%s5500_s14 + $0x8] sm:$0xff] }
 0x225   : > { %v1291_v22 = vpop.f32.mrf.mxu1 }
 0x226   : > { %v1725_v11 = vmul.f32 3.0, %v1717_v60  ;;  %v2073_v60 = vld [vmem:[%s5500_s14 + $0x18] sm:$0xff] }
 0x227   : > { %v1294_v37 = vpop.f32.mrf.mxu1 }
 0x228   : > { %v5798_v47 = vadd.f32 %v1725_v11, %v1709_v2  ;;  %v1718_v42 = vmul.f32 %v1294_v37, %v1294_v37  ;;  %v2074_v11 = vld [vmem:[%s5500_s14 + $0x28] sm:$0xff] }
 0x229   : > { %v1296_v15 = vpop.f32.mrf.mxu1 }
 0x22a   : > { %v1726_v0 = vmul.f32 3.0, %v1718_v42 }
 0x22c   : > { %v5800_v40 = vadd.f32 %v1726_v0, %v1710_v36  ;;  %v2075_v36 = vld [vmem:[%s5500_s14 + $0x38] sm:$0xff] }
 0x22d   : > { %v1608_v8 = vpop.f32.mrf.mxu1 }
 0x22e   : > { %1655 = vrot.lane.b32.xlu0 %v1608_v8, %s3955_s15 }
 0x22f   : > { %v1610_v30 = vpop.f32.mrf.mxu1 }
 0x231   : > { %v1613_v50 = vpop.f32.mrf.mxu1 }
 0x232   : > { %1657 = vrot.lane.b32.xlu0 %v1613_v50, %s3955_s15  ;;  %v2076_v50 = vld [vmem:[%s5500_s14 + $0x48] sm:$0xff] }
 0x233   : > { %v1615_v35 = vpop.f32.mrf.mxu1 }
 0x235   : > { %v1618_v55 = vpop.f32.mrf.mxu1 }
 0x236   : > { %1659 = vrot.lane.b32.xlu0 %v1618_v55, %s3955_s15 }
 0x237   : > { %v1620_v25 = vpop.f32.mrf.mxu1 }
 0x239   : > { %v1623_v7 = vpop.f32.mrf.mxu1 }
 0x23a   : > { %1661 = vrot.lane.b32.xlu0 %v1623_v7, %s3955_s15  ;;  %v2077_v7 = vld [vmem:[%s5500_s14 + $0x58] sm:$0xff] }
 0x23b   : > { %v1625_v39 = vpop.f32.mrf.mxu1 }
 0x23d   : > { %v1628_v21 = vpop.f32.mrf.mxu1 }
 0x23e   : > { %1663 = vrot.lane.b32.xlu0 %v1628_v21, %s3955_s15 }
 0x23f   : > { %v1630_v10 = vpop.f32.mrf.mxu1 }
 0x241   : > { %v1633_v31 = vpop.f32.mrf.mxu1 }
 0x242   : > { %1665 = vrot.lane.b32.xlu0 %v1633_v31, %s3955_s15  ;;  %v2078_v31 = vld [vmem:[%s5500_s14 + $0x68] sm:$0xff] }
 0x243   : > { %v1635_v13 = vpop.f32.mrf.mxu1 }
 0x245   : > { %v1638_v62 = vpop.f32.mrf.mxu1 }
 0x246   : > { %1667 = vrot.lane.b32.xlu0 %v1638_v62, %s3955_s15 }
 0x247   : > { %v1640_v33 = vpop.f32.mrf.mxu1 }
 0x249   : > { %v1643_v34 = vpop.f32.mrf.mxu1 }
 0x24a   : > { %1669 = vrot.lane.b32.xlu0 %v1643_v34, %s3955_s15  ;;  %v2079_v34 = vld [vmem:[%s5500_s14 + $0x78] sm:$0xff]  ;;  %s3956_s14 = smov 127  }
 0x24b   : > { %v1645_v48 = vpop.f32.mrf.mxu1 }
 0x253   : > { %v2170_v32 = vpop.f32.mrf.mxu1 }
 0x254   : > { %v2171_v9 = vadd.f32 %v2170_v32, %v2072_v49 }
 0x255   : > { %v2172_v17 = vpop.f32.mrf.mxu1 }
 0x256   : > { %2209 = vst [vmem:[%s5520_s19 + $0x8] sm:$0xff] %v2171_v9 }
 0x257   : > { %v2175_v22 = vpop.f32.mrf.mxu1 }
 0x258   : > { %v2176_v2 = vadd.f32 %v2175_v22, %v2073_v60 }
 0x259   : > { %v2177_v58 = vpop.f32.mrf.mxu1 }
 0x25a   : > { %2210 = vst [vmem:[%s5520_s19 + $0x18] sm:$0xff] %v2176_v2 }
 0x25b   : > { %v2180_v37 = vpop.f32.mrf.mxu1 }
 0x25c   : > { %v2181_v42 = vadd.f32 %v2180_v37, %v2074_v11 }
 0x25d   : > { %v2182_v15 = vpop.f32.mrf.mxu1 }
 0x25e   : > { %2211 = vst [vmem:[%s5520_s19 + $0x28] sm:$0xff] %v2181_v42 }
 0x25f   : > { %v2185_v0 = vpop.f32.mrf.mxu1 }
 0x260   : > { %v2186_v8 = vadd.f32 %v2185_v0, %v2075_v36 }
 0x261   : > { %v2187_v30 = vpop.f32.mrf.mxu1 }
 0x262   : > { %2212 = vst [vmem:[%s5520_s19 + $0x38] sm:$0xff] %v2186_v8 }
 0x263   : > { %v2190_v35 = vpop.f32.mrf.mxu1 }
 0x264   : > { %v2191_v55 = vadd.f32 %v2190_v35, %v2076_v50 }
 0x265   : > { %v2192_v25 = vpop.f32.mrf.mxu1 }
 0x266   : > { %2213 = vst [vmem:[%s5520_s19 + $0x48] sm:$0xff] %v2191_v55 }
 0x267   : > { %v2195_v39 = vpop.f32.mrf.mxu1 }
 0x268   : > { %v2196_v21 = vadd.f32 %v2195_v39, %v2077_v7 }
 0x269   : > { %v2197_v10 = vpop.f32.mrf.mxu1 }
 0x26a   : > { %2214 = vst [vmem:[%s5520_s19 + $0x58] sm:$0xff] %v2196_v21 }
 0x26b   : > { %v2200_v13 = vpop.f32.mrf.mxu1 }
 0x26c   : > { %v2201_v62 = vadd.f32 %v2200_v13, %v2078_v31 }
 0x26d   : > { %v2202_v33 = vpop.f32.mrf.mxu1 }
 0x26e   : > { %2215 = vst [vmem:[%s5520_s19 + $0x68] sm:$0xff] %v2201_v62 }
 0x26f   : > { %v2205_v48 = vpop.f32.mrf.mxu1 }
 0x270   : > { %v2206_v49 = vadd.f32 %v2205_v48, %v2079_v34 }
 0x271   : > { %v2207_v32 = vpop.f32.mrf.mxu1 }
 0x272   : > { %2216 = vst [vmem:[%s5520_s19 + $0x78] sm:$0xff] %v2206_v49 }
 0x275   : > { %v2490_v9 = vpop.f32.mrf.mxu1 }
 0x276   : > { %v3217_v55 = vmul.f32 %v2490_v9, %v2490_v9 }
 0x277   : > { %v2492_v17 = vpop.f32.mrf.mxu1 }
 0x278   : > { %v3225_v21 = vmul.f32 3.0, %v3217_v55 }
 0x279   : > { %v2495_v60 = vpop.f32.mrf.mxu1 }
 0x27a   : > { %v3218_v10 = vmul.f32 %v2495_v60, %v2495_v60  ;;  %v5836_v60 = vpop.permute.xlu1 %3177 }
 0x27b   : > { %v2497_v22 = vpop.f32.mrf.mxu1 }
 0x27c   : > { %v3226_v48 = vmul.f32 3.0, %v3218_v10 }
 0x27d   : > { %v2500_v2 = vpop.f32.mrf.mxu1 }
 0x27e   : > { %v3219_v49 = vmul.f32 %v2500_v2, %v2500_v2 }
 0x27f   : > { %v2502_v58 = vpop.f32.mrf.mxu1 }
 0x281   : > { %v2505_v11 = vpop.f32.mrf.mxu1 }
 0x283   : > { %v2507_v37 = vpop.f32.mrf.mxu1 }
 0x285   : > { %v2510_v42 = vpop.f32.mrf.mxu1 }
 0x287   : > { %v2512_v15 = vpop.f32.mrf.mxu1 }
 0x289   : > { %v2515_v36 = vpop.f32.mrf.mxu1 }
 0x28b   : > { %v2517_v0 = vpop.f32.mrf.mxu1 }
 0x28c   : > { %v3227_v0 = vmul.f32 3.0, %v3219_v49 }
 0x28d   : > { %v2520_v8 = vpop.f32.mrf.mxu1 }
 0x28f   : > { %v2522_v30 = vpop.f32.mrf.mxu1 }
 0x290   : > { %v3220_v30 = vmul.f32 %v2505_v11, %v2505_v11  ;;  %v3201_v11 = vadd.f32 %v5836_v60, %v5630_v54 }
 0x291   : > { %v5826_v50 = vpop.f32.mrf.mxu1 }
 0x292   : > { %v3228_v10 = vmul.f32 3.0, %v3220_v30 }
 0x293   : > { %v2527_v35 = vpop.f32.mrf.mxu1 }
 0x297   : > { %v2784_v25 = vpop.f32.mrf.mxu1 }
 0x298   : > { %v3233_v7 = vmul.f32 %v2784_v25, %v2784_v25 }
 0x299   : > { %v2786_v39 = vpop.f32.mrf.mxu1 }
 0x29a   : > { %v3241_v31 = vmul.f32 3.0, %v3233_v7 }
 0x29b   : > { %v2789_v13 = vpop.f32.mrf.mxu1 }
 0x29c   : > { %v5828_v62 = vadd.f32 %v3241_v31, %v3225_v21  ;;  %v3234_v33 = vmul.f32 %v2789_v13, %v2789_v13  ;;  %v3221_v31 = vmul.f32 %v2510_v42, %v2510_v42  ;;  %v3257_v42 = vmul.f32 %v3201_v11, %v3201_v11 }
 0x29d   : > { %v2791_v34 = vpop.f32.mrf.mxu1 }
 0x29e   : > { %v3242_v32 = vmul.f32 3.0, %v3234_v33 }
 0x29f   : > { %v2794_v17 = vpop.f32.mrf.mxu1 }
 0x2a0   : > { %v5830_v22 = vadd.f32 %v3242_v32, %v3226_v48  ;;  %v3235_v58 = vmul.f32 %v2794_v17, %v2794_v17  ;;  %v5832_v37 = vpop.permute.xlu0 %1655  ;;  %v5847_v48 = vpop.permute.xlu1 %3179  ;;  %v3229_v17 = vmul.f32 3.0, %v3221_v31 }
 0x2a1   : > { %v1679_v9 = vadd.f32 %v5832_v37, %v5165_v20  ;;  %v2796_v15 = vpop.f32.mrf.mxu1 }
 0x2a2   : > { %v3243_v35 = vmul.f32 3.0, %v3235_v58  ;;  %v3222_v58 = vmul.f32 %v2515_v36, %v2515_v36 }
 0x2a3   : > { %v1735_v55 = vmul.f32 %v1679_v9, %v1679_v9  ;;  %v2799_v25 = vpop.f32.mrf.mxu1 }
 0x2a4   : > { %v5838_v7 = vadd.f32 %v3243_v35, %v3227_v0  ;;  %v3236_v2 = vmul.f32 %v2799_v25, %v2799_v25  ;;  %v5840_v39 = vpop.permute.xlu0 %1657  ;;  %v3203_v0 = vadd.f32 %v5847_v48, %v5652_v57  ;;  %v3230_v25 = vmul.f32 3.0, %v3222_v58  ;;  %v5861_v31 = vpop.permute.xlu1 %3181 }
 0x2a5   : > { %v1681_v21 = vadd.f32 %v5840_v39, %v5183_v19  ;;  %1767 = vrot.lane.b32.xlu0 %v1735_v55, %s3956_s14  ;;  %v2801_v20 = vpop.f32.mrf.mxu1 }
 0x2a6   : > { %v3244_v13 = vmul.f32 3.0, %v3236_v2  ;;  %v3223_v2 = vmul.f32 %v2520_v8, %v2520_v8  ;;  %v3259_v20 = vmul.f32 %v3203_v0, %v3203_v0  ;;  %v3224_v8 = vmul.f32 %v5826_v50, %v5826_v50 }
 0x2a7   : > { %v1737_v33 = vmul.f32 %v1681_v21, %v1681_v21  ;;  %v2804_v34 = vpop.f32.mrf.mxu1 }
 0x2a8   : > { %v5849_v49 = vadd.f32 %v3244_v13, %v3228_v10  ;;  %v3237_v32 = vmul.f32 %v2804_v34, %v2804_v34  ;;  %v5852_v15 = vpop.permute.xlu0 %1659  ;;  %v3231_v34 = vmul.f32 3.0, %v3223_v2  ;;  %v3232_v0 = vmul.f32 3.0, %v3224_v8  ;;  %v3184_v50 = vpop.permute.xlu1 %3183 }
 0x2a9   : > { %1771 = vrot.lane.b32.xlu0 %v1737_v33, %s3956_s14  ;;  %v2806_v19 = vpop.f32.mrf.mxu1  ;;  %v1683_v36 = vadd.f32 %v5852_v15, %v5195_v63 }
 0x2aa   : > { %v3245_v9 = vmul.f32 3.0, %v3237_v32  ;;  %v3205_v19 = vadd.f32 %v5861_v31, %v5675_v23 }
 0x2ab   : > { %v2809_v54 = vpop.f32.mrf.mxu1  ;;  %v1739_v63 = vmul.f32 %v1683_v36, %v1683_v36 }
 0x2ac   : > { %v5856_v30 = vadd.f32 %v3245_v9, %v3229_v17  ;;  %v3238_v35 = vmul.f32 %v2809_v54, %v2809_v54  ;;  %v5865_v57 = vpop.permute.xlu0 %1661 }
 0x2ad   : > { %3289 = vrot.lane.b32.xlu0 %v3257_v42, %s3956_s14  ;;  %v2811_v55 = vpop.f32.mrf.mxu1 }
 0x2ae   : > { %v3246_v21 = vmul.f32 3.0, %v3238_v35  ;;  %v3261_v55 = vmul.f32 %v3205_v19, %v3205_v19 }
 0x2af   : > { %v2814_v10 = vpop.f32.mrf.mxu1 }
 0x2b0   : > { %v5863_v13 = vadd.f32 %v3246_v21, %v3230_v25  ;;  %v3239_v11 = vmul.f32 %v2814_v10, %v2814_v10  ;;  %v1664_v54 = vpop.permute.xlu0 %1663  ;;  %v1685_v25 = vadd.f32 %v5865_v57, %v5206_v6  ;;  %v3207_v21 = vadd.f32 %v3184_v50, %v5697_v4 }
 0x2b1   : > { %3293 = vrot.lane.b32.xlu0 %v3259_v20, %s3956_s14  ;;  %v2816_v33 = vpop.f32.mrf.mxu1  ;;  %v1687_v6 = vadd.f32 %v1664_v54, %v5217_v3 }
 0x2b2   : > { %v3247_v32 = vmul.f32 3.0, %v3239_v11  ;;  %v1741_v20 = vmul.f32 %v1685_v25, %v1685_v25  ;;  %v3263_v33 = vmul.f32 %v3207_v21, %v3207_v21 }
 0x2b3   : > { %v2819_v17 = vpop.f32.mrf.mxu1  ;;  %v1743_v19 = vmul.f32 %v1687_v6, %v1687_v6  ;;  %v6148_v6 = vld [vmem:[#allocation18_spill] sm:$0xff] }
 0x2b4   : > { %v5872_v58 = vadd.f32 %v3247_v32, %v3231_v34  ;;  %v3240_v9 = vmul.f32 %v2819_v17, %v2819_v17  ;;  %v1666_v10 = vpop.permute.xlu0 %1665  ;;  %v1680_v17 = vadd.f32 %v5832_v37, %v5176_v24  ;;  %v3202_v37 = vadd.f32 %v5836_v60, %v5637_v51 }
 0x2b5   : > { %1775 = vrot.lane.b32.xlu0 %v1739_v63, %s3956_s14  ;;  %v2821_v42 = vpop.f32.mrf.mxu1  ;;  %v1689_v4 = vadd.f32 %v1666_v10, %v5228_v28  ;;  %v3206_v51 = vadd.f32 %v5861_v31, %v5682_v5  ;;  %v6149_v31 = vld [vmem:[#allocation19_spill] sm:$0xff] }
 0x2b6   : > { %v3248_v35 = vmul.f32 3.0, %v3240_v9  ;;  %v3258_v21 = vmul.f32 %v3202_v37, %v3202_v37 }
 0x2b7   : > { %v1745_v3 = vmul.f32 %v1689_v4, %v1689_v4 }
 0x2b8   : > { %v5877_v2 = vadd.f32 %v3248_v35, %v3232_v0  ;;  %v1668_v32 = vpop.permute.xlu0 %1667  ;;  %v1736_v35 = vmul.f32 %v1680_v17, %v1680_v17 }
 0x2b9   : > { %3297 = vrot.lane.b32.xlu0 %v3261_v55, %s3956_s14  ;;  %v3150_v23 = vpop.f32.mrf.mxu1  ;;  %v1691_v42 = vadd.f32 %v1668_v32, %v5238_v46  ;;  %v1682_v55 = vadd.f32 %v5840_v39, %v5188_v59  ;;  %v3204_v59 = vadd.f32 %v5847_v48, %v5660_v56  ;;  %v3208_v48 = vadd.f32 %v3184_v50, %v5705_v29  ;;  %v6151_v50 = vld [vmem:[#allocation21_spill] sm:$0xff] }
 0x2ba   : > { %3185 = vrot.lane.b32.xlu1 %v3150_v23, %s3955_s15 }
 0x2bb   : > { %v3152_v36 = vpop.f32.mrf.mxu1  ;;  %v1747_v28 = vmul.f32 %v1691_v42, %v1691_v42  ;;  %v1738_v23 = vmul.f32 %v1682_v55, %v1682_v55  ;;  %v3260_v39 = vmul.f32 %v3204_v59, %v3204_v59  ;;  %v5931_v42 = vstv %s3542_s8  ;;  %s3541_s8 = sshll.u32 %s6171_s25, 1 }
 0x2bc   : > { %v1670_v25 = vpop.permute.xlu0 %1669  ;;  %v3262_v36 = vmul.f32 %v3206_v51, %v3206_v51  ;;  %s346_s17 = sadd.s32 %s3541_s8, %s6175_s24 }
 0x2bd   : > { %1779 = vrot.lane.b32.xlu0 %v1741_v20, %s3956_s14  ;;  %v3155_v11 = vpop.f32.mrf.mxu1  ;;  %v1693_v24 = vadd.f32 %v1670_v25, %v5251_v12  ;;  %v6146_v20 = vld [vmem:[#allocation16_spill] sm:$0xff]  ;;  %s347_s23 = scalar_lea.vmem %s6095_s7, %s346_s17 }
 0x2be   : > { %3187 = vrot.lane.b32.xlu1 %v3155_v11, %s3955_s15  ;;  %v1684_v12 = vadd.f32 %v5852_v15, %v6146_v20  ;;  %v6147_v11 = vld [vmem:[#allocation17_spill] sm:$0xff]  ;;  %v3264_v15 = vmul.f32 %v3208_v48, %v3208_v48 }
 0x2bf   : > { %v3157_v34 = vpop.f32.mrf.mxu1  ;;  %v1749_v46 = vmul.f32 %v1693_v24, %v1693_v24  ;;  %v1686_v56 = vadd.f32 %v5865_v57, %v6147_v11  ;;  %v6150_v57 = vld [vmem:[#allocation20_spill] sm:$0xff] }
 0x2c0   : > { %v1740_v60 = vmul.f32 %v1684_v12, %v1684_v12  ;;  %v1688_v34 = vadd.f32 %v1664_v54, %v6148_v6  ;;  %v1692_v4 = vadd.f32 %v1668_v32, %v6150_v57  ;;  %v1824_v54 = vlaneseq }
 0x2c1   : > { %3301 = vrot.lane.b32.xlu0 %v3263_v33, %s3956_s14  ;;  %v3160_v8 = vpop.f32.mrf.mxu1  ;;  %v1742_v33 = vmul.f32 %v1686_v56, %v1686_v56 }
 0x2c2   : > { %3189 = vrot.lane.b32.xlu1 %v3160_v8, %s3955_s15  ;;  %v1744_v5 = vmul.f32 %v1688_v34, %v1688_v34  ;;  %v1690_v8 = vadd.f32 %v1666_v10, %v6149_v31  ;;  %v1748_v29 = vmul.f32 %v1692_v4, %v1692_v4 }
 0x2c3   : > { %v3162_v63 = vpop.f32.mrf.mxu1 }
 0x2c4   : > { %v1694_v63 = vadd.f32 %v1670_v25, %v6151_v50 }
 0x2c5   : > { %1783 = vrot.lane.b32.xlu0 %v1743_v19, %s3956_s14  ;;  %v3165_v9 = vpop.f32.mrf.mxu1  ;;  %v1746_v19 = vmul.f32 %v1690_v8, %v1690_v8 }
 0x2c6   : > { %3191 = vrot.lane.b32.xlu1 %v3165_v9, %s3955_s15  ;;  %v1750_v17 = vmul.f32 %v1694_v63, %v1694_v63  ;;  %v5926_v9 = vshrl.u32 %v1824_v54, 7 }
 0x2c7   : > { %v3167_v0 = vpop.f32.mrf.mxu1 }
 0x2c8   : > { %v1829_v10 = vadd.s32 32, %v5926_v9  ;;  %v1832_v37 = vadd.s32 56, %v5926_v9  ;;  %v1834_v50 = vadd.s32 %v5931_v42, %v5926_v9 }
 0x2c9   : > { %1787 = vrot.lane.b32.xlu0 %v1745_v3, %s3956_s14  ;;  %v1843_v3 = vand.u32 127, %v1824_v54 }
 0x2ca   : > { %1769 = vrot.lane.b32.xlu1 %v1736_v35, %s3956_s14  ;;  %v5936_v0 = vadd.s32 %v5931_v42, %v1829_v10  ;;  %v1830_v35 = vadd.s32 40, %v5926_v9  ;;  %vm1844_vm0 = vcmp.lt.s32.totalorder %v1834_v50, 70 }
 0x2cb   : > { %v5933_v32 = vadd.s32 128, %v1843_v3 }
 0x2cc   : > { %vm1848_vm7 = vcmp.lt.s32.totalorder %v5936_v0, 70  ;;  %v5942_v55 = vadd.s32 %v5931_v42, %v1830_v35 }
 0x2cd   : > { %1791 = vrot.lane.b32.xlu0 %v1747_v28, %s3956_s14  ;;  %vm3346_vm6 = vcmp.lt.s32.totalorder %v5933_v32, 166  ;;  %v1831_v28 = vadd.s32 48, %v5926_v9 }
 0x2ce   : > { %1773 = vrot.lane.b32.xlu1 %v1738_v23, %s3956_s14  ;;  %vm5948_vm8 = vmand %vm1848_vm7, %vm3346_vm6  ;;  %vm1849_vm9 = vcmp.lt.s32.totalorder %v5942_v55, 70 }
 0x2cf   : > { %vm5959_vm10 = vmand %vm1849_vm9, %vm3346_vm6 }
 0x2d0   : > { %vm3347_vm2 = vmand %vm1844_vm0, %vm3346_vm6 }
 0x2d1   : > { %1795 = vrot.lane.b32.xlu0 %v1749_v46, %s3956_s14  ;;  %v5964_v46 = vadd.s32 %v5931_v42, %v1831_v28 }
 0x2d2   : > { %3291 = vrot.lane.b32.xlu1 %v3258_v21, %s3956_s14 }
 0x2d3   : > { %vm1850_vm11 = vcmp.lt.s32.totalorder %v5964_v46, 70 }
 0x2d4   : > { %vm5976_vm12 = vmand %vm1850_vm11, %vm3346_vm6 }
 0x2d6   : > { %3295 = vrot.lane.b32.xlu1 %v3260_v39, %s3956_s14  ;;  %v5967_v39 = vadd.s32 %v5931_v42, %v1832_v37 }
 0x2d8   : > { %vm1851_vm13 = vcmp.lt.s32.totalorder %v5967_v39, 70 }
 0x2d9   : > { %vm5989_vm14 = vmand %vm1851_vm13, %vm3346_vm6 }
 0x2da   : > { %1777 = vrot.lane.b32.xlu1 %v1740_v60, %s3956_s14 }
 0x2de   : > { %3299 = vrot.lane.b32.xlu1 %v3262_v36, %s3956_s14 }
 0x2e2   : > { %1781 = vrot.lane.b32.xlu1 %v1742_v33, %s3956_s14 }
 0x2e6   : > { %3303 = vrot.lane.b32.xlu1 %v3264_v15, %s3956_s14 }
 0x2ea   : > { %1785 = vrot.lane.b32.xlu1 %v1744_v5, %s3956_s14 }
 0x2ee   : > { %1789 = vrot.lane.b32.xlu1 %v1746_v19, %s3956_s14 }
 0x2f2   : > { %1793 = vrot.lane.b32.xlu1 %v1748_v29, %s3956_s14 }
 0x2f6   : > { %1797 = vrot.lane.b32.xlu1 %v1750_v17, %s3956_s14 }
 0x317   : > { %v1768_v24 = vpop.permute.xlu0 %1767 }
 0x31b   : > { %v1772_v21 = vpop.permute.xlu0 %1771 }
 0x31f   : > { %v3290_v48 = vpop.permute.xlu0 %3289 }
 0x323   : > { %v3294_v31 = vpop.permute.xlu0 %3293 }
 0x32c   : > { %v3186_v59 = vpop.permute.xlu1 %3185 }
 0x32d   : > { %v3209_v20 = vadd.f32 %v3186_v59, %v5717_v41  ;;  %v3210_v12 = vadd.f32 %v3186_v59, %v5722_v53 }
 0x32f   : > { %v3265_v60 = vmul.f32 %v3209_v20, %v3209_v20  ;;  %v3266_v36 = vmul.f32 %v3210_v12, %v3210_v12  ;;  %v1827_v12 = vadd.s32 16, %v5926_v9 }
 0x330   : > { %v3188_v11 = vpop.permute.xlu1 %3187 }
 0x331   : > { %v3211_v56 = vadd.f32 %v3188_v11, %v5737_v61  ;;  %v3212_v41 = vadd.f32 %v3188_v11, %v5742_v18  ;;  %3305 = vrot.lane.b32.xlu0 %v3265_v60, %s3956_s14  ;;  %3307 = vrot.lane.b32.xlu1 %v3266_v36, %s3956_s14 }
 0x333   : > { %v3267_v33 = vmul.f32 %v3211_v56, %v3211_v56  ;;  %v3268_v15 = vmul.f32 %v3212_v41, %v3212_v41 }
 0x334   : > { %v3190_v6 = vpop.permute.xlu1 %3189 }
 0x335   : > { %v3213_v61 = vadd.f32 %v3190_v6, %v5753_v38  ;;  %v3214_v18 = vadd.f32 %v3190_v6, %v5757_v52  ;;  %3309 = vrot.lane.b32.xlu0 %v3267_v33, %s3956_s14  ;;  %3311 = vrot.lane.b32.xlu1 %v3268_v15, %s3956_s14  ;;  %v1826_v38 = vadd.s32 8, %v5926_v9 }
 0x337   : > { %v3269_v34 = vmul.f32 %v3213_v61, %v3213_v61  ;;  %v3270_v5 = vmul.f32 %v3214_v18, %v3214_v18 }
 0x338   : > { %v3192_v8 = vpop.permute.xlu1 %3191 }
 0x339   : > { %v3215_v19 = vadd.f32 %v3192_v8, %v5762_v45  ;;  %v3216_v57 = vadd.f32 %v3192_v8, %v5766_v27  ;;  %3313 = vrot.lane.b32.xlu0 %v3269_v34, %s3956_s14  ;;  %3315 = vrot.lane.b32.xlu1 %v3270_v5, %s3956_s14  ;;  %v1835_v45 = vadd.s32 %v5931_v42, %v1826_v38  ;;  %v1776_v27 = vpop.permute.xlu0 %1775 }
 0x33b   : > { %v3271_v52 = vmul.f32 %v3215_v19, %v3215_v19  ;;  %v3272_v4 = vmul.f32 %v3216_v57, %v3216_v57  ;;  %vm1845_vm1 = vcmp.lt.s32.totalorder %v1835_v45, 70 }
 0x33c   : > { %v1770_v29 = vpop.permute.xlu1 %1769  ;;  %vm3348_vm3 = vmand %vm1845_vm1, %vm3346_vm6 }
 0x33d   : > { %v1800_v63 = vsel %vm1799_vm15, %v1768_v24, %v1770_v29  ;;  %3319 = vrot.lane.b32.xlu1 %v3272_v4, %s3956_s14  ;;  %3317 = vrot.lane.b32.xlu0 %v3271_v52, %s3956_s14  ;;  %v3298_v35 = vpop.permute.xlu0 %3297 }
 0x33e   : > { %v1816_v17 = vadd.f32 %v1800_v63, %v5777_v16 }
 0x340   : > { %v1774_v54 = vpop.permute.xlu1 %1773  ;;  %v1861_v28 = vsel %vm1844_vm0, %v1816_v17, 0.0 }
 0x341   : > { %v1801_v3 = vsel %vm1799_vm15, %v1772_v21, %v1774_v54  ;;  %v1836_v21 = vadd.s32 %v5931_v42, %v1827_v12  ;;  %v1780_v11 = vpop.permute.xlu0 %1779 }
 0x342   : > { %v1817_v10 = vadd.f32 %v1801_v3, %v5782_v26 }
 0x343   : > { %vm1846_vm4 = vcmp.lt.s32.totalorder %v1836_v21, 70 }
 0x344   : > { %v1862_v37 = vsel %vm1845_vm1, %v1817_v10, 0.0  ;;  %v3292_v24 = vpop.permute.xlu1 %3291  ;;  %vm3349_vm5 = vmand %vm1846_vm4, %vm3346_vm6 }
 0x345   : > { %v1869_v59 = vadd.f32 %v1862_v37, %v1861_v28  ;;  %v3321_v20 = vsel %vm1799_vm15, %v3290_v48, %v3292_v24  ;;  %v3302_v61 = vpop.permute.xlu0 %3301 }
 0x346   : > { %v3337_v16 = vadd.f32 %v3321_v20, %v5828_v62  ;;  %v1828_v62 = vadd.s32 24, %v5926_v9 }
 0x348   : > { %v3355_v60 = vsel %vm3347_vm2, %v3337_v16, 0.0  ;;  %v3296_v36 = vpop.permute.xlu1 %3295 }
 0x349   : > { %v3322_v26 = vsel %vm1799_vm15, %v3294_v31, %v3296_v36 }
 0x34a   : > { %v3338_v56 = vadd.f32 %v3322_v26, %v5830_v22  ;;  %v1837_v22 = vadd.s32 %v5931_v42, %v1828_v62 }
 0x34c   : > { %v3356_v41 = vsel %vm3348_vm3, %v3338_v56, 0.0  ;;  %v1778_v33 = vpop.permute.xlu1 %1777  ;;  %vm1847_vm0 = vcmp.lt.s32.totalorder %v1837_v22, 70 }
 0x34d   : > { %v3363_v15 = vadd.f32 %v3356_v41, %v3355_v60  ;;  %v1802_v48 = vsel %vm1799_vm15, %v1776_v27, %v1778_v33  ;;  %vm3350_vm1 = vmand %vm1847_vm0, %vm3346_vm6 }
 0x34e   : > { %v1818_v6 = vadd.f32 %v1802_v48, %v5786_v14  ;;  %v1784_v14 = vpop.permute.xlu0 %1783 }
 0x350   : > { %v1863_v18 = vsel %vm1846_vm4, %v1818_v6, 0.0  ;;  %v3300_v34 = vpop.permute.xlu1 %3299 }
 0x351   : > { %v1870_v5 = vadd.f32 %v1869_v59, %v1863_v18  ;;  %v3323_v31 = vsel %vm1799_vm15, %v3298_v35, %v3300_v34 }
 0x352   : > { %v3339_v8 = vadd.f32 %v3323_v31, %v5838_v7  ;;  %v1788_v7 = vpop.permute.xlu0 %1787 }
 0x354   : > { %v3357_v19 = vsel %vm3349_vm5, %v3339_v8, 0.0  ;;  %v1782_v57 = vpop.permute.xlu1 %1781 }
 0x355   : > { %v3364_v38 = vadd.f32 %v3363_v15, %v3357_v19  ;;  %v1803_v9 = vsel %vm1799_vm15, %v1780_v11, %v1782_v57 }
 0x356   : > { %v1819_v52 = vadd.f32 %v1803_v9, %v5790_v44  ;;  %v1792_v28 = vpop.permute.xlu0 %1791 }
 0x358   : > { %v1864_v4 = vsel %vm1847_vm0, %v1819_v52, 0.0  ;;  %v3304_v29 = vpop.permute.xlu1 %3303 }
 0x359   : > { %v1871_v50 = vadd.f32 %v1870_v5, %v1864_v4  ;;  %v3324_v63 = vsel %vm1799_vm15, %v3302_v61, %v3304_v29 }
 0x35a   : > { %v3340_v42 = vadd.f32 %v3324_v63, %v5849_v49 }
 0x35c   : > { %v3358_v45 = vsel %vm3350_vm1, %v3340_v42, 0.0  ;;  %v1786_v27 = vpop.permute.xlu1 %1785 }
 0x35d   : > { %v3365_v17 = vadd.f32 %v3364_v38, %v3358_v45  ;;  %v1804_v54 = vsel %vm1799_vm15, %v1784_v14, %v1786_v27 }
 0x35e   : > { %v1820_v3 = vadd.f32 %v1804_v54, %v5794_v1  ;;  %v1796_v1 = vpop.permute.xlu0 %1795 }
 0x360   : > { %v1865_v44 = vsel %vm1848_vm7, %v1820_v3, 0.0  ;;  %v1790_v10 = vpop.permute.xlu1 %1789 }
 0x361   : > { %v1872_v35 = vadd.f32 %v1871_v50, %v1865_v44  ;;  %v1805_v32 = vsel %vm1799_vm15, %v1788_v7, %v1790_v10 }
 0x362   : > { %v1821_v37 = vadd.f32 %v1805_v32, %v5796_v43 }
 0x364   : > { %v1866_v49 = vsel %vm1849_vm9, %v1821_v37, 0.0  ;;  %v1794_v24 = vpop.permute.xlu1 %1793 }
 0x365   : > { %v1806_v59 = vsel %vm1799_vm15, %v1792_v28, %v1794_v24  ;;  %v1873_v20 = vadd.f32 %v1872_v35, %v1866_v49 }
 0x366   : > { %v1822_v12 = vadd.f32 %v1806_v59, %v5798_v47 }
 0x368   : > { %v1798_v16 = vpop.permute.xlu1 %1797  ;;  %v1867_v0 = vsel %vm1850_vm11, %v1822_v12, 0.0 }
 0x369   : > { %v1807_v60 = vsel %vm1799_vm15, %v1796_v1, %v1798_v16  ;;  %v1874_v36 = vadd.f32 %v1873_v20, %v1867_v0 }
 0x36a   : > { %v1823_v26 = vadd.f32 %v1807_v60, %v5800_v40 }
 0x36c   : > { %v1868_v43 = vsel %vm1851_vm13, %v1823_v26, 0.0 }
 0x36d   : > { %v1875_v55 = vadd.f32 %v1874_v36, %v1868_v43 }
 0x36f   : > { %1876 = vadd.xlane.f32.xlu0 %v1875_v55 }
 0x3a3   : > { %v3306_v21 = vpop.permute.xlu0 %3305  ;;  %v3308_v11 = vpop.permute.xlu1 %3307 }
 0x3a4   : > { %v3325_v56 = vsel %vm1799_vm15, %v3306_v21, %v3308_v11 }
 0x3a5   : > { %v3341_v47 = vadd.f32 %v3325_v56, %v5856_v30 }
 0x3a7   : > { %v3359_v46 = vsel %vm5948_vm8, %v3341_v47, 0.0  ;;  %v3310_v41 = vpop.permute.xlu0 %3309  ;;  %v3312_v33 = vpop.permute.xlu1 %3311 }
 0x3a8   : > { %v3366_v15 = vadd.f32 %v3365_v17, %v3359_v46  ;;  %v3326_v48 = vsel %vm1799_vm15, %v3310_v41, %v3312_v33 }
 0x3a9   : > { %v3342_v40 = vadd.f32 %v3326_v48, %v5863_v13 }
 0x3ab   : > { %v3360_v39 = vsel %vm5959_vm10, %v3342_v40, 0.0  ;;  %v3314_v62 = vpop.permute.xlu0 %3313  ;;  %v3316_v6 = vpop.permute.xlu1 %3315 }
 0x3ac   : > { %v3327_v61 = vsel %vm1799_vm15, %v3314_v62, %v3316_v6  ;;  %v3367_v18 = vadd.f32 %v3366_v15, %v3360_v39 }
 0x3ad   : > { %v3343_v30 = vadd.f32 %v3327_v61, %v5872_v58 }
 0x3af   : > { %v3318_v34 = vpop.permute.xlu0 %3317  ;;  %v3320_v25 = vpop.permute.xlu1 %3319  ;;  %v3361_v5 = vsel %vm5976_vm12, %v3343_v30, 0.0 }
 0x3b0   : > { %v3328_v31 = vsel %vm1799_vm15, %v3318_v34, %v3320_v25  ;;  %v3368_v22 = vadd.f32 %v3367_v18, %v3361_v5 }
 0x3b1   : > { %v3344_v13 = vadd.f32 %v3328_v31, %v5877_v2 }
 0x3b3   : > { %v3362_v23 = vsel %vm5989_vm14, %v3344_v13, 0.0 }
 0x3b4   : > { %v3369_v8 = vadd.f32 %v3368_v22, %v3362_v23 }
 0x3b6   : > { %3370 = vadd.xlane.f32.xlu1 %v3369_v8 }
 0x3f8   : > { %v1877_v19 = vpop.xlane.xlu0 %1876 }
 0x3f9   : > { %v1878_v57 = vrot.slane %v1877_v19, 4 }
 0x3fb   : > { %v1879_v58 = vadd.f32 %v1878_v57, %v1877_v19 }
 0x3fd   : > { %v1880_v38 = vrot.slane %v1879_v58, 2 }
 0x3ff   : > { %v1881_v9 = vadd.f32 %v1880_v38, %v1879_v58 }
 0x401   : > { %v1882_v51 = vrot.slane %v1881_v9, 1 }
 0x403   : > { %v1883_v14 = vadd.f32 %v1882_v51, %v1881_v9 }
 0x405   : > { %3817 = vpush %v1883_v14 }
 0x436   : > { %s3818_s19 = spop %3817 }
 0x43f   : > { %v3371_v52 = vpop.xlane.xlu1 %3370 }
 0x440   : > { %v3372_v4 = vrot.slane %v3371_v52, 4 }
 0x442   : > { %v3373_v29 = vadd.f32 %v3372_v4, %v3371_v52 }
 0x444   : > { %v3374_v2 = vrot.slane %v3373_v29, 2 }
 0x446   : > { %v3375_v50 = vadd.f32 %v3374_v2, %v3373_v29 }
 0x448   : > { %v3376_v53 = vrot.slane %v3375_v50, 1 }
 0x44a   : > { %v3377_v63 = vadd.f32 %v3376_v53, %v3375_v50 }
 0x44c   : > { %3819 = vpush %v3377_v63 }
 0x47d   : > { %s3820_s18 = spop %3819 }
 0x47e   : > { %s3379_s20 = sadd.f32 %s3820_s18, %s3818_s19 }
 0x480   : > { %s3380_s9 = smul.f32 2.8686174e-05, %s3379_s20 }
 0x482   : > { %v3381_v42 = vstv %s3380_s9 }
 0x483   : > { %3382 = vst [vmem:[%s347_s23] sm:$0x1] %v3381_v42 }
 0x484 PF: > { %s18_s28 = sadd.s32 1, %s3952_s28   ;;  %s6160_s24 = smov %s3944_s26 }
 0x485   : > { %p15_p8 = scmp.ge.s32.totalorder %s18_s28, 8   ;;  %s6161_s25 = smov %s3948_s27 }
 0x486   : > { %s6162_s26 = smov %s6165_s29  ;;  %s6163_s27 = smov %s6169_s30 }
 0x487   :  { %17 = sbr.rel (!%p15_p8) target bundleno = 3 (0x3), region = 94 }

</bundles_post_ra>
